<compile_context>
chip_gen: v7x
topology: tpu7x:2x2x1
jax: 0.10.0
libtpu: 0.0.40
codegen_flags: <defaults>
</compile_context>

<pallas_src>
import functools

import jax
import jax.numpy as jnp
import numpy as np
from jax.experimental import pallas as pl
from jax.experimental.pallas import tpu as pltpu


def _round_up(v, m):
    return (v + m - 1) // m * m


# ---------------------------------------------------------------------------
# One-time host-side probes (cached).
# ---------------------------------------------------------------------------
_VMEM_CAP = None
_BUFFERED_OK = None


def _vmem_capacity_bytes():
    """Physical per-core VMEM (v5e/v6e: 128 MiB, v7x: 64 MiB per TensorCore)."""
    global _VMEM_CAP
    if _VMEM_CAP is None:
        try:
            _VMEM_CAP = int(pltpu.get_tpu_info().vmem_capacity_bytes)
        except Exception:
            _VMEM_CAP = 64 * 1024 * 1024          # conservative (v7x per-TC)
    return _VMEM_CAP


def _probe_copy_kernel(w_ref, o_ref):
    o_ref[...] = w_ref[...]


def _buffered_invariants_supported():
    """Feature probe: can pl.Buffered(1) single-buffer a grid-invariant input?

    Single-buffering the resident codebook saves K*D bytes of VMEM; if the
    running JAX/Mosaic build rejects pipeline_mode on a pallas_call BlockSpec,
    fall back to the (always supported) default double buffering.
    """
    global _BUFFERED_OK
    if _BUFFERED_OK is not None:
        return _BUFFERED_OK
    try:
        spec = pl.BlockSpec((8, 128), lambda i: (0, 0), pipeline_mode=pl.Buffered(1))
        out = pl.pallas_call(
            _probe_copy_kernel,
            out_shape=jax.ShapeDtypeStruct((8, 128), jnp.float32),
            grid_spec=pltpu.PrefetchScalarGridSpec(
                num_scalar_prefetch=0,
                grid=(2,),
                in_specs=[spec],
                out_specs=pl.BlockSpec((8, 128), lambda i: (0, 0)),
            ),
        )(jnp.ones((8, 128), jnp.float32))
        jax.block_until_ready(out)
        _BUFFERED_OK = bool(np.all(np.asarray(out) == 1.0))
    except Exception:
        _BUFFERED_OK = False
    return _BUFFERED_OK


# ---------------------------------------------------------------------------
# Kernel
# ---------------------------------------------------------------------------
def _vq_kernel(x_ref, wt_ref, w_ref, w2_ref, q_ref, ids_ref, loss_ref):
    """One tile of rows: distances -> argmin -> one-hot gather -> loss."""
    x = x_ref[...]                       # (tn, D)  native dtype
    wt = wt_ref[...]                     # (D, K)   native dtype (pre-transposed)
    w = w_ref[...]                       # (K, D)   native dtype
    w2 = w2_ref[...]                     # (1, K)   f32 precomputed ||w||^2
    tn, D = x.shape
    K = w.shape[0]

    # distance surrogate:  ||w||^2 - 2 * x.w^T   (argmin invariant to +||x||^2).
    # wT is contracted on its leading dim -> natural MXU layout, no per-step
    # transpose of the codebook inside the kernel body.
    xw = jax.lax.dot_general(
        x, wt, dimension_numbers=(((1,), (0,)), ((), ())),
        preferred_element_type=jnp.float32)                  # (tn, K)  MXU
    d = w2 - 2.0 * xw                                        # (tn, K)  f32

    # first-occurrence argmin over the codebook axis.
    # NOTE: all-NaN rows yield ids == K -> all-zero one-hot (edge case only).
    k_iota = jax.lax.broadcasted_iota(jnp.int32, (tn, K), 1)
    min_d = jnp.min(d, axis=-1, keepdims=True)               # (tn, 1)
    ids_col = jnp.min(jnp.where(d <= min_d, k_iota, K),
                      axis=-1, keepdims=True)                # (tn, 1)
    onehot = k_iota == ids_col                                # (tn, K)

    # gather the selected codewords with a one-hot matmul (MXU).
    q = jax.lax.dot_general(
        onehot.astype(w.dtype), w,
        dimension_numbers=(((1,), (0,)), ((), ())),
        preferred_element_type=jnp.float32)                  # (tn, D) f32

    # per-row mean squared difference (shared forward value of both losses).
    diff = q - x.astype(jnp.float32)
    sq = diff * diff                                         # (tn, D) f32

    # lane-dense (1, tn) rows for ids / loss via tiny MXU contractions
    # (avoids 1-lane-wide masked stores and in-kernel relayouts).
    ones_row = jnp.ones((1, D), jnp.float32)
    loss_row = jax.lax.dot_general(
        ones_row, sq, dimension_numbers=(((1,), (1,)), ((), ())),
        preferred_element_type=jnp.float32) * (1.0 / D)      # (1, tn)
    k_row = jax.lax.broadcasted_iota(jnp.int32, (1, K), 1).astype(jnp.float32)
    ids_row = jax.lax.dot_general(
        k_row, onehot.astype(jnp.float32),
        dimension_numbers=(((1,), (1,)), ((), ())),
        preferred_element_type=jnp.float32)                  # (1, tn) exact ints

    q_ref[...] = q.astype(q_ref.dtype)
    ids_ref[0] = ids_row.astype(jnp.int32)
    loss_ref[0] = loss_row


# ---------------------------------------------------------------------------
# Wrapper
# ---------------------------------------------------------------------------
@functools.partial(
    jax.jit,
    static_argnames=("axis", "use_codebook_loss", "buffered_ok", "vmem_cap"))
def _vq_forward_impl(x, weight, *, axis, use_codebook_loss, buffered_ok, vmem_cap):
    ndim = x.ndim
    swap = axis != -1 and axis != ndim - 1
    if swap:
        x = jnp.swapaxes(x, axis, -1)

    lead_shape = x.shape[:-1]
    D = x.shape[-1]
    K, Dw = weight.shape
    assert D == Dw, "input feature dim must match embedding_dim"
    assert K < (1 << 24), "ids are recovered via f32 matmul; exact only for K < 2^24"

    N = int(np.prod(lead_shape)) if lead_shape else 1
    xf = x.reshape(N, D)

    x_item = jnp.dtype(x.dtype).itemsize
    w_item = jnp.dtype(weight.dtype).itemsize
    dp, kp = _round_up(D, 128), _round_up(K, 128)

    # --- row tile: scale with D (target ~4 MiB of lane-padded x per step) ---
    x_slab = 4 << 20
    tn = max(512, min(8192, x_slab // (dp * x_item)))
    tn = min(_round_up(tn, 8), _round_up(N, 8))
    tn = max(tn, 8)

    # --- padding-aware per-step VMEM working-set estimate -------------------
    inv = 1 if buffered_ok else 2          # buffer depth of grid-invariant inputs

    def _vmem_bytes(t):
        tp = _round_up(t, 8)
        x_io = 2 * tp * dp * x_item                      # streamed x (dbl-buf)
        q_io = 2 * tp * dp * x_item                      # quantized out (dbl-buf)
        side = 2 * 2 * 8 * _round_up(t, 128) * 4         # (1,1,tn) ids/loss blocks
        wbuf = inv * _round_up(K, 8) * dp * w_item       # codebook (K, D)
        wtbuf = inv * _round_up(D, 8) * kp * w_item      # transposed codebook (D, K)
        w2buf = inv * 8 * kp * 4                         # ||w||^2 row
        interm = 2 * tp * kp * 4 + 3 * tp * dp * 4       # xw/d + f32 q/diff/sq
        return x_io + q_io + side + wbuf + wtbuf + w2buf + interm

    # Per-TensorCore budget (v7x has only 64 MiB/TC and duplicates the
    # resident codebook on both cores under megacore sharding).
    budget = max(10 << 20, int(vmem_cap * 0.45))
    min_tn = max(8, min(512, _round_up(N, 8)))
    while tn > min_tn and _vmem_bytes(tn) > budget:
        tn = max(min_tn, _round_up(tn // 2, 8))

    est = _vmem_bytes(tn)
    vmem_limit = int(min(max(vmem_cap - (2 << 20), 16 << 20),
                         max(est + (6 << 20), 16 << 20)))

    num_tiles = pl.cdiv(N, tn)

    # grid-invariant operands hoisted out of the kernel (grid is a sequential
    # loop on one TC): ||w||^2 and the pre-transposed codebook for x.wT.
    w2 = jnp.sum(weight.astype(jnp.float32) ** 2, axis=-1)[None, :]   # (1, K)
    wT = jnp.swapaxes(weight, 0, 1)                                   # (D, K)

    inv_kwargs = dict(pipeline_mode=pl.Buffered(1)) if buffered_ok else {}

    cost = pl.CostEstimate(
        flops=int(4 * N * K * D + 2 * N * (K + D)),
        transcendentals=0,
        bytes_accessed=int(2 * N * D * x_item + 2 * K * D * w_item + K * 4 + N * 8),
    )

    q_flat, ids_tiles, loss_tiles = pl.pallas_call(
        _vq_kernel,
        out_shape=(
            jax.ShapeDtypeStruct((N, D), x.dtype),
            jax.ShapeDtypeStruct((num_tiles, 1, tn), jnp.int32),
            jax.ShapeDtypeStruct((num_tiles, 1, tn), jnp.float32),
        ),
        grid_spec=pltpu.PrefetchScalarGridSpec(
            num_scalar_prefetch=0,
            grid=(num_tiles,),
            in_specs=[
                pl.BlockSpec((tn, D), lambda i: (i, 0)),                  # x rows
                pl.BlockSpec((D, K), lambda i: (0, 0), **inv_kwargs),     # wT
                pl.BlockSpec((K, D), lambda i: (0, 0), **inv_kwargs),     # w
                pl.BlockSpec((1, K), lambda i: (0, 0), **inv_kwargs),     # ||w||^2
            ],
            out_specs=[
                pl.BlockSpec((tn, D), lambda i: (i, 0)),                  # quantized
                pl.BlockSpec((1, 1, tn), lambda i: (i, 0, 0)),            # ids (lane-dense)
                pl.BlockSpec((1, 1, tn), lambda i: (i, 0, 0)),            # loss (lane-dense)
            ],
        ),
        compiler_params=pltpu.CompilerParams(
            dimension_semantics=("parallel",),          # megacore-shards rows on v7x
            vmem_limit_bytes=vmem_limit,
        ),
        cost_estimate=cost,
    )(xf, wT, weight, w2)

    quantized = q_flat.reshape(*lead_shape, D)
    ids = ids_tiles.reshape(-1)[:N].reshape(lead_shape)
    loss = loss_tiles.reshape(-1)[:N].reshape(lead_shape)

    losses = {"commitment": loss}
    if use_codebook_loss:
        # identical forward value; detach() only changes gradients
        losses["codebook"] = loss

    if swap:
        quantized = jnp.swapaxes(quantized, axis, -1)

    return quantized, ids, losses


def vq_embedding_forward(x, weight, *, axis=-1, use_codebook_loss=True):
    """Pallas implementation of VQEmbedding.forward (forward values only)."""
    return _vq_forward_impl(
        x, weight, axis=axis, use_codebook_loss=use_codebook_loss,
        buffered_ok=_buffered_invariants_supported(),
        vmem_cap=_vmem_capacity_bytes())


# ---------------------------------------------------------------------------
# Reference + self-test
# ---------------------------------------------------------------------------
def _reference(x, weight):
    """Pure-JAX reference mirroring the PyTorch forward (channels-last)."""
    d = (jnp.sum(x ** 2, axis=-1, keepdims=True)
         - 2.0 * jnp.matmul(x, weight.T, precision=jax.lax.Precision.HIGHEST)
         + jnp.sum(weight ** 2, axis=-1))
    ids = jnp.argmin(d, axis=-1)
    q = weight[ids]
    loss = jnp.mean((q - x) ** 2, axis=-1)
    return q, ids, loss


if __name__ == "__main__":
    num_embeddings, embedding_dim = 32, 16
    key = jax.random.PRNGKey(0)
    kx, kw, kx2, kx3 = jax.random.split(key, 4)

    # deterministic codebook (stand-in for nn.Embedding's N(0,1) init)
    weight = jax.random.normal(kw, (num_embeddings, embedding_dim), jnp.float32)

    # case 1: batch=2, 16x16 spatial, channels-last (N = 512 rows)
    x = jax.random.normal(kx, (2, 16, 16, embedding_dim), jnp.float32)
    quantized, ids, losses = vq_embedding_forward(x, weight)
    jax.block_until_ready((quantized, ids, losses))

    q_ref, ids_ref, loss_ref = _reference(x, weight)
    assert quantized.shape == x.shape and ids.shape == x.shape[:-1]
    np.testing.assert_allclose(np.asarray(quantized), np.asarray(q_ref), rtol=1e-5, atol=1e-5)
    np.testing.assert_array_equal(np.asarray(ids), np.asarray(ids_ref))
    np.testing.assert_allclose(np.asarray(losses["commitment"]), np.asarray(loss_ref),
                               rtol=1e-5, atol=1e-5)
    np.testing.assert_allclose(np.asarray(losses["codebook"]), np.asarray(loss_ref),
                               rtol=1e-5, atol=1e-5)

    # case 2: ragged row count (N = 15) exercises the masked-last-block path
    x2 = jax.random.normal(kx2, (3, 5, embedding_dim), jnp.float32)
    q2, ids2, losses2 = vq_embedding_forward(x2, weight)
    jax.block_until_ready((q2, ids2, losses2))
    q2_ref, ids2_ref, loss2_ref = _reference(x2, weight)
    np.testing.assert_allclose(np.asarray(q2), np.asarray(q2_ref), rtol=1e-5, atol=1e-5)
    np.testing.assert_array_equal(np.asarray(ids2), np.asarray(ids2_ref))
    np.testing.assert_allclose(np.asarray(losses2["commitment"]), np.asarray(loss2_ref),
                               rtol=1e-5, atol=1e-5)

    # case 3: quantization axis not last (axis=1), exercises the swap path
    x3 = jax.random.normal(kx3, (2, embedding_dim, 6), jnp.float32)
    q3, ids3, losses3 = vq_embedding_forward(x3, weight, axis=1)
    jax.block_until_ready((q3, ids3, losses3))
    x3_last = jnp.swapaxes(x3, 1, -1)
    q3_ref, ids3_ref, loss3_ref = _reference(x3_last, weight)
    np.testing.assert_allclose(np.asarray(q3), np.asarray(jnp.swapaxes(q3_ref, 1, -1)),
                               rtol=1e-5, atol=1e-5)
    np.testing.assert_array_equal(np.asarray(ids3), np.asarray(ids3_ref))
    np.testing.assert_allclose(np.asarray(losses3["commitment"]), np.asarray(loss3_ref),
                               rtol=1e-5, atol=1e-5)

    print("KERNEL_OK")
</pallas_src>

<mosaic_0001>
module attributes {stable_mosaic.version = 11 : i64} {
  func.func @_probe_copy_kernel(%arg0: i32, %arg1: memref<8x128xf32, #tpu.memory_space<vmem>>, %arg2: memref<8x128xf32, #tpu.memory_space<vmem>>) attributes {dimension_semantics = [#tpu.dimension_semantics<arbitrary>], iteration_bounds = array<i64: 2>, scalar_prefetch = 0 : i64, scratch_operands = 0 : i64, tpu.core_type = #tpu.core_type<tc>, window_params = [{pipeline_mode = #tpu.pipeline_mode<synchronous>, transform_indices = @transform_0, window_bounds = array<i64: 8, 128>}, {pipeline_mode = #tpu.pipeline_mode<synchronous>, transform_indices = @transform_1, window_bounds = array<i64: 8, 128>}]} {
    %c0 = arith.constant 0 : index
    %c0_0 = arith.constant 0 : index
    %0 = vector.load %arg1[%c0, %c0_0] : memref<8x128xf32, #tpu.memory_space<vmem>>, vector<8x128xf32>
    %c0_1 = arith.constant 0 : index
    %c0_2 = arith.constant 0 : index
    %1 = vector.load %arg2[%c0_1, %c0_2] : memref<8x128xf32, #tpu.memory_space<vmem>>, vector<8x128xf32>
    tpu.vector_store %arg2[%c0_1, %c0_2], %0 {strides = array<i32>} : memref<8x128xf32, #tpu.memory_space<vmem>>, vector<8x128xf32>,
    return
  }
  func.func @transform_0(%arg0: i32) -> (i32, i32) {
    %c0_i32 = arith.constant 0 : i32
    %c0_i32_0 = arith.constant 0 : i32
    %c0_i32_1 = arith.constant 0 : i32
    return %c0_i32, %c0_i32_0 : i32, i32
  }
  func.func @transform_1(%arg0: i32) -> (i32, i32) {
    %c0_i32 = arith.constant 0 : i32
    %c0_i32_0 = arith.constant 0 : i32
    %c0_i32_1 = arith.constant 0 : i32
    return %c0_i32, %c0_i32_0 : i32, i32
  }
}

module attributes {stable_mosaic.version = 11 : i64} {
  func.func @_vq_kernel(%arg0: i32, %arg1: memref<512x16xf32, #tpu.memory_space<vmem>>, %arg2: memref<16x32xf32, #tpu.memory_space<vmem>>, %arg3: memref<32x16xf32, #tpu.memory_space<vmem>>, %arg4: memref<1x32xf32, #tpu.memory_space<vmem>>, %arg5: memref<512x16xf32, #tpu.memory_space<vmem>>, %arg6: memref<1x1x512xi32, #tpu.memory_space<vmem>>, %arg7: memref<1x1x512xf32, #tpu.memory_space<vmem>>) attributes {dimension_semantics = [#tpu.dimension_semantics<parallel>], iteration_bounds = array<i64: 1>, scalar_prefetch = 0 : i64, scratch_operands = 0 : i64, tpu.core_type = #tpu.core_type<tc>, window_params = [{transform_indices = @transform_0, window_bounds = array<i64: 512, 16>}, {pipeline_mode = #tpu.pipeline_mode<synchronous>, transform_indices = @transform_1, window_bounds = array<i64: 16, 32>}, {pipeline_mode = #tpu.pipeline_mode<synchronous>, transform_indices = @transform_2, window_bounds = array<i64: 32, 16>}, {pipeline_mode = #tpu.pipeline_mode<synchronous>, transform_indices = @transform_3, window_bounds = array<i64: 1, 32>}, {transform_indices = @transform_4, window_bounds = array<i64: 512, 16>}, {transform_indices = @transform_5, window_bounds = array<i64: 1, 1, 512>}, {transform_indices = @transform_6, window_bounds = array<i64: 1, 1, 512>}]} {
    %c0 = arith.constant 0 : index
    %c0_0 = arith.constant 0 : index
    %0 = vector.load %arg1[%c0, %c0_0] : memref<512x16xf32, #tpu.memory_space<vmem>>, vector<512x16xf32>
    %c0_1 = arith.constant 0 : index
    %c0_2 = arith.constant 0 : index
    %1 = vector.load %arg2[%c0_1, %c0_2] : memref<16x32xf32, #tpu.memory_space<vmem>>, vector<16x32xf32>
    %c0_3 = arith.constant 0 : index
    %c0_4 = arith.constant 0 : index
    %2 = vector.load %arg3[%c0_3, %c0_4] : memref<32x16xf32, #tpu.memory_space<vmem>>, vector<32x16xf32>
    %c0_5 = arith.constant 0 : index
    %c0_6 = arith.constant 0 : index
    %3 = vector.load %arg4[%c0_5, %c0_6] : memref<1x32xf32, #tpu.memory_space<vmem>>, vector<1x32xf32>
    %cst = arith.constant dense<0.000000e+00> : vector<512x32xf32>
    %4 = tpu.matmul %0, %1, %cst {dimension_numbers = #tpu.dot_dimension_numbers<[1], [0], [0], [1], [0, 0, 1, 1], [], []>} : vector<512x16xf32>, vector<16x32xf32>, vector<512x32xf32> -> vector<512x32xf32>
    %cst_7 = arith.constant 2.000000e+00 : f32
    %5 = vector.broadcast %cst_7 : f32 to vector<512x32xf32>
    %6 = arith.mulf %5, %4 : vector<512x32xf32>
    %7 = vector.broadcast %3 : vector<1x32xf32> to vector<512x32xf32>
    %8 = arith.subf %7, %6 : vector<512x32xf32>
    %9 = tpu.iota {dimensions = array<i32: 1>} : vector<512x32xi32>
    %cst_8 = arith.constant dense<0x7F800000> : vector<512xf32>
    %10 = vector.multi_reduction <minimumf>, %8, %cst_8 [1] : vector<512x32xf32> to vector<512xf32>
    %11 = vector.shape_cast %10 : vector<512xf32> to vector<512x1xf32>
    %12 = vector.broadcast %11 : vector<512x1xf32> to vector<512x32xf32>
    %13 = arith.cmpf ole, %8, %12 : vector<512x32xf32>
    %c32_i32 = arith.constant 32 : i32
    %14 = vector.broadcast %c32_i32 : i32 to vector<512x32xi32>
    %15 = arith.select %13, %9, %14 : vector<512x32xi1>, vector<512x32xi32>
    %cst_9 = arith.constant dense<2147483647> : vector<512xi32>
    %16 = vector.multi_reduction <minsi>, %15, %cst_9 [1] : vector<512x32xi32> to vector<512xi32>
    %17 = vector.shape_cast %16 : vector<512xi32> to vector<512x1xi32>
    %18 = vector.broadcast %17 : vector<512x1xi32> to vector<512x32xi32>
    %19 = arith.cmpi eq, %9, %18 : vector<512x32xi32>
    %20 = arith.extui %19 : vector<512x32xi1> to vector<512x32xi32>
    %21 = arith.sitofp %20 : vector<512x32xi32> to vector<512x32xf32>
    %cst_10 = arith.constant dense<0.000000e+00> : vector<512x16xf32>
    %22 = tpu.matmul %21, %2, %cst_10 {dimension_numbers = #tpu.dot_dimension_numbers<[1], [0], [0], [1], [0, 0, 1, 1], [], []>} : vector<512x32xf32>, vector<32x16xf32>, vector<512x16xf32> -> vector<512x16xf32>
    %23 = arith.subf %22, %0 : vector<512x16xf32>
    %24 = arith.mulf %23, %23 : vector<512x16xf32>
    %cst_11 = arith.constant 1.000000e+00 : f32
    %25 = vector.broadcast %cst_11 : f32 to vector<1x16xf32>
    %cst_12 = arith.constant dense<0.000000e+00> : vector<1x512xf32>
    %26 = tpu.matmul %25, %24, %cst_12 {dimension_numbers = #tpu.dot_dimension_numbers<[1], [1], [0], [0], [0, 0, 1, 0], [], []>} : vector<1x16xf32>, vector<512x16xf32>, vector<1x512xf32> -> vector<1x512xf32>
    %cst_13 = arith.constant 6.250000e-02 : f32
    %27 = vector.broadcast %cst_13 : f32 to vector<1x512xf32>
    %28 = arith.mulf %26, %27 : vector<1x512xf32>
    %29 = tpu.iota {dimensions = array<i32: 1>} : vector<1x32xi32>
    %30 = arith.sitofp %29 : vector<1x32xi32> to vector<1x32xf32>
    %31 = arith.extui %19 : vector<512x32xi1> to vector<512x32xi32>
    %32 = arith.sitofp %31 : vector<512x32xi32> to vector<512x32xf32>
    %cst_14 = arith.constant dense<0.000000e+00> : vector<1x512xf32>
    %33 = tpu.matmul %30, %32, %cst_14 {dimension_numbers = #tpu.dot_dimension_numbers<[1], [1], [0], [0], [0, 0, 1, 0], [], []>} : vector<1x32xf32>, vector<512x32xf32>, vector<1x512xf32> -> vector<1x512xf32>
    %c0_15 = arith.constant 0 : index
    %c0_16 = arith.constant 0 : index
    %34 = vector.load %arg5[%c0_15, %c0_16] : memref<512x16xf32, #tpu.memory_space<vmem>>, vector<512x16xf32>
    tpu.vector_store %arg5[%c0_15, %c0_16], %22 {strides = array<i32>} : memref<512x16xf32, #tpu.memory_space<vmem>>, vector<512x16xf32>,
    %35 = arith.fptosi %33 : vector<1x512xf32> to vector<1x512xi32>
    %c0_17 = arith.constant 0 : index
    %c0_18 = arith.constant 0 : index
    %c0_19 = arith.constant 0 : index
    %36 = vector.load %arg6[%c0_17, %c0_18, %c0_19] : memref<1x1x512xi32, #tpu.memory_space<vmem>>, vector<1x1x512xi32>
    %37 = vector.shape_cast %36 : vector<1x1x512xi32> to vector<1x512xi32>
    %38 = vector.shape_cast %35 : vector<1x512xi32> to vector<1x1x512xi32>
    tpu.vector_store %arg6[%c0_17, %c0_18, %c0_19], %38 {strides = array<i32>} : memref<1x1x512xi32, #tpu.memory_space<vmem>>, vector<1x1x512xi32>,
    %c0_20 = arith.constant 0 : index
    %c0_21 = arith.constant 0 : index
    %c0_22 = arith.constant 0 : index
    %39 = vector.load %arg7[%c0_20, %c0_21, %c0_22] : memref<1x1x512xf32, #tpu.memory_space<vmem>>, vector<1x1x512xf32>
    %40 = vector.shape_cast %39 : vector<1x1x512xf32> to vector<1x512xf32>
    %41 = vector.shape_cast %28 : vector<1x512xf32> to vector<1x1x512xf32>
    tpu.vector_store %arg7[%c0_20, %c0_21, %c0_22], %41 {strides = array<i32>} : memref<1x1x512xf32, #tpu.memory_space<vmem>>, vector<1x1x512xf32>,
    return
  }
  func.func @transform_0(%arg0: i32) -> (i32, i32) {
    %c0_i32 = arith.constant 0 : i32
    %c0_i32_0 = arith.constant 0 : i32
    return %arg0, %c0_i32 : i32, i32
  }
  func.func @transform_1(%arg0: i32) -> (i32, i32) {
    %c0_i32 = arith.constant 0 : i32
    %c0_i32_0 = arith.constant 0 : i32
    %c0_i32_1 = arith.constant 0 : i32
    return %c0_i32, %c0_i32_0 : i32, i32
  }
  func.func @transform_2(%arg0: i32) -> (i32, i32) {
    %c0_i32 = arith.constant 0 : i32
    %c0_i32_0 = arith.constant 0 : i32
    %c0_i32_1 = arith.constant 0 : i32
    return %c0_i32, %c0_i32_0 : i32, i32
  }
  func.func @transform_3(%arg0: i32) -> (i32, i32) {
    %c0_i32 = arith.constant 0 : i32
    %c0_i32_0 = arith.constant 0 : i32
    %c0_i32_1 = arith.constant 0 : i32
    return %c0_i32, %c0_i32_0 : i32, i32
  }
  func.func @transform_4(%arg0: i32) -> (i32, i32) {
    %c0_i32 = arith.constant 0 : i32
    %c0_i32_0 = arith.constant 0 : i32
    return %arg0, %c0_i32 : i32, i32
  }
  func.func @transform_5(%arg0: i32) -> (i32, i32, i32) {
    %c0_i32 = arith.constant 0 : i32
    %c0_i32_0 = arith.constant 0 : i32
    %c0_i32_1 = arith.constant 0 : i32
    return %arg0, %c0_i32, %c0_i32_0 : i32, i32, i32
  }
  func.func @transform_6(%arg0: i32) -> (i32, i32, i32) {
    %c0_i32 = arith.constant 0 : i32
    %c0_i32_0 = arith.constant 0 : i32
    %c0_i32_1 = arith.constant 0 : i32
    return %arg0, %c0_i32, %c0_i32_0 : i32, i32, i32
  }
}

</mosaic_0001>

<bundles_post_ra>
// kernel: tpu_custom_call.1
= control target key start
LH: loop header
LB: loop body
LE: loop exit
PB: predicated region body
PF: predicated region fallthrough
CT: control target
= control target key end

     0   :  { %6 = vsyncpa [#allocation3], 0  ;;  %s340_s0 = inlined_call_operand.hbm [shape: f32[8,128], index: 0, kind: input, shape index: {}]   ;;  %s341_s1 = inlined_call_operand.hbm [shape: f32[8,128], index: 1, kind: output, shape index: {}]  }
   0x1   :  { %7 = vsyncpa [#allocation4], 0  ;;  %s261_s6 = smov 0  }
   0x2 LB: > { %s144_s7 = sadd.s32 4294967295, %s247_s6   ;;  %p145_p0 = scmp.ge.s32.totalorder %s247_s6, 1  ;;  %s247_s6 = sphi %s261_s6, %s13_s6  }
   0x3   : > { %p60_p1 = scmp.lt.s32.totalorder %s247_s6, 3  ;;  %p275_p3 = scmp.eq.s32.totalorder %s144_s7, 0 }
   0x4   : > { %s249_s10 = smov [#allocation2]   ;;  %s179_s15 = scalar_lea.hbm %s340_s0, 128 }
   0x5   : > { %p269_p2 = pnand %p145_p0, %p60_p1  ;;  %s73_s11 = sshll.u32 %s249_s10, 4  ;;  %s74_s11 = int_to_ptr.vmem [resolvable:$true] %s73_s11 }
   0x6   : > { %s346_s9 = scalar_select %p275_p3, 1, 0 }
   0x7   : > { %s345_s8 = scalar_select %p269_p2, 1, 0 }
   0x8   : > { %p161_p4 = pneg %p269_p2  ;;  %p180_p6 = scmp.ne.s32.totalorder %s340_s0, %s179_s15 }
   0x9   : > { %p186_p10 = scmp.lt.u32.totalorder %s179_s15, %s340_s0 }
   0xa   : > { %p283_p5 = pnand %p275_p3, %p161_p4 }
   0xc   : > { %p181_p7 = pneg %p283_p5 }
   0xe   : > { %p182_p8 = pnand %p181_p7, %p180_p6 }
  0x10   : > { %p183_p9 = pneg %p182_p8 }
  0x12   : > { %p188_p11 = pnand %p186_p10, %p183_p9 }
  0x14   : > { %191 = shalt.err (!%p188_p11)
}
  0x15   : > { %s192_s20 = scalar_lea.vmem %s74_s11, 128  ;;  %p200_p1 = scmp.lt.s32.totalorder %s74_s11, %s74_s11 }
  0x16   : > { %p193_p12 = scmp.ne.s32.totalorder %s74_s11, %s192_s20  ;;  %p201_p4 = scmp.lt.s32.totalorder %s192_s20, %s192_s20 }
  0x18   : > { %p195_p13 = pnand %p193_p12, %p181_p7  ;;  %p202_p3 = por %p201_p4, %p200_p1 }
  0x1a   : > { %p196_p0 = pneg %p195_p13 }
  0x1c   : > { %p203_p2 = pnand %p202_p3, %p196_p0 }
  0x1e   : > { %206 = shalt.err (!%p203_p2)
}
  0x1f   : > { %164 = dma.hbm_to_vmem [thread:$0]  (!%p283_p5), %s340_s0, 128, %s74_s11, [#allocation3]  }
  0x20   : > { %p348_p6 = scmp.ne.s32.totalorder %s345_s8, 0 }
  0x21   : > { %p349_p8 = scmp.ne.s32.totalorder (!%p348_p6), %s346_s9, 0 }
  0x22   : > { %86 = sbr.rel (%p348_p6) target bundleno = 67 (0x43), region = 24 }
  0x29   : > { %238 = dma.done.wait (%p349_p8), [#allocation3], 128  }
  0x2a   : > { %240 = vsyncadd (%p349_p8), [#allocation3], 4294967168  ;;  %s250_s23 = smov [#allocation5]   ;;  %p311_p2 = scmp.eq.s32.totalorder %s144_s7, 1  ;;  %v96_v0 = vld [vmem:[#allocation2] sm:$0xff] }
  0x2b   : > { %s105_s24 = sshll.u32 %s250_s23, 4  ;;  %97 = vst [vmem:[#allocation5] sm:$0xff] %v96_v0  ;;  %s106_s24 = int_to_ptr.vmem [resolvable:$true] %s105_s24 }
  0x2c   : > { %s207_s26 = scalar_lea.vmem %s106_s24, 128  ;;  %p214_p9 = scmp.lt.s32.totalorder %s106_s24, %s106_s24 }
  0x2d   : > { %p208_p3 = scmp.ne.s32.totalorder %s106_s24, %s207_s26  ;;  %p215_p10 = scmp.lt.s32.totalorder %s207_s26, %s207_s26 }
  0x2f   : > { %p209_p5 = pnand %p208_p3, %p311_p2  ;;  %p216_p11 = por %p215_p10, %p214_p9 }
  0x31   : > { %p210_p7 = pneg %p209_p5 }
  0x33   : > { %p217_p12 = pnand %p216_p11, %p210_p7 }
  0x35   : > { %220 = shalt.err (!%p217_p12)
}
  0x36   : > { %s221_s29 = scalar_lea.hbm %s341_s1, 128 }
  0x37   : > { %p222_p13 = scmp.ne.s32.totalorder %s341_s1, %s221_s29  ;;  %p227_p4 = scmp.lt.u32.totalorder %s221_s29, %s341_s1 }
  0x39   : > { %p223_p0 = pnand %p222_p13, %p311_p2 }
  0x3b   : > { %p224_p1 = pneg %p223_p0 }
  0x3d   : > { %p229_p6 = pnand %p227_p4, %p224_p1 }
  0x3f   : > { %232 = shalt.err (!%p229_p6)
}
  0x40   : > { %158 = dma.vmem_to_hbm [thread:$0]  (%p311_p2), %s106_s24, 128, %s341_s1, [#allocation4]  }
  0x41   : > { %242 = dma.done.wait (%p311_p2), [#allocation4], 128  }
  0x42   : > { %244 = vsyncadd (%p311_p2), [#allocation4], 4294967168 }
  0x43 PF: > { %s13_s6 = sadd.s32 1, %s247_s6  }
  0x44   : > { %p10_p8 = scmp.ge.s32.totalorder %s13_s6, 4  }
  0x46   :  { %12 = sbr.rel (!%p10_p8) target bundleno = 2 (0x2), region = 53 }
  0x4d   :  { %118 = vsyncpa [#allocation3], 1 }
  0x4e   :  { %120 = vsyncpa [#allocation3 + $0x1], 1 }
  0x4f   :  { %121 = vsyncpa [#allocation4], 1 }
  0x50   :  { %123 = vsyncpa [#allocation4 + $0x1], 1 }

// kernel: _vq_forward_impl.1
= control target key start
LH: loop header
LB: loop body
LE: loop exit
PB: predicated region body
PF: predicated region fallthrough
CT: control target
= control target key end

     0   :  { %12 = vsyncpa [#allocation3], 0  ;;  %s7161_s0 = inlined_call_operand.hbm [shape: f32[512,16], index: 0, kind: input, shape index: {}]   ;;  %s7162_s1 = inlined_call_operand.vmem [shape: f32[16,32], index: 1, kind: input, shape index: {}]   ;;  %s7163_s2 = inlined_call_operand.vmem [shape: f32[32,16], index: 2, kind: input, shape index: {}]   ;;  %s7164_s3 = inlined_call_operand.vmem [shape: f32[1,32], index: 3, kind: input, shape index: {}]   ;;  %s7165_s4 = inlined_call_operand.hbm [shape: f32[512,16], index: 4, kind: output, shape index: {0}]   ;;  %s7166_s5 = inlined_call_operand.vmem [shape: s32[1,1,512], index: 5, kind: output, shape index: {1}]   ;;  %s7167_s6 = inlined_call_operand.vmem [shape: f32[1,1,512], index: 6, kind: output, shape index: {2}]  }
   0x1   :  { %13 = vsyncpa [#allocation4], 0  ;;  %s4767_s21 = smov [#allocation2]   ;;  %s4719_s25 = scalar_lea.hbm %s7161_s0, 8192 }
   0x2   :  { %s19_s22 = sshll.u32 %s4767_s21, 4  ;;  %p4720_p0 = scmp.ne.s32.totalorder %s7161_s0, %s4719_s25  ;;  %s20_s22 = int_to_ptr.vmem [resolvable:$true] %s19_s22 }
   0x3   :  { %p4723_p1 = scmp.lt.u32.totalorder %s4719_s25, %s7161_s0 }
   0x5   :  { %p4725_p2 = pnand %p4723_p1, %p4720_p0 }
   0x7   :  { %4728 = shalt.err (!%p4725_p2)
}
   0x8   :  { %s4729_s30 = scalar_lea.vmem %s20_s22, 8192  ;;  %p4734_p4 = scmp.lt.s32.totalorder %s20_s22, %s20_s22 }
   0x9   :  { %p4730_p3 = scmp.ne.s32.totalorder %s20_s22, %s4729_s30  ;;  %p4735_p5 = scmp.lt.s32.totalorder %s4729_s30, %s4729_s30 }
   0xb   :  { %p4736_p6 = por %p4735_p5, %p4734_p4 }
   0xd   :  { %p4737_p7 = pnand %p4736_p6, %p4730_p3 }
   0xf   :  { %4740 = shalt.err (!%p4737_p7)
}
  0x10   :  { %s4768_s7 = smov 128   ;;  %s4769_s8 = smov 8  }
  0x11   :  { %25 = dma.hbm_to_vmem [thread:$0]  %s7161_s0, 8192, %s20_s22, [#allocation3], %s4768_s7, %s4768_s7, %s4769_s8  }
  0x12   :  { %4763 = dma.done.wait [#allocation3], 8192  }
  0x13   :  { %4764 = vsyncadd [#allocation3], 4294959104  ;;  %vm106_vm0 = vcmask 130048   ;;  %v99_v0 = vld [vmem:[%s7162_s1] sm:$0xff]  ;;  %v100_v1 = vld [vmem:[%s7162_s1 + $0x8] sm:$0xff]  ;;  %vm820_vm1 = vcmask 261120  }
  0x14   :  { %v35_v2 = vld [vmem:[#allocation2] sm:$0xff]  ;;  %v4436_v3 = vpack.c.bf16 %v100_v1, %v99_v0  ;;  %v36_v4 = vld [vmem:[#allocation2 + $0x8] sm:$0xff]  ;;  %v37_v5 = vld [vmem:[#allocation2 + $0x10] sm:$0xff] }
  0x15   :  { %4236 = vmatprep.mubr.msk.f32.mxu0 %vm106_vm0, %v35_v2  ;;  %v38_v6 = vld [vmem:[#allocation2 + $0x18] sm:$0xff]  ;;  %v39_v7 = vld [vmem:[#allocation2 + $0x20] sm:$0xff]  ;;  %v40_v8 = vld [vmem:[#allocation2 + $0x28] sm:$0xff] }
  0x16   :  { %4437 = vmatprep.subr.bf16.mxu0 %v4436_v3  ;;  %v41_v9 = vld [vmem:[#allocation2 + $0x30] sm:$0xff]  ;;  %v42_v10 = vld [vmem:[#allocation2 + $0x38] sm:$0xff]  ;;  %v43_v11 = vld [vmem:[#allocation2 + $0x40] sm:$0xff] }
  0x17   :  { %4439 = vmatpush3.bf16.msra.mxu0 %v4436_v3  ;;  %v44_v12 = vld [vmem:[#allocation2 + $0x48] sm:$0xff]  ;;  %v45_v13 = vld [vmem:[#allocation2 + $0x50] sm:$0xff]  ;;  %v46_v14 = vld [vmem:[#allocation2 + $0x58] sm:$0xff] }
  0x18   :  { %v47_v15 = vld [vmem:[#allocation2 + $0x60] sm:$0xff]  ;;  %v48_v16 = vld [vmem:[#allocation2 + $0x68] sm:$0xff]  ;;  %v49_v17 = vld [vmem:[#allocation2 + $0x70] sm:$0xff] }
  0x19   :  { %v50_v18 = vld [vmem:[#allocation2 + $0x78] sm:$0xff]  ;;  %v51_v19 = vld [vmem:[#allocation2 + $0x80] sm:$0xff]  ;;  %v52_v20 = vld [vmem:[#allocation2 + $0x88] sm:$0xff] }
  0x1a   :  { %4237 = vmatmul.mubr.msk.f32.vlgmr.msra.gmra.mrb[0].mxu0 %vm106_vm0, %v36_v4  ;;  %v53_v21 = vld [vmem:[#allocation2 + $0x90] sm:$0xff]  ;;  %v54_v22 = vld [vmem:[#allocation2 + $0x98] sm:$0xff]  ;;  %v55_v23 = vld [vmem:[#allocation2 + $0xa0] sm:$0xff] }
  0x1b   :  { %4239 = vmatprep.mubr.msk.f32.mxu0 %vm106_vm0, %v37_v5  ;;  %v56_v24 = vld [vmem:[#allocation2 + $0xa8] sm:$0xff]  ;;  %v57_v25 = vld [vmem:[#allocation2 + $0xb0] sm:$0xff]  ;;  %v58_v26 = vld [vmem:[#allocation2 + $0xb8] sm:$0xff] }
  0x1c   :  { %v59_v27 = vld [vmem:[#allocation2 + $0xc0] sm:$0xff]  ;;  %v60_v28 = vld [vmem:[#allocation2 + $0xc8] sm:$0xff]  ;;  %v61_v29 = vld [vmem:[#allocation2 + $0xd0] sm:$0xff] }
  0x1d   :  { %v62_v30 = vld [vmem:[#allocation2 + $0xd8] sm:$0xff]  ;;  %v63_v31 = vld [vmem:[#allocation2 + $0xe0] sm:$0xff]  ;;  %v64_v32 = vld [vmem:[#allocation2 + $0xe8] sm:$0xff] }
  0x1e   :  { %4240 = vmatmul.mubr.msk.f32.gmra.mrb[2].mxu0 %vm106_vm0, %v38_v6  ;;  %v65_v33 = vld [vmem:[#allocation2 + $0xf0] sm:$0xff]  ;;  %v66_v34 = vld [vmem:[#allocation2 + $0xf8] sm:$0xff]  ;;  %v67_v35 = vld [vmem:[#allocation2 + $0x100] sm:$0xff] }
  0x1f   :  { %4242 = vmatprep.mubr.msk.f32.mxu0 %vm106_vm0, %v39_v7  ;;  %v68_v36 = vld [vmem:[#allocation2 + $0x108] sm:$0xff]  ;;  %v69_v37 = vld [vmem:[#allocation2 + $0x110] sm:$0xff]  ;;  %v70_v38 = vld [vmem:[#allocation2 + $0x118] sm:$0xff] }
  0x20   :  { %v71_v39 = vld [vmem:[#allocation2 + $0x120] sm:$0xff]  ;;  %v72_v40 = vld [vmem:[#allocation2 + $0x128] sm:$0xff]  ;;  %v73_v41 = vld [vmem:[#allocation2 + $0x130] sm:$0xff] }
  0x21   :  { %v74_v42 = vld [vmem:[#allocation2 + $0x138] sm:$0xff]  ;;  %v75_v43 = vld [vmem:[#allocation2 + $0x140] sm:$0xff]  ;;  %v76_v44 = vld [vmem:[#allocation2 + $0x148] sm:$0xff] }
  0x22   :  { %4243 = vmatmul.mubr.msk.f32.gmra.mrb[4].mxu0 %vm106_vm0, %v40_v8  ;;  %v77_v45 = vld [vmem:[#allocation2 + $0x150] sm:$0xff]  ;;  %v78_v46 = vld [vmem:[#allocation2 + $0x158] sm:$0xff]  ;;  %v79_v47 = vld [vmem:[#allocation2 + $0x160] sm:$0xff] }
  0x23   :  { %4245 = vmatprep.mubr.msk.f32.mxu0 %vm106_vm0, %v41_v9  ;;  %v80_v48 = vld [vmem:[#allocation2 + $0x168] sm:$0xff]  ;;  %v81_v49 = vld [vmem:[#allocation2 + $0x170] sm:$0xff]  ;;  %v82_v50 = vld [vmem:[#allocation2 + $0x178] sm:$0xff] }
  0x24   :  { %v83_v51 = vld [vmem:[#allocation2 + $0x180] sm:$0xff]  ;;  %v84_v52 = vld [vmem:[#allocation2 + $0x188] sm:$0xff]  ;;  %v85_v53 = vld [vmem:[#allocation2 + $0x190] sm:$0xff] }
  0x25   :  { %v86_v54 = vld [vmem:[#allocation2 + $0x198] sm:$0xff]  ;;  %v87_v55 = vld [vmem:[#allocation2 + $0x1a0] sm:$0xff]  ;;  %v88_v56 = vld [vmem:[#allocation2 + $0x1a8] sm:$0xff] }
  0x26   :  { %4246 = vmatmul.mubr.msk.f32.gmra.mrb[6].mxu0 %vm106_vm0, %v42_v10  ;;  %v89_v57 = vld [vmem:[#allocation2 + $0x1b0] sm:$0xff]  ;;  %v90_v58 = vld [vmem:[#allocation2 + $0x1b8] sm:$0xff]  ;;  %v91_v59 = vld [vmem:[#allocation2 + $0x1c0] sm:$0xff] }
  0x27   :  { %4248 = vmatprep.mubr.msk.f32.mxu0 %vm106_vm0, %v43_v11  ;;  %v92_v60 = vld [vmem:[#allocation2 + $0x1c8] sm:$0xff]  ;;  %v93_v61 = vld [vmem:[#allocation2 + $0x1d0] sm:$0xff]  ;;  %v94_v62 = vld [vmem:[#allocation2 + $0x1d8] sm:$0xff] }
  0x28   :  { %v95_v63 = vld [vmem:[#allocation2 + $0x1e0] sm:$0xff]  ;;  %v96_v0 = vld [vmem:[#allocation2 + $0x1e8] sm:$0xff]  ;;  %v97_v1 = vld [vmem:[#allocation2 + $0x1f0] sm:$0xff] }
  0x29   :  { %v98_v2 = vld [vmem:[#allocation2 + $0x1f8] sm:$0xff]  ;;  %v4897_v4 = vld [vmem:[%s7164_s3] ss:$0 sm:$0xff] }
  0x2a   :  { %4249 = vmatmul.mubr.msk.f32.gmra.mrb[8].mxu0 %vm106_vm0, %v44_v12 }
  0x2b   :  { %4251 = vmatprep.mubr.msk.f32.mxu0 %vm106_vm0, %v45_v13 }
  0x2e   :  { %4252 = vmatmul.mubr.msk.f32.gmra.mrb[10].mxu0 %vm106_vm0, %v46_v14 }
  0x2f   :  { %4254 = vmatprep.mubr.msk.f32.mxu0 %vm106_vm0, %v47_v15 }
  0x32   :  { %4255 = vmatmul.mubr.msk.f32.gmra.mrb[12].mxu0 %vm106_vm0, %v48_v16 }
  0x33   :  { %4257 = vmatprep.mubr.msk.f32.mxu0 %vm106_vm0, %v49_v17 }
  0x36   :  { %4258 = vmatmul.mubr.msk.f32.gmra.mrb[14].mxu0 %vm106_vm0, %v50_v18 }
  0x37   :  { %4260 = vmatprep.mubr.msk.f32.mxu0 %vm106_vm0, %v51_v19 }
  0x3a   :  { %4261 = vmatmul.mubr.msk.f32.gmra.mrb[16].mxu0 %vm106_vm0, %v52_v20 }
  0x3b   :  { %4263 = vmatprep.mubr.msk.f32.mxu0 %vm106_vm0, %v53_v21 }
  0x3e   :  { %4264 = vmatmul.mubr.msk.f32.gmra.mrb[18].mxu0 %vm106_vm0, %v54_v22 }
  0x3f   :  { %4266 = vmatprep.mubr.msk.f32.mxu0 %vm106_vm0, %v55_v23 }
  0x42   :  { %4267 = vmatmul.mubr.msk.f32.gmra.mrb[20].mxu0 %vm106_vm0, %v56_v24 }
  0x43   :  { %4269 = vmatprep.mubr.msk.f32.mxu0 %vm106_vm0, %v57_v25 }
  0x46   :  { %4270 = vmatmul.mubr.msk.f32.gmra.mrb[22].mxu0 %vm106_vm0, %v58_v26 }
  0x47   :  { %4272 = vmatprep.mubr.msk.f32.mxu0 %vm106_vm0, %v59_v27 }
  0x4a   :  { %4273 = vmatmul.mubr.msk.f32.gmra.mrb[24].mxu0 %vm106_vm0, %v60_v28 }
  0x4b   :  { %4275 = vmatprep.mubr.msk.f32.mxu0 %vm106_vm0, %v61_v29 }
  0x4e   :  { %4276 = vmatmul.mubr.msk.f32.gmra.mrb[26].mxu0 %vm106_vm0, %v62_v30 }
  0x4f   :  { %4278 = vmatprep.mubr.msk.f32.mxu0 %vm106_vm0, %v63_v31 }
  0x52   :  { %4279 = vmatmul.mubr.msk.f32.gmra.mrb[28].mxu0 %vm106_vm0, %v64_v32 }
  0x53   :  { %4281 = vmatprep.mubr.msk.f32.mxu0 %vm106_vm0, %v65_v33 }
  0x56   :  { %4282 = vmatmul.mubr.msk.f32.gmra.mrb[30].mxu0 %vm106_vm0, %v66_v34 }
  0x57   :  { %4284 = vmatprep.mubr.msk.f32.mxu0 %vm106_vm0, %v67_v35 }
  0x5a   :  { %4285 = vmatmul.mubr.msk.f32.gmra.mrb[32].mxu0 %vm106_vm0, %v68_v36 }
  0x5b   :  { %4287 = vmatprep.mubr.msk.f32.mxu0 %vm106_vm0, %v69_v37 }
  0x5e   :  { %4288 = vmatmul.mubr.msk.f32.gmra.mrb[34].mxu0 %vm106_vm0, %v70_v38 }
  0x5f   :  { %4290 = vmatprep.mubr.msk.f32.mxu0 %vm106_vm0, %v71_v39 }
  0x62   :  { %4291 = vmatmul.mubr.msk.f32.gmra.mrb[36].mxu0 %vm106_vm0, %v72_v40 }
  0x63   :  { %4293 = vmatprep.mubr.msk.f32.mxu0 %vm106_vm0, %v73_v41 }
  0x66   :  { %4294 = vmatmul.mubr.msk.f32.gmra.mrb[38].mxu0 %vm106_vm0, %v74_v42 }
  0x67   :  { %4296 = vmatprep.mubr.msk.f32.mxu0 %vm106_vm0, %v75_v43 }
  0x6a   :  { %4297 = vmatmul.mubr.msk.f32.gmra.mrb[40].mxu0 %vm106_vm0, %v76_v44 }
  0x6b   :  { %4299 = vmatprep.mubr.msk.f32.mxu0 %vm106_vm0, %v77_v45 }
  0x6e   :  { %4300 = vmatmul.mubr.msk.f32.gmra.mrb[42].mxu0 %vm106_vm0, %v78_v46 }
  0x6f   :  { %4302 = vmatprep.mubr.msk.f32.mxu0 %vm106_vm0, %v79_v47 }
  0x72   :  { %4303 = vmatmul.mubr.msk.f32.gmra.mrb[44].mxu0 %vm106_vm0, %v80_v48 }
  0x73   :  { %4305 = vmatprep.mubr.msk.f32.mxu0 %vm106_vm0, %v81_v49 }
  0x76   :  { %4306 = vmatmul.mubr.msk.f32.gmra.mrb[46].mxu0 %vm106_vm0, %v82_v50 }
  0x77   :  { %4308 = vmatprep.mubr.msk.f32.mxu0 %vm106_vm0, %v83_v51 }
  0x7a   :  { %4309 = vmatmul.mubr.msk.f32.gmra.mrb[48].mxu0 %vm106_vm0, %v84_v52 }
  0x7b   :  { %4311 = vmatprep.mubr.msk.f32.mxu0 %vm106_vm0, %v85_v53 }
  0x7e   :  { %4312 = vmatmul.mubr.msk.f32.gmra.mrb[50].mxu0 %vm106_vm0, %v86_v54 }
  0x7f   :  { %4314 = vmatprep.mubr.msk.f32.mxu0 %vm106_vm0, %v87_v55 }
  0x82   :  { %4315 = vmatmul.mubr.msk.f32.gmra.mrb[52].mxu0 %vm106_vm0, %v88_v56 }
  0x83   :  { %4317 = vmatprep.mubr.msk.f32.mxu0 %vm106_vm0, %v89_v57 }
  0x86   :  { %4318 = vmatmul.mubr.msk.f32.gmra.mrb[54].mxu0 %vm106_vm0, %v90_v58 }
  0x87   :  { %4320 = vmatprep.mubr.msk.f32.mxu0 %vm106_vm0, %v91_v59 }
  0x8a   :  { %4321 = vmatmul.mubr.msk.f32.gmra.mrb[56].mxu0 %vm106_vm0, %v92_v60 }
  0x8b   :  { %4323 = vmatprep.mubr.msk.f32.mxu0 %vm106_vm0, %v93_v61 }
  0x8e   :  { %4324 = vmatmul.mubr.msk.f32.gmra.mrb[58].mxu0 %vm106_vm0, %v94_v62 }
  0x8f   :  { %4326 = vmatprep.mubr.msk.f32.mxu0 %vm106_vm0, %v95_v63 }
  0x92   :  { %4327 = vmatmul.mubr.msk.f32.gmra.mrb[60].mxu0 %vm106_vm0, %v96_v0 }
  0x93   :  { %4329 = vmatprep.mubr.msk.f32.mxu0 %vm106_vm0, %v97_v1 }
  0x96   :  { %4330 = vmatmul.mubr.msk.f32.gmra.mrb[62].mxu0 %vm106_vm0, %v98_v2 }
  0xed   :  { %v4238_v3 = vpop.f32.mrb[0].mxu0 }
  0xee   :  { %v685_v5 = vmul.f32 2.0, %v4238_v3  ;;  %v365_v6 = vpop.f32.mrb[1].mxu0 }
  0xef   :  { %v684_v7 = vmul.f32 2.0, %v365_v6 }
  0xf0   :  { %v4900_v8 = vsub.f32 %v4897_v4, %v685_v5 }
  0xf1   :  { %v4241_v9 = vpop.f32.mrb[2].mxu0  ;;  %v4905_v13 = vsub.f32 %v4897_v4, %v684_v7 }
  0xf2   :  { %v687_v10 = vmul.f32 2.0, %v4241_v9  ;;  %v824_v11 = vsel %vm820_vm1, %v4900_v8, inf  ;;  %v375_v12 = vpop.f32.mrb[3].mxu0 }
  0xf3   :  { %825 = vmin.xlane.f32.xlu0 %v824_v11  ;;  %v686_v14 = vmul.f32 2.0, %v375_v12  ;;  %v821_v20 = vsel %vm820_vm1, %v4905_v13, inf }
  0xf4   :  { %v4908_v15 = vsub.f32 %v4897_v4, %v687_v10 }
  0xf5   :  { %v4244_v16 = vpop.f32.mrb[4].mxu0  ;;  %v4911_v17 = vsub.f32 %v4897_v4, %v686_v14 }
  0xf6   :  { %v689_v18 = vmul.f32 2.0, %v4244_v16  ;;  %v385_v19 = vpop.f32.mrb[5].mxu0  ;;  %v830_v21 = vsel %vm820_vm1, %v4908_v15, inf }
  0xf7   :  { %v688_v22 = vmul.f32 2.0, %v385_v19  ;;  %822 = vmin.xlane.f32.xlu0 %v821_v20  ;;  %831 = vmin.xlane.f32.xlu1 %v830_v21  ;;  %v827_v23 = vsel %vm820_vm1, %v4911_v17, inf }
  0xf8   :  { %v4920_v24 = vsub.f32 %v4897_v4, %v689_v18 }
  0xf9   :  { %v4247_v25 = vpop.f32.mrb[6].mxu0  ;;  %v4923_v26 = vsub.f32 %v4897_v4, %v688_v22 }
  0xfa   :  { %v691_v27 = vmul.f32 2.0, %v4247_v25  ;;  %v395_v28 = vpop.f32.mrb[7].mxu0  ;;  %v836_v31 = vsel %vm820_vm1, %v4920_v24, inf }
  0xfb   :  { %v690_v29 = vmul.f32 2.0, %v395_v28  ;;  %828 = vmin.xlane.f32.xlu1 %v827_v23  ;;  %v833_v30 = vsel %vm820_vm1, %v4923_v26, inf }
  0xfc   :  { %834 = vmin.xlane.f32.xlu0 %v833_v30  ;;  %v4930_v32 = vsub.f32 %v4897_v4, %v691_v27 }
  0xfd   :  { %v4250_v33 = vpop.f32.mrb[8].mxu0  ;;  %v4933_v34 = vsub.f32 %v4897_v4, %v690_v29 }
  0xfe   :  { %v693_v35 = vmul.f32 2.0, %v4250_v33  ;;  %v405_v36 = vpop.f32.mrb[9].mxu0  ;;  %v842_v39 = vsel %vm820_vm1, %v4930_v32, inf }
  0xff   :  { %v692_v37 = vmul.f32 2.0, %v405_v36  ;;  %837 = vmin.xlane.f32.xlu1 %v836_v31  ;;  %v839_v38 = vsel %vm820_vm1, %v4933_v34, inf }
 0x100   :  { %840 = vmin.xlane.f32.xlu0 %v839_v38  ;;  %v4940_v40 = vsub.f32 %v4897_v4, %v693_v35 }
 0x101   :  { %v4253_v41 = vpop.f32.mrb[10].mxu0  ;;  %v4943_v42 = vsub.f32 %v4897_v4, %v692_v37 }
 0x102   :  { %v695_v43 = vmul.f32 2.0, %v4253_v41  ;;  %v415_v44 = vpop.f32.mrb[11].mxu0  ;;  %v848_v47 = vsel %vm820_vm1, %v4940_v40, inf }
 0x103   :  { %v694_v45 = vmul.f32 2.0, %v415_v44  ;;  %843 = vmin.xlane.f32.xlu1 %v842_v39  ;;  %v845_v46 = vsel %vm820_vm1, %v4943_v42, inf }
 0x104   :  { %846 = vmin.xlane.f32.xlu0 %v845_v46  ;;  %v4950_v48 = vsub.f32 %v4897_v4, %v695_v43 }
 0x105   :  { %v4256_v49 = vpop.f32.mrb[12].mxu0  ;;  %v4953_v50 = vsub.f32 %v4897_v4, %v694_v45 }
 0x106   :  { %v697_v51 = vmul.f32 2.0, %v4256_v49  ;;  %v425_v52 = vpop.f32.mrb[13].mxu0  ;;  %v854_v55 = vsel %vm820_vm1, %v4950_v48, inf }
 0x107   :  { %v696_v53 = vmul.f32 2.0, %v425_v52  ;;  %849 = vmin.xlane.f32.xlu1 %v848_v47  ;;  %v851_v54 = vsel %vm820_vm1, %v4953_v50, inf }
 0x108   :  { %852 = vmin.xlane.f32.xlu0 %v851_v54  ;;  %v4960_v56 = vsub.f32 %v4897_v4, %v697_v51 }
 0x109   :  { %v4259_v57 = vpop.f32.mrb[14].mxu0  ;;  %v4963_v58 = vsub.f32 %v4897_v4, %v696_v53 }
 0x10a   :  { %v699_v59 = vmul.f32 2.0, %v4259_v57  ;;  %v435_v60 = vpop.f32.mrb[15].mxu0  ;;  %v860_v63 = vsel %vm820_vm1, %v4960_v56, inf }
 0x10b   :  { %v698_v61 = vmul.f32 2.0, %v435_v60  ;;  %855 = vmin.xlane.f32.xlu1 %v854_v55  ;;  %v857_v62 = vsel %vm820_vm1, %v4963_v58, inf }
 0x10c   :  { %858 = vmin.xlane.f32.xlu0 %v857_v62  ;;  %v4970_v0 = vsub.f32 %v4897_v4, %v699_v59 }
 0x10d   :  { %v4262_v1 = vpop.f32.mrb[16].mxu0  ;;  %v4973_v2 = vsub.f32 %v4897_v4, %v698_v61 }
 0x10e   :  { %v701_v3 = vmul.f32 2.0, %v4262_v1  ;;  %v445_v5 = vpop.f32.mrb[17].mxu0  ;;  %v866_v9 = vsel %vm820_vm1, %v4970_v0, inf }
 0x10f   :  { %v700_v6 = vmul.f32 2.0, %v445_v5  ;;  %861 = vmin.xlane.f32.xlu1 %v860_v63  ;;  %v863_v7 = vsel %vm820_vm1, %v4973_v2, inf }
 0x110   :  { %864 = vmin.xlane.f32.xlu0 %v863_v7  ;;  %v4980_v10 = vsub.f32 %v4897_v4, %v701_v3 }
 0x111   :  { %v4265_v11 = vpop.f32.mrb[18].mxu0  ;;  %v4983_v12 = vsub.f32 %v4897_v4, %v700_v6 }
 0x112   :  { %v703_v14 = vmul.f32 2.0, %v4265_v11  ;;  %v455_v16 = vpop.f32.mrb[19].mxu0  ;;  %v872_v20 = vsel %vm820_vm1, %v4980_v10, inf }
 0x113   :  { %v702_v18 = vmul.f32 2.0, %v455_v16  ;;  %867 = vmin.xlane.f32.xlu1 %v866_v9  ;;  %v869_v19 = vsel %vm820_vm1, %v4983_v12, inf }
 0x114   :  { %870 = vmin.xlane.f32.xlu0 %v869_v19  ;;  %v4990_v21 = vsub.f32 %v4897_v4, %v703_v14 }
 0x115   :  { %v4268_v22 = vpop.f32.mrb[20].mxu0  ;;  %v4993_v23 = vsub.f32 %v4897_v4, %v702_v18 }
 0x116   :  { %v705_v25 = vmul.f32 2.0, %v4268_v22  ;;  %v465_v27 = vpop.f32.mrb[21].mxu0  ;;  %v878_v30 = vsel %vm820_vm1, %v4990_v21, inf }
 0x117   :  { %v704_v28 = vmul.f32 2.0, %v465_v27  ;;  %873 = vmin.xlane.f32.xlu1 %v872_v20  ;;  %v875_v29 = vsel %vm820_vm1, %v4993_v23, inf }
 0x118   :  { %876 = vmin.xlane.f32.xlu0 %v875_v29  ;;  %v5000_v31 = vsub.f32 %v4897_v4, %v705_v25 }
 0x119   :  { %v4271_v33 = vpop.f32.mrb[22].mxu0  ;;  %v5003_v35 = vsub.f32 %v4897_v4, %v704_v28 }
 0x11a   :  { %v707_v36 = vmul.f32 2.0, %v4271_v33  ;;  %v475_v37 = vpop.f32.mrb[23].mxu0  ;;  %v884_v41 = vsel %vm820_vm1, %v5000_v31, inf }
 0x11b   :  { %v706_v38 = vmul.f32 2.0, %v475_v37  ;;  %879 = vmin.xlane.f32.xlu1 %v878_v30  ;;  %v881_v39 = vsel %vm820_vm1, %v5003_v35, inf }
 0x11c   :  { %882 = vmin.xlane.f32.xlu0 %v881_v39  ;;  %v5010_v43 = vsub.f32 %v4897_v4, %v707_v36 }
 0x11d   :  { %v4274_v44 = vpop.f32.mrb[24].mxu0  ;;  %v5013_v45 = vsub.f32 %v4897_v4, %v706_v38 }
 0x11e   :  { %v709_v46 = vmul.f32 2.0, %v4274_v44  ;;  %v485_v47 = vpop.f32.mrb[25].mxu0  ;;  %v890_v52 = vsel %vm820_vm1, %v5010_v43, inf }
 0x11f   :  { %v708_v49 = vmul.f32 2.0, %v485_v47  ;;  %885 = vmin.xlane.f32.xlu1 %v884_v41  ;;  %v887_v51 = vsel %vm820_vm1, %v5013_v45, inf }
 0x120   :  { %888 = vmin.xlane.f32.xlu0 %v887_v51  ;;  %v5020_v53 = vsub.f32 %v4897_v4, %v709_v46 }
 0x121   :  { %v4277_v54 = vpop.f32.mrb[26].mxu0  ;;  %v5023_v55 = vsub.f32 %v4897_v4, %v708_v49 }
 0x122   :  { %v711_v57 = vmul.f32 2.0, %v4277_v54  ;;  %v495_v59 = vpop.f32.mrb[27].mxu0  ;;  %v896_v62 = vsel %vm820_vm1, %v5020_v53, inf }
 0x123   :  { %v710_v60 = vmul.f32 2.0, %v495_v59  ;;  %891 = vmin.xlane.f32.xlu1 %v890_v52  ;;  %v893_v61 = vsel %vm820_vm1, %v5023_v55, inf }
 0x124   :  { %894 = vmin.xlane.f32.xlu0 %v893_v61  ;;  %v5030_v63 = vsub.f32 %v4897_v4, %v711_v57 }
 0x125   :  { %v4280_v1 = vpop.f32.mrb[28].mxu0  ;;  %v5033_v3 = vsub.f32 %v4897_v4, %v710_v60 }
 0x126   :  { %v713_v5 = vmul.f32 2.0, %v4280_v1  ;;  %v505_v6 = vpop.f32.mrb[29].mxu0  ;;  %v902_v11 = vsel %vm820_vm1, %v5030_v63, inf }
 0x127   :  { %v712_v7 = vmul.f32 2.0, %v505_v6  ;;  %897 = vmin.xlane.f32.xlu1 %v896_v62  ;;  %v899_v9 = vsel %vm820_vm1, %v5033_v3, inf }
 0x128   :  { %900 = vmin.xlane.f32.xlu0 %v899_v9  ;;  %v5040_v14 = vsub.f32 %v4897_v4, %v713_v5 }
 0x129   :  { %v4283_v16 = vpop.f32.mrb[30].mxu0  ;;  %v5043_v18 = vsub.f32 %v4897_v4, %v712_v7 }
 0x12a   :  { %v715_v19 = vmul.f32 2.0, %v4283_v16  ;;  %v515_v20 = vpop.f32.mrb[31].mxu0  ;;  %v908_v27 = vsel %vm820_vm1, %v5040_v14, inf }
 0x12b   :  { %v714_v22 = vmul.f32 2.0, %v515_v20  ;;  %903 = vmin.xlane.f32.xlu1 %v902_v11  ;;  %v905_v25 = vsel %vm820_vm1, %v5043_v18, inf }
 0x12c   :  { %906 = vmin.xlane.f32.xlu0 %v905_v25  ;;  %v5050_v28 = vsub.f32 %v4897_v4, %v715_v19 }
 0x12d   :  { %v4286_v29 = vpop.f32.mrb[32].mxu0  ;;  %v5053_v30 = vsub.f32 %v4897_v4, %v714_v22 }
 0x12e   :  { %v717_v33 = vmul.f32 2.0, %v4286_v29  ;;  %v525_v36 = vpop.f32.mrb[33].mxu0  ;;  %v914_v39 = vsel %vm820_vm1, %v5050_v28, inf }
 0x12f   :  { %v716_v37 = vmul.f32 2.0, %v525_v36  ;;  %909 = vmin.xlane.f32.xlu1 %v908_v27  ;;  %v911_v38 = vsel %vm820_vm1, %v5053_v30, inf }
 0x130   :  { %912 = vmin.xlane.f32.xlu0 %v911_v38  ;;  %v5060_v41 = vsub.f32 %v4897_v4, %v717_v33 }
 0x131   :  { %v4289_v44 = vpop.f32.mrb[34].mxu0  ;;  %v5063_v46 = vsub.f32 %v4897_v4, %v716_v37 }
 0x132   :  { %v719_v47 = vmul.f32 2.0, %v4289_v44  ;;  %v535_v49 = vpop.f32.mrb[35].mxu0  ;;  %v920_v54 = vsel %vm820_vm1, %v5060_v41, inf }
 0x133   :  { %v718_v51 = vmul.f32 2.0, %v535_v49  ;;  %915 = vmin.xlane.f32.xlu1 %v914_v39  ;;  %v917_v52 = vsel %vm820_vm1, %v5063_v46, inf }
 0x134   :  { %918 = vmin.xlane.f32.xlu0 %v917_v52  ;;  %v5070_v57 = vsub.f32 %v4897_v4, %v719_v47 }
 0x135   :  { %v4292_v59 = vpop.f32.mrb[36].mxu0  ;;  %v5073_v60 = vsub.f32 %v4897_v4, %v718_v51 }
 0x136   :  { %v721_v61 = vmul.f32 2.0, %v4292_v59  ;;  %v545_v62 = vpop.f32.mrb[37].mxu0  ;;  %v926_v6 = vsel %vm820_vm1, %v5070_v57, inf }
 0x137   :  { %v720_v1 = vmul.f32 2.0, %v545_v62  ;;  %921 = vmin.xlane.f32.xlu1 %v920_v54  ;;  %v923_v5 = vsel %vm820_vm1, %v5073_v60, inf }
 0x138   :  { %924 = vmin.xlane.f32.xlu0 %v923_v5  ;;  %v5080_v7 = vsub.f32 %v4897_v4, %v721_v61 }
 0x139   :  { %v4295_v9 = vpop.f32.mrb[38].mxu0  ;;  %v5083_v11 = vsub.f32 %v4897_v4, %v720_v1 }
 0x13a   :  { %7325 = vst [vmem:[#allocation8_spill] sm:$0xff] %v5080_v7  ;;  %v723_v16 = vmul.f32 2.0, %v4295_v9  ;;  %v555_v19 = vpop.f32.mrb[39].mxu0  ;;  %v932_v25 = vsel %vm820_vm1, %v5080_v7, inf }
 0x13b   :  { %7326 = vst [vmem:[#allocation9_spill] sm:$0xff] %v5083_v11  ;;  %v722_v20 = vmul.f32 2.0, %v555_v19  ;;  %927 = vmin.xlane.f32.xlu1 %v926_v6  ;;  %v929_v22 = vsel %vm820_vm1, %v5083_v11, inf }
 0x13c   :  { %930 = vmin.xlane.f32.xlu0 %v929_v22  ;;  %v5090_v27 = vsub.f32 %v4897_v4, %v723_v16 }
 0x13d   :  { %v5093_v29 = vsub.f32 %v4897_v4, %v722_v20  ;;  %v4298_v33 = vpop.f32.mrb[40].mxu0 }
 0x13e   :  { %v725_v36 = vmul.f32 2.0, %v4298_v33  ;;  %v565_v37 = vpop.f32.mrb[41].mxu0  ;;  %v938_v39 = vsel %vm820_vm1, %v5090_v27, inf }
 0x13f   :  { %7327 = vst [vmem:[#allocation10_spill] sm:$0xff] %v5093_v29  ;;  %933 = vmin.xlane.f32.xlu1 %v932_v25  ;;  %v935_v38 = vsel %vm820_vm1, %v5093_v29, inf  ;;  %v724_v44 = vmul.f32 2.0, %v565_v37 }
 0x140   :  { %936 = vmin.xlane.f32.xlu0 %v935_v38  ;;  %v5100_v47 = vsub.f32 %v4897_v4, %v725_v36 }
 0x141   :  { %v4301_v49 = vpop.f32.mrb[42].mxu0  ;;  %v5105_v59 = vsub.f32 %v4897_v4, %v724_v44 }
 0x142   :  { %v575_v51 = vpop.f32.mrb[43].mxu0  ;;  %v944_v52 = vsel %vm820_vm1, %v5100_v47, inf  ;;  %v727_v54 = vmul.f32 2.0, %v4301_v49 }
 0x143   :  { %939 = vmin.xlane.f32.xlu1 %v938_v39  ;;  %7328 = vst [vmem:[#allocation11_spill] sm:$0xff] %v5105_v59  ;;  %v941_v1 = vsel %vm820_vm1, %v5105_v59, inf  ;;  %v726_v5 = vmul.f32 2.0, %v575_v51 }
 0x144   :  { %v5110_v6 = vsub.f32 %v4897_v4, %v727_v54 }
 0x145   :  { %v4304_v61 = vpop.f32.mrb[44].mxu0  ;;  %v5115_v22 = vsub.f32 %v4897_v4, %v726_v5 }
 0x146   :  { %v585_v62 = vpop.f32.mrb[45].mxu0  ;;  %v950_v19 = vsel %vm820_vm1, %v5110_v6, inf  ;;  %v729_v20 = vmul.f32 2.0, %v4304_v61 }
 0x147   :  { %945 = vmin.xlane.f32.xlu1 %v944_v52  ;;  %7329 = vst [vmem:[#allocation12_spill] sm:$0xff] %v5115_v22  ;;  %v947_v36 = vsel %vm820_vm1, %v5115_v22, inf  ;;  %v728_v37 = vmul.f32 2.0, %v585_v62 }
 0x148   :  { %v5120_v38 = vsub.f32 %v4897_v4, %v729_v20 }
 0x149   :  { %v4307_v9 = vpop.f32.mrb[46].mxu0  ;;  %v5125_v52 = vsub.f32 %v4897_v4, %v728_v37 }
 0x14a   :  { %v595_v16 = vpop.f32.mrb[47].mxu0  ;;  %v956_v49 = vsel %vm820_vm1, %v5120_v38, inf  ;;  %v731_v51 = vmul.f32 2.0, %v4307_v9 }
 0x14b   :  { %942 = vmin.xlane.f32.xlu1 %v941_v1  ;;  %7330 = vst [vmem:[#allocation13_spill] sm:$0xff] %v5125_v52  ;;  %v953_v1 = vsel %vm820_vm1, %v5125_v52, inf  ;;  %v730_v62 = vmul.f32 2.0, %v595_v16 }
 0x14c   :  { %v5130_v5 = vsub.f32 %v4897_v4, %v731_v51 }
 0x14d   :  { %v4310_v25 = vpop.f32.mrb[48].mxu0  ;;  %v5135_v37 = vsub.f32 %v4897_v4, %v730_v62 }
 0x14e   :  { %v605_v33 = vpop.f32.mrb[49].mxu0  ;;  %7331 = vst [vmem:[#allocation14_spill] sm:$0xff] %v5130_v5  ;;  %v733_v9 = vmul.f32 2.0, %v4310_v25 }
 0x14f   :  { %951 = vmin.xlane.f32.xlu1 %v950_v19  ;;  %7332 = vst [vmem:[#allocation15_spill] sm:$0xff] %v5135_v37  ;;  %v732_v16 = vmul.f32 2.0, %v605_v33 }
 0x150   :  { %v5140_v51 = vsub.f32 %v4897_v4, %v733_v9 }
 0x151   :  { %v4313_v39 = vpop.f32.mrb[50].mxu0  ;;  %v5145_v62 = vsub.f32 %v4897_v4, %v732_v16 }
 0x152   :  { %v615_v44 = vpop.f32.mrb[51].mxu0  ;;  %7333 = vst [vmem:[#allocation16_spill] sm:$0xff] %v5140_v51  ;;  %v735_v25 = vmul.f32 2.0, %v4313_v39 }
 0x153   :  { %948 = vmin.xlane.f32.xlu1 %v947_v36  ;;  %v962_v36 = vsel %vm820_vm1, %v5130_v5, inf  ;;  %7334 = vst [vmem:[#allocation17_spill] sm:$0xff] %v5145_v62  ;;  %v965_v33 = vsel %vm820_vm1, %v5145_v62, inf  ;;  %v734_v9 = vmul.f32 2.0, %v615_v44 }
 0x155   :  { %v4316_v54 = vpop.f32.mrb[52].mxu0 }
 0x156   :  { %v625_v61 = vpop.f32.mrb[53].mxu0  ;;  %v737_v16 = vmul.f32 2.0, %v4316_v54 }
 0x157   :  { %957 = vmin.xlane.f32.xlu1 %v956_v49  ;;  %v959_v49 = vsel %vm820_vm1, %v5135_v37, inf  ;;  %v5154_v37 = vsub.f32 %v4897_v4, %v735_v25  ;;  %v736_v44 = vmul.f32 2.0, %v625_v61  ;;  %v7179_v61 = vlaneseq }
 0x158   :  { %v5168_v25 = vsub.f32 %v4897_v4, %v737_v16 }
 0x159   :  { %v4319_v19 = vpop.f32.mrb[54].mxu0  ;;  %v974_v39 = vsel %vm820_vm1, %v5154_v37, inf  ;;  %v5173_v7 = vsub.f32 %v4897_v4, %v736_v44 }
 0x15a   :  { %v635_v20 = vpop.f32.mrb[55].mxu0  ;;  %v980_v62 = vsel %vm820_vm1, %v5168_v25, inf }
 0x15b   :  { %954 = vmin.xlane.f32.xlu1 %v953_v1  ;;  %v968_v1 = vsel %vm820_vm1, %v5140_v51, inf  ;;  %v5163_v51 = vsub.f32 %v4897_v4, %v734_v9  ;;  %7336 = vst [vmem:[#allocation19_spill] sm:$0xff] %v5173_v7  ;;  %v977_v54 = vsel %vm820_vm1, %v5173_v7, inf  ;;  %v738_v9 = vmul.f32 2.0, %v635_v20 }
 0x15d   :  { %v4322_v22 = vpop.f32.mrb[56].mxu0  ;;  %7335 = vst [vmem:[#allocation18_spill] sm:$0xff] %v5163_v51 }
 0x15e   :  { %v645_v59 = vpop.f32.mrb[57].mxu0 }
 0x15f   :  { %963 = vmin.xlane.f32.xlu1 %v962_v36  ;;  %v740_v44 = vmul.f32 2.0, %v645_v59 }
 0x161   :  { %v4325_v52 = vpop.f32.mrb[58].mxu0  ;;  %v5202_v59 = vsub.f32 %v4897_v4, %v740_v44 }
 0x162   :  { %v655_v29 = vpop.f32.mrb[59].mxu0 }
 0x163   :  { %960 = vmin.xlane.f32.xlu1 %v959_v49 }
 0x165   :  { %v5147_v11 = vpop.f32.mrb[60].mxu0 }
 0x166   :  { %v5149_v36 = vpop.f32.mrb[61].mxu0 }
 0x167   :  { %969 = vmin.xlane.f32.xlu1 %v968_v1  ;;  %v971_v1 = vsel %vm820_vm1, %v5163_v51, inf  ;;  %v5183_v51 = vsub.f32 %v4897_v4, %v738_v9 }
 0x169   :  { %v5156_v49 = vpop.f32.mrb[62].mxu0  ;;  %7337 = vst [vmem:[#allocation20_spill] sm:$0xff] %v5183_v51  ;;  %v983_v20 = vsel %vm820_vm1, %v5183_v51, inf  ;;  %v743_v51 = vmul.f32 2.0, %v4325_v52 }
 0x16a   :  { %v5158_v5 = vpop.f32.mrb[63].mxu0 }
 0x16b   :  { %966 = vmin.xlane.f32.xlu1 %v965_v33  ;;  %v739_v33 = vmul.f32 2.0, %v4319_v19  ;;  %v5186_v19 = vand.u32 127, %v7179_v61  ;;  %v5221_v44 = vsub.f32 %v4897_v4, %v743_v51  ;;  %v745_v51 = vmul.f32 2.0, %v5147_v11 }
 0x16d   :  { %7338 = vst [vmem:[#allocation21_spill] sm:$0xff] %v5186_v19 }
 0x16f   :  { %975 = vmin.xlane.f32.xlu1 %v974_v39  ;;  %v5178_v39 = vsub.f32 %v4897_v4, %v739_v33 }
 0x171   :  { %v986_v16 = vsel %vm820_vm1, %v5178_v39, inf }
 0x173   :  { %972 = vmin.xlane.f32.xlu1 %v971_v1  ;;  %v741_v1 = vmul.f32 2.0, %v4322_v22 }
 0x175   :  { %v5191_v33 = vsub.f32 %v4897_v4, %v741_v1 }
 0x177   :  { %981 = vmin.xlane.f32.xlu1 %v980_v62 }
 0x17b   :  { %978 = vmin.xlane.f32.xlu1 %v977_v54 }
 0x17f   :  { %987 = vmin.xlane.f32.xlu1 %v986_v16  ;;  %v992_v16 = vsel %vm820_vm1, %v5191_v33, inf }
 0x180   :  { %v826_v62 = vpop.xlane.xlu0 %825 }
 0x181   :  { %vm1014_vm2 = vcmp.le.f32.partialorder %v4900_v8, %v826_v62 }
 0x182   :  { %v1078_v54 = vsel %vm1014_vm2, %v5186_v19, 32 }
 0x183   :  { %984 = vmin.xlane.f32.xlu1 %v983_v20  ;;  %v5196_v22 = vsel %vm820_vm1, %v1078_v54, 2147483647 }
 0x184   :  { %v823_v9 = vpop.xlane.xlu0 %822  ;;  %v832_v61 = vpop.xlane.xlu1 %831  ;;  %v1158_v7 = vshra.s32 %v5196_v22, 16 }
 0x185   :  { %vm1013_vm3 = vcmp.le.f32.partialorder %v4905_v13, %v823_v9  ;;  %vm1016_vm4 = vcmp.le.f32.partialorder %v4908_v15, %v832_v61  ;;  %v989_v13 = vsel %vm820_vm1, %v5202_v59, inf  ;;  %v742_v61 = vmul.f32 2.0, %v655_v29 }
 0x186   :  { %v1077_v8 = vsel %vm1013_vm3, %v5186_v19, 32  ;;  %v1080_v1 = vsel %vm1016_vm4, %v5186_v19, 32  ;;  %v5208_v62 = vcvt.s32.f32 %v1158_v7  ;;  %v998_v29 = vsel %vm820_vm1, %v5221_v44, inf }
 0x187   :  { %993 = vmin.xlane.f32.xlu1 %v992_v16  ;;  %v5211_v20 = vsel %vm820_vm1, %v1077_v8, 2147483647  ;;  %v5214_v54 = vsel %vm820_vm1, %v1080_v1, 2147483647 }
 0x188   :  { %7339 = vst [vmem:[#allocation22_spill] sm:$0xff] %v5208_v62  ;;  %v829_v52 = vpop.xlane.xlu1 %828  ;;  %1161 = vmin.xlane.f32.xlu0 %v5208_v62  ;;  %v1143_v15 = vshra.s32 %v5211_v20, 16  ;;  %v1188_v8 = vshra.s32 %v5214_v54, 16 }
 0x189   :  { %vm1015_vm5 = vcmp.le.f32.partialorder %v4911_v17, %v829_v52  ;;  %v835_v9 = vpop.xlane.xlu0 %834  ;;  %v5236_v17 = vsub.f32 %v4897_v4, %v742_v61 }
 0x18a   :  { %v1079_v7 = vsel %vm1015_vm5, %v5186_v19, 32  ;;  %v5225_v16 = vcvt.s32.f32 %v1143_v15  ;;  %vm1017_vm6 = vcmp.le.f32.partialorder %v4923_v26, %v835_v9 }
 0x18b   :  { %990 = vmin.xlane.f32.xlu1 %v989_v13  ;;  %v5229_v1 = vsel %vm820_vm1, %v1079_v7, 2147483647  ;;  %v5241_v13 = vcvt.s32.f32 %v1188_v8  ;;  %v995_v26 = vsel %vm820_vm1, %v5236_v17, inf }
 0x18c   :  { %7340 = vst [vmem:[#allocation23_spill] sm:$0xff] %v5225_v16  ;;  %7341 = vst [vmem:[#allocation24_spill] sm:$0xff] %v5229_v1  ;;  %v838_v62 = vpop.xlane.xlu1 %837  ;;  %1146 = vmin.xlane.f32.xlu0 %v5225_v16  ;;  %v1173_v15 = vshra.s32 %v5229_v1, 16  ;;  %v1081_v16 = vsel %vm1017_vm6, %v5186_v19, 32 }
 0x18d   :  { %vm1018_vm7 = vcmp.le.f32.partialorder %v4920_v24, %v838_v62  ;;  %v744_v24 = vmul.f32 2.0, %v5149_v36  ;;  %v5253_v62 = vsub.f32 %v4897_v4, %v745_v51  ;;  %v841_v61 = vpop.xlane.xlu0 %840  ;;  %v747_v51 = vmul.f32 2.0, %v5156_v49 }
 0x18e   :  { %v1082_v52 = vsel %vm1018_vm7, %v5186_v19, 32  ;;  %v5256_v9 = vcvt.s32.f32 %v1173_v15  ;;  %vm1019_vm9 = vcmp.le.f32.partialorder %v4933_v34, %v841_v61 }
 0x18f   :  { %999 = vmin.xlane.f32.xlu1 %v998_v29  ;;  %v5245_v7 = vsel %vm820_vm1, %v1082_v52, 2147483647  ;;  %v5260_v29 = vsel %vm820_vm1, %v1081_v16, 2147483647  ;;  %v1004_v36 = vsel %vm820_vm1, %v5253_v62, inf  ;;  %v5283_v34 = vsub.f32 %v4897_v4, %v747_v51 }
 0x190   :  { %7342 = vst [vmem:[#allocation25_spill] sm:$0xff] %v5245_v7  ;;  %v844_v11 = vpop.xlane.xlu1 %843  ;;  %1191 = vmin.xlane.f32.xlu0 %v5241_v13  ;;  %7343 = vst [vmem:[#allocation26_spill] sm:$0xff] %v5256_v9  ;;  %v1218_v8 = vshra.s32 %v5245_v7, 16  ;;  %v1203_v16 = vshra.s32 %v5260_v29, 16 }
 0x191   :  { %vm1020_vm8 = vcmp.le.f32.partialorder %v4930_v32, %v844_v11  ;;  %7344 = vst [vmem:[#allocation27_spill] sm:$0xff] %v5260_v29  ;;  %v5268_v32 = vsub.f32 %v4897_v4, %v744_v24  ;;  %v746_v24 = vmul.f32 2.0, %v5158_v5 }
 0x192   :  { %v1084_v52 = vsel %vm1020_vm8, %v5186_v19, 32  ;;  %v5271_v15 = vcvt.s32.f32 %v1218_v8  ;;  %v5287_v61 = vcvt.s32.f32 %v1203_v16 }
 0x193   :  { %996 = vmin.xlane.f32.xlu1 %v995_v26  ;;  %v5275_v11 = vsel %vm820_vm1, %v1084_v52, 2147483647  ;;  %v1083_v26 = vsel %vm1019_vm9, %v5186_v19, 32  ;;  %v1001_v49 = vsel %vm820_vm1, %v5268_v32, inf }
 0x194   :  { %v850_v1 = vpop.xlane.xlu1 %849  ;;  %1176 = vmin.xlane.f32.xlu0 %v5256_v9  ;;  %v847_v9 = vpop.xlane.xlu0 %846  ;;  %7345 = vst [vmem:[#allocation28_spill] sm:$0xff] %v5287_v61  ;;  %v1248_v8 = vshra.s32 %v5275_v11, 16 }
 0x195   :  { %vm1022_vm10 = vcmp.le.f32.partialorder %v4940_v40, %v850_v1  ;;  %v1010_v40 = vsel %vm820_vm1, %v5283_v34, inf  ;;  %vm1021_vm12 = vcmp.le.f32.partialorder %v4943_v42, %v847_v9 }
 0x196   :  { %v1086_v29 = vsel %vm1022_vm10, %v5186_v19, 32 }
 0x197   :  { %1005 = vmin.xlane.f32.xlu1 %v1004_v36  ;;  %v5292_v36 = vsel %vm820_vm1, %v1083_v26, 2147483647  ;;  %v5309_v26 = vsel %vm820_vm1, %v1086_v29, 2147483647 }
 0x198   :  { %v856_v7 = vpop.xlane.xlu1 %855  ;;  %1221 = vmin.xlane.f32.xlu0 %v5271_v15  ;;  %v853_v1 = vpop.xlane.xlu0 %852  ;;  %v1233_v51 = vshra.s32 %v5292_v36, 16  ;;  %v1278_v29 = vshra.s32 %v5309_v26, 16 }
 0x199   :  { %vm1024_vm11 = vcmp.le.f32.partialorder %v4950_v48, %v856_v7  ;;  %v5299_v48 = vsub.f32 %v4897_v4, %v746_v24  ;;  %v5302_v7 = vcvt.s32.f32 %v1248_v8  ;;  %vm1023_vm13 = vcmp.le.f32.partialorder %v4953_v50, %v853_v1 }
 0x19a   :  { %v1088_v52 = vsel %vm1024_vm11, %v5186_v19, 32  ;;  %v5319_v24 = vcvt.s32.f32 %v1233_v51  ;;  %v5334_v51 = vcvt.s32.f32 %v1278_v29 }
 0x19b   :  { %1002 = vmin.xlane.f32.xlu1 %v1001_v49  ;;  %v5306_v16 = vsel %vm820_vm1, %v1088_v52, 2147483647  ;;  %v1085_v49 = vsel %vm1021_vm12, %v5186_v19, 32  ;;  %v1007_v4 = vsel %vm820_vm1, %v5299_v48, inf }
 0x19c   :  { %v862_v5 = vpop.xlane.xlu1 %861  ;;  %1206 = vmin.xlane.f32.xlu0 %v5287_v61  ;;  %7346 = vst [vmem:[#allocation29_spill] sm:$0xff] %v5306_v16  ;;  %v1308_v42 = vshra.s32 %v5306_v16, 16  ;;  %v5326_v52 = vsel %vm820_vm1, %v1085_v49, 2147483647  ;;  %v859_v50 = vpop.xlane.xlu0 %858 }
 0x19d   :  { %vm1026_vm15 = vcmp.le.f32.partialorder %v4960_v56, %v862_v5  ;;  %vm1025_vm2 = vcmp.le.f32.partialorder %v4963_v58, %v859_v50 }
 0x19e   :  { %v1089_v58 = vsel %vm1025_vm2, %v5186_v19, 32 }
 0x19f   :  { %1011 = vmin.xlane.f32.xlu1 %v1010_v40  ;;  %v1087_v40 = vsel %vm1023_vm13, %v5186_v19, 32 }
 0x1a0   :  { %v868_v61 = vpop.xlane.xlu1 %867  ;;  %1251 = vmin.xlane.f32.xlu0 %v5302_v7  ;;  %v5339_v49 = vsel %vm820_vm1, %v1087_v40, 2147483647  ;;  %v865_v5 = vpop.xlane.xlu0 %864 }
 0x1a1   :  { %vm1028_vm14 = vcmp.le.f32.partialorder %v4970_v0, %v868_v61  ;;  %v5331_v0 = vcvt.s32.f32 %v1308_v42  ;;  %7349 = vst [vmem:[#allocation32_spill] sm:$0xff] %v5339_v49  ;;  %vm1027_vm4 = vcmp.le.f32.partialorder %v4973_v2, %v865_v5 }
 0x1a2   :  { %v1092_v9 = vsel %vm1028_vm14, %v5186_v19, 32 }
 0x1a3   :  { %1008 = vmin.xlane.f32.xlu1 %v1007_v4  ;;  %v5323_v8 = vsel %vm820_vm1, %v1092_v9, 2147483647  ;;  %7348 = vst [vmem:[#allocation31_spill] sm:$0xff] %v5331_v0  ;;  %v1263_v4 = vshra.s32 %v5326_v52, 16  ;;  %v1090_v9 = vsel %vm1026_vm15, %v5186_v19, 32 }
 0x1a4   :  { %7347 = vst [vmem:[#allocation30_spill] sm:$0xff] %v5323_v8  ;;  %v874_v1 = vpop.xlane.xlu1 %873  ;;  %1236 = vmin.xlane.f32.xlu0 %v5319_v24  ;;  %v1368_v61 = vshra.s32 %v5323_v8, 16  ;;  %v1293_v8 = vshra.s32 %v5339_v49, 16 }
 0x1a5   :  { %v5348_v29 = vcvt.s32.f32 %v1263_v4  ;;  %vm1030_vm5 = vcmp.le.f32.partialorder %v4980_v10, %v874_v1 }
 0x1a6   :  { %v5345_v56 = vcvt.s32.f32 %v1368_v61  ;;  %v5362_v50 = vcvt.s32.f32 %v1293_v8 }
 0x1a7   :  { %1311 = vmin.xlane.f32.xlu1 %v5331_v0  ;;  %v5356_v0 = vsel %vm820_vm1, %v1090_v9, 2147483647  ;;  %v1091_v9 = vsel %vm1027_vm4, %v5186_v19, 32 }
 0x1a8   :  { %v880_v16 = vpop.xlane.xlu1 %879  ;;  %1281 = vmin.xlane.f32.xlu0 %v5334_v51  ;;  %7350 = vst [vmem:[#allocation33_spill] sm:$0xff] %v5345_v56  ;;  %7352 = vst [vmem:[#allocation35_spill] sm:$0xff] %v5362_v50  ;;  %v1338_v4 = vshra.s32 %v5356_v0, 16 }
 0x1a9   :  { %vm1032_vm3 = vcmp.le.f32.partialorder %v4990_v21, %v880_v16 }
 0x1aa   :  { %v1096_v42 = vsel %vm1032_vm3, %v5186_v19, 32  ;;  %v5376_v8 = vcvt.s32.f32 %v1338_v4 }
 0x1ab   :  { %1371 = vmin.xlane.f32.xlu1 %v5345_v56  ;;  %v5353_v40 = vsel %vm820_vm1, %v1096_v42, 2147483647  ;;  %v5368_v42 = vsel %vm820_vm1, %v1089_v58, 2147483647  ;;  %v871_v56 = vpop.xlane.xlu0 %870 }
 0x1ac   :  { %7351 = vst [vmem:[#allocation34_spill] sm:$0xff] %v5353_v40  ;;  %v886_v21 = vpop.xlane.xlu1 %885  ;;  %1266 = vmin.xlane.f32.xlu0 %v5348_v29  ;;  %v1428_v16 = vshra.s32 %v5353_v40, 16  ;;  %v1323_v5 = vshra.s32 %v5368_v42, 16  ;;  %v1094_v40 = vsel %vm1030_vm5, %v5186_v19, 32  ;;  %vm1029_vm7 = vcmp.le.f32.partialorder %v4983_v12, %v871_v56 }
 0x1ad   :  { %vm1034_vm10 = vcmp.le.f32.partialorder %v5000_v31, %v886_v21 }
 0x1ae   :  { %v5364_v61 = vcvt.s32.f32 %v1428_v16  ;;  %v5383_v16 = vsel %vm820_vm1, %v1091_v9, 2147483647  ;;  %v5391_v1 = vcvt.s32.f32 %v1323_v5  ;;  %v5397_v9 = vsel %vm820_vm1, %v1094_v40, 2147483647 }
 0x1af   :  { %7355 = vst [vmem:[#allocation38_spill] sm:$0xff] %v5383_v16  ;;  %v1353_v4 = vshra.s32 %v5383_v16, 16  ;;  %v1398_v5 = vshra.s32 %v5397_v9, 16 }
 0x1b0   :  { %7353 = vst [vmem:[#allocation36_spill] sm:$0xff] %v5364_v61  ;;  %v892_v49 = vpop.xlane.xlu1 %891  ;;  %1296 = vmin.xlane.f32.xlu0 %v5362_v50  ;;  %1431 = vmin.xlane.f32.xlu1 %v5364_v61 }
 0x1b1   :  { %vm1036_vm6 = vcmp.le.f32.partialorder %v5010_v43, %v892_v49  ;;  %v877_v43 = vpop.xlane.xlu0 %876  ;;  %v5405_v56 = vcvt.s32.f32 %v1353_v4 }
 0x1b2   :  { %v1100_v2 = vsel %vm1036_vm6, %v5186_v19, 32  ;;  %vm1031_vm8 = vcmp.le.f32.partialorder %v4993_v23, %v877_v43 }
 0x1b3   :  { %v5380_v58 = vsel %vm820_vm1, %v1100_v2, 2147483647  ;;  %v1093_v2 = vsel %vm1029_vm7, %v5186_v19, 32 }
 0x1b4   :  { %7354 = vst [vmem:[#allocation37_spill] sm:$0xff] %v5380_v58  ;;  %v5386_v50 = vpop.xlane.xlu1 %897  ;;  %1341 = vmin.xlane.f32.xlu0 %v5376_v8  ;;  %v1488_v10 = vshra.s32 %v5380_v58, 16  ;;  %v1095_v58 = vsel %vm1031_vm8, %v5186_v19, 32 }
 0x1b5   :  { %v883_v16 = vpop.xlane.xlu0 %882  ;;  %v5426_v4 = vsel %vm820_vm1, %v1095_v58, 2147483647  ;;  %vm1038_vm14 = vcmp.le.f32.partialorder %v5020_v53, %v5386_v50 }
 0x1b6   :  { %v5393_v49 = vcvt.s32.f32 %v1488_v10  ;;  %v5412_v10 = vsel %vm820_vm1, %v1093_v2, 2147483647  ;;  %7360 = vst [vmem:[#allocation43_spill] sm:$0xff] %v5426_v4  ;;  %v1098_v2 = vsel %vm1034_vm10, %v5186_v19, 32  ;;  %vm1033_vm11 = vcmp.le.f32.partialorder %v5003_v35, %v883_v16 }
 0x1b7   :  { %7358 = vst [vmem:[#allocation41_spill] sm:$0xff] %v5412_v10  ;;  %v1383_v43 = vshra.s32 %v5412_v10, 16  ;;  %v1097_v10 = vsel %vm1033_vm11, %v5186_v19, 32 }
 0x1b8   :  { %7356 = vst [vmem:[#allocation39_spill] sm:$0xff] %v5393_v49  ;;  %v904_v61 = vpop.xlane.xlu1 %903  ;;  %1326 = vmin.xlane.f32.xlu0 %v5391_v1  ;;  %1491 = vmin.xlane.f32.xlu1 %v5393_v49 }
 0x1b9   :  { %vm1040_vm9 = vcmp.le.f32.partialorder %v5030_v63, %v904_v61  ;;  %v5420_v63 = vcvt.s32.f32 %v1398_v5  ;;  %v889_v31 = vpop.xlane.xlu0 %888  ;;  %v5434_v5 = vcvt.s32.f32 %v1383_v43 }
 0x1ba   :  { %v1104_v12 = vsel %vm1040_vm9, %v5186_v19, 32  ;;  %vm1035_vm13 = vcmp.le.f32.partialorder %v5013_v45, %v889_v31 }
 0x1bb   :  { %v5409_v40 = vsel %vm820_vm1, %v1104_v12, 2147483647 }
 0x1bc   :  { %7357 = vst [vmem:[#allocation40_spill] sm:$0xff] %v5409_v40  ;;  %v5415_v49 = vpop.xlane.xlu1 %909  ;;  %1356 = vmin.xlane.f32.xlu0 %v5405_v56  ;;  %v1548_v23 = vshra.s32 %v5409_v40, 16  ;;  %v5441_v40 = vsel %vm820_vm1, %v1098_v2, 2147483647  ;;  %v1099_v2 = vsel %vm1035_vm13, %v5186_v19, 32 }
 0x1bd   :  { %v1458_v43 = vshra.s32 %v5441_v40, 16  ;;  %vm1042_vm5 = vcmp.le.f32.partialorder %v5040_v14, %v5415_v49 }
 0x1be   :  { %v5422_v61 = vcvt.s32.f32 %v1548_v23  ;;  %v1413_v23 = vshra.s32 %v5426_v4, 16 }
 0x1bf   :  { %v5464_v31 = vcvt.s32.f32 %v1458_v43 }
 0x1c0   :  { %7359 = vst [vmem:[#allocation42_spill] sm:$0xff] %v5422_v61  ;;  %v916_v12 = vpop.xlane.xlu1 %915  ;;  %1401 = vmin.xlane.f32.xlu0 %v5420_v63  ;;  %1551 = vmin.xlane.f32.xlu1 %v5422_v61 }
 0x1c1   :  { %vm1044_vm12 = vcmp.le.f32.partialorder %v5050_v28, %v916_v12  ;;  %v5449_v28 = vcvt.s32.f32 %v1413_v23  ;;  %v5455_v12 = vsel %vm820_vm1, %v1097_v10, 2147483647 }
 0x1c2   :  { %v1108_v21 = vsel %vm1044_vm12, %v5186_v19, 32  ;;  %7363 = vst [vmem:[#allocation46_spill] sm:$0xff] %v5455_v12  ;;  %v1443_v10 = vshra.s32 %v5455_v12, 16 }
 0x1c3   :  { %v5438_v58 = vsel %vm820_vm1, %v1108_v21, 2147483647  ;;  %v895_v21 = vpop.xlane.xlu0 %894 }
 0x1c4   :  { %7361 = vst [vmem:[#allocation44_spill] sm:$0xff] %v5438_v58  ;;  %v5444_v61 = vpop.xlane.xlu1 %921  ;;  %1386 = vmin.xlane.f32.xlu0 %v5434_v5  ;;  %v1608_v35 = vshra.s32 %v5438_v58, 16  ;;  %v1102_v58 = vsel %vm1038_vm14, %v5186_v19, 32  ;;  %vm1037_vm2 = vcmp.le.f32.partialorder %v5023_v55, %v895_v21  ;;  %v5479_v50 = vcvt.s32.f32 %v1443_v10 }
 0x1c5   :  { %vm1046_vm10 = vcmp.le.f32.partialorder %v5060_v41, %v5444_v61 }
 0x1c6   :  { %v5451_v16 = vcvt.s32.f32 %v1608_v35  ;;  %v5471_v35 = vsel %vm820_vm1, %v1099_v2, 2147483647  ;;  %v5485_v2 = vsel %vm820_vm1, %v1102_v58, 2147483647 }
 0x1c7   :  { %7365 = vst [vmem:[#allocation48_spill] sm:$0xff] %v5471_v35  ;;  %v1473_v43 = vshra.s32 %v5471_v35, 16  ;;  %v1518_v10 = vshra.s32 %v5485_v2, 16 }
 0x1c8   :  { %7362 = vst [vmem:[#allocation45_spill] sm:$0xff] %v5451_v16  ;;  %v928_v4 = vpop.xlane.xlu1 %927  ;;  %1416 = vmin.xlane.f32.xlu0 %v5449_v28  ;;  %1611 = vmin.xlane.f32.xlu1 %v5451_v16 }
 0x1c9   :  { %vm1048_vm15 = vcmp.le.f32.partialorder %v5070_v57, %v928_v4  ;;  %v901_v57 = vpop.xlane.xlu0 %900  ;;  %v5493_v21 = vcvt.s32.f32 %v1473_v43 }
 0x1ca   :  { %v1112_v45 = vsel %vm1048_vm15, %v5186_v19, 32  ;;  %vm1039_vm3 = vcmp.le.f32.partialorder %v5033_v3, %v901_v57  ;;  %v5509_v57 = vcvt.s32.f32 %v1518_v10 }
 0x1cb   :  { %v5468_v23 = vsel %vm820_vm1, %v1112_v45, 2147483647  ;;  %v1101_v45 = vsel %vm1037_vm2, %v5186_v19, 32 }
 0x1cc   :  { %7364 = vst [vmem:[#allocation47_spill] sm:$0xff] %v5468_v23  ;;  %v5474_v16 = vpop.xlane.xlu1 %933  ;;  %1461 = vmin.xlane.f32.xlu0 %v5464_v31  ;;  %v1668_v53 = vshra.s32 %v5468_v23, 16  ;;  %v1103_v23 = vsel %vm1039_vm3, %v5186_v19, 32  ;;  %7368 = vst [vmem:[#allocation51_spill] sm:$0xff] %v5509_v57 }
 0x1cd   :  { %v907_v35 = vpop.xlane.xlu0 %906 }
 0x1ce   :  { %v5481_v4 = vcvt.s32.f32 %v1668_v53  ;;  %v5500_v53 = vsel %vm820_vm1, %v1101_v45, 2147483647  ;;  %vm1041_vm7 = vcmp.le.f32.partialorder %v5043_v18, %v907_v35 }
 0x1cf   :  { %v1503_v45 = vshra.s32 %v5500_v53, 16 }
 0x1d0   :  { %7366 = vst [vmem:[#allocation49_spill] sm:$0xff] %v5481_v4  ;;  %v940_v12 = vpop.xlane.xlu1 %939  ;;  %1446 = vmin.xlane.f32.xlu0 %v5479_v50  ;;  %1671 = vmin.xlane.f32.xlu1 %v5481_v4  ;;  %v5518_v4 = vsel %vm820_vm1, %v1103_v23, 2147483647 }
 0x1d1   :  { %vm1052_vm4 = vcmp.le.f32.partialorder %v5090_v27, %v940_v12  ;;  %v913_v49 = vpop.xlane.xlu0 %912  ;;  %v5527_v10 = vcvt.s32.f32 %v1503_v45  ;;  %v1533_v23 = vshra.s32 %v5518_v4, 16 }
 0x1d2   :  { %v1116_v55 = vsel %vm1052_vm4, %v5186_v19, 32  ;;  %vm1043_vm8 = vcmp.le.f32.partialorder %v5053_v30, %v913_v49 }
 0x1d3   :  { %v5497_v58 = vsel %vm820_vm1, %v1116_v55, 2147483647  ;;  %v5541_v35 = vcvt.s32.f32 %v1533_v23 }
 0x1d4   :  { %7367 = vst [vmem:[#allocation50_spill] sm:$0xff] %v5497_v58  ;;  %1476 = vmin.xlane.f32.xlu0 %v5493_v21  ;;  %v946_v3 = vpop.xlane.xlu1 %945  ;;  %v1728_v27 = vshra.s32 %v5497_v58, 16  ;;  %v1106_v58 = vsel %vm1042_vm5, %v5186_v19, 32 }
 0x1d5   :  { %vm1054_vm6 = vcmp.le.f32.partialorder %v5100_v47, %v946_v3 }
 0x1d6   :  { %v1118_v12 = vsel %vm1054_vm6, %v5186_v19, 32  ;;  %v5511_v43 = vcvt.s32.f32 %v1728_v27  ;;  %v5533_v27 = vsel %vm820_vm1, %v1106_v58, 2147483647 }
 0x1d7   :  { %v5515_v55 = vsel %vm820_vm1, %v1118_v12, 2147483647  ;;  %v1105_v12 = vsel %vm1041_vm7, %v5186_v19, 32  ;;  %v1578_v45 = vshra.s32 %v5533_v27, 16 }
 0x1d8   :  { %7369 = vst [vmem:[#allocation52_spill] sm:$0xff] %v5511_v43  ;;  %7370 = vst [vmem:[#allocation53_spill] sm:$0xff] %v5515_v55  ;;  %1521 = vmin.xlane.f32.xlu0 %v5509_v57  ;;  %v5522_v14 = vpop.xlane.xlu1 %942  ;;  %1731 = vmin.xlane.f32.xlu1 %v5511_v43  ;;  %v1758_v47 = vshra.s32 %v5515_v55, 16  ;;  %v1107_v55 = vsel %vm1043_vm8, %v5186_v19, 32  ;;  %v919_v43 = vpop.xlane.xlu0 %918 }
 0x1d9   :  { %vm1045_vm11 = vcmp.le.f32.partialorder %v5063_v46, %v919_v43 }
 0x1da   :  { %v5529_v3 = vcvt.s32.f32 %v1758_v47  ;;  %v5548_v47 = vsel %vm820_vm1, %v1105_v12, 2147483647  ;;  %v5563_v12 = vsel %vm820_vm1, %v1107_v55, 2147483647 }
 0x1db   :  { %v1563_v23 = vshra.s32 %v5548_v47, 16 }
 0x1dc   :  { %7371 = vst [vmem:[#allocation54_spill] sm:$0xff] %v5529_v3  ;;  %1506 = vmin.xlane.f32.xlu0 %v5527_v10  ;;  %v952_v57 = vpop.xlane.xlu1 %951  ;;  %1761 = vmin.xlane.f32.xlu1 %v5529_v3  ;;  %v925_v41 = vpop.xlane.xlu0 %924 }
 0x1dd   :  { %vm1056_vm9 = vcmp.le.f32.partialorder %v5110_v6, %v952_v57  ;;  %v5557_v57 = vcvt.s32.f32 %v1578_v45  ;;  %v5571_v45 = vcvt.s32.f32 %v1563_v23  ;;  %vm1047_vm13 = vcmp.le.f32.partialorder %v5073_v60, %v925_v41  ;;  %v7382_v60 = vld [vmem:[#allocation14_spill] sm:$0xff] }
 0x1de   :  { %v1120_v18 = vsel %vm1056_vm9, %v5186_v19, 32 }
 0x1df   :  { %v5545_v58 = vsel %vm820_vm1, %v1120_v18, 2147483647  ;;  %7373 = vst [vmem:[#allocation56_spill] sm:$0xff] %v5557_v57  ;;  %v1110_v18 = vsel %vm1046_vm10, %v5186_v19, 32  ;;  %7375 = vst [vmem:[#allocation58_spill] sm:$0xff] %v5571_v45 }
 0x1e0   :  { %7372 = vst [vmem:[#allocation55_spill] sm:$0xff] %v5545_v58  ;;  %1536 = vmin.xlane.f32.xlu0 %v5541_v35  ;;  %v5552_v30 = vpop.xlane.xlu1 %948  ;;  %v1788_v6 = vshra.s32 %v5545_v58, 16  ;;  %v5578_v58 = vsel %vm820_vm1, %v1110_v18, 2147483647  ;;  %v1111_v18 = vsel %vm1047_vm13, %v5186_v19, 32 }
 0x1e1   :  { %7377 = vst [vmem:[#allocation60_spill] sm:$0xff] %v5578_v58  ;;  %v1638_v23 = vshra.s32 %v5578_v58, 16  ;;  %v5608_v58 = vsel %vm820_vm1, %v1111_v18, 2147483647 }
 0x1e2   :  { %v5559_v49 = vcvt.s32.f32 %v1788_v6  ;;  %v1593_v6 = vshra.s32 %v5563_v12, 16  ;;  %7385 = vst [vmem:[#allocation64_spill] sm:$0xff] %v5608_v58 }
 0x1e4   :  { %7374 = vst [vmem:[#allocation57_spill] sm:$0xff] %v5559_v49  ;;  %1581 = vmin.xlane.f32.xlu0 %v5557_v57  ;;  %v958_v3 = vpop.xlane.xlu1 %957  ;;  %1791 = vmin.xlane.f32.xlu1 %v5559_v49  ;;  %v1109_v57 = vsel %vm1045_vm11, %v5186_v19, 32  ;;  %v5586_v43 = vcvt.s32.f32 %v1593_v6  ;;  %v931_v49 = vpop.xlane.xlu0 %930  ;;  %v5601_v6 = vcvt.s32.f32 %v1638_v23 }
 0x1e5   :  { %vm1058_vm12 = vcmp.le.f32.partialorder %v5120_v38, %v958_v3 }
 0x1e6   :  { %v1122_v61 = vsel %vm1058_vm12, %v5186_v19, 32  ;;  %7378 = vst [vmem:[#allocation61_spill] sm:$0xff] %v5586_v43 }
 0x1e7   :  { %v5575_v55 = vsel %vm820_vm1, %v1122_v61, 2147483647  ;;  %v5592_v61 = vsel %vm820_vm1, %v1109_v57, 2147483647 }
 0x1e8   :  { %7376 = vst [vmem:[#allocation59_spill] sm:$0xff] %v5575_v55  ;;  %1566 = vmin.xlane.f32.xlu0 %v5571_v45  ;;  %v5582_v46 = vpop.xlane.xlu1 %954  ;;  %v1818_v38 = vshra.s32 %v5575_v55, 16  ;;  %7380 = vst [vmem:[#allocation63_spill] sm:$0xff] %v5592_v61  ;;  %v7381_v55 = vld [vmem:[#allocation8_spill] sm:$0xff]  ;;  %v1623_v57 = vshra.s32 %v5592_v61, 16 }
 0x1e9   :  { %vm1050_vm14 = vcmp.le.f32.partialorder %v7381_v55, %v5474_v16  ;;  %7383 = vst [vmem:[#allocation8_spill] sm:$0xff] %v5601_v6  ;;  %v937_v55 = vpop.xlane.xlu0 %936 }
 0x1ea   :  { %v5588_v3 = vcvt.s32.f32 %v1818_v38  ;;  %v5614_v23 = vcvt.s32.f32 %v1623_v57 }
 0x1ec   :  { %7379 = vst [vmem:[#allocation62_spill] sm:$0xff] %v5588_v3  ;;  %1596 = vmin.xlane.f32.xlu0 %v5586_v43  ;;  %v964_v45 = vpop.xlane.xlu1 %963  ;;  %1821 = vmin.xlane.f32.xlu1 %v5588_v3  ;;  %v1114_v43 = vsel %vm1050_vm14, %v5186_v19, 32 }
 0x1ed   :  { %vm1060_vm15 = vcmp.le.f32.partialorder %v7382_v60, %v964_v45  ;;  %v7386_v45 = vld [vmem:[#allocation9_spill] sm:$0xff]  ;;  %v5620_v61 = vsel %vm820_vm1, %v1114_v43, 2147483647 }
 0x1ee   :  { %v1124_v41 = vsel %vm1060_vm15, %v5186_v19, 32  ;;  %vm1049_vm2 = vcmp.le.f32.partialorder %v7386_v45, %v931_v49  ;;  %7387 = vst [vmem:[#allocation9_spill] sm:$0xff] %v5614_v23  ;;  %v7390_v49 = vld [vmem:[#allocation16_spill] sm:$0xff]  ;;  %v1698_v45 = vshra.s32 %v5620_v61, 16 }
 0x1ef   :  { %v5605_v38 = vsel %vm820_vm1, %v1124_v41, 2147483647  ;;  %v1653_v41 = vshra.s32 %v5608_v58, 16  ;;  %v1113_v18 = vsel %vm1049_vm2, %v5186_v19, 32 }
 0x1f0   :  { %7384 = vst [vmem:[#allocation14_spill] sm:$0xff] %v5605_v38  ;;  %1641 = vmin.xlane.f32.xlu0 %v5601_v6  ;;  %v961_v3 = vpop.xlane.xlu1 %960  ;;  %v1848_v16 = vshra.s32 %v5605_v38, 16  ;;  %v7389_v38 = vld [vmem:[#allocation10_spill] sm:$0xff]  ;;  %v5632_v43 = vsel %vm820_vm1, %v1113_v18, 2147483647 }
 0x1f1   :  { %vm1051_vm3 = vcmp.le.f32.partialorder %v7389_v38, %v937_v55  ;;  %v5642_v55 = vcvt.s32.f32 %v1698_v45  ;;  %v1683_v18 = vshra.s32 %v5632_v43, 16 }
 0x1f2   :  { %v5616_v60 = vcvt.s32.f32 %v1848_v16  ;;  %v5628_v16 = vcvt.s32.f32 %v1653_v41 }
 0x1f3   :  { %v5657_v45 = vcvt.s32.f32 %v1683_v18 }
 0x1f4   :  { %7388 = vst [vmem:[#allocation65_spill] sm:$0xff] %v5616_v60  ;;  %1626 = vmin.xlane.f32.xlu0 %v5614_v23  ;;  %v970_v6 = vpop.xlane.xlu1 %969  ;;  %1851 = vmin.xlane.f32.xlu1 %v5616_v60  ;;  %7391 = vst [vmem:[#allocation10_spill] sm:$0xff] %v5628_v16  ;;  %v1115_v23 = vsel %vm1051_vm3, %v5186_v19, 32 }
 0x1f5   :  { %vm1062_vm4 = vcmp.le.f32.partialorder %v7390_v49, %v970_v6  ;;  %v7393_v6 = vld [vmem:[#allocation11_spill] sm:$0xff]  ;;  %v5648_v49 = vsel %vm820_vm1, %v1115_v23, 2147483647 }
 0x1f6   :  { %v1126_v57 = vsel %vm1062_vm4, %v5186_v19, 32  ;;  %vm1053_vm5 = vcmp.le.f32.partialorder %v7393_v6, %v5522_v14  ;;  %7394 = vst [vmem:[#allocation11_spill] sm:$0xff] %v5642_v55 }
 0x1f7   :  { %v5635_v58 = vsel %vm820_vm1, %v1126_v57, 2147483647  ;;  %v1117_v57 = vsel %vm1053_vm5, %v5186_v19, 32 }
 0x1f8   :  { %7392 = vst [vmem:[#allocation16_spill] sm:$0xff] %v5635_v58  ;;  %1656 = vmin.xlane.f32.xlu0 %v5628_v16  ;;  %v967_v60 = vpop.xlane.xlu1 %966  ;;  %v1878_v38 = vshra.s32 %v5635_v58, 16  ;;  %v7396_v58 = vld [vmem:[#allocation12_spill] sm:$0xff]  ;;  %v5661_v23 = vsel %vm820_vm1, %v1117_v57, 2147483647 }
 0x1f9   :  { %vm1055_vm6 = vcmp.le.f32.partialorder %v7396_v58, %v5552_v30  ;;  %7397 = vst [vmem:[#allocation12_spill] sm:$0xff] %v5657_v45  ;;  %v1743_v18 = vshra.s32 %v5661_v23, 16 }
 0x1fa   :  { %v5644_v41 = vcvt.s32.f32 %v1878_v38  ;;  %v1713_v38 = vshra.s32 %v5648_v49, 16 }
 0x1fc   :  { %7395 = vst [vmem:[#allocation66_spill] sm:$0xff] %v5644_v41  ;;  %1701 = vmin.xlane.f32.xlu0 %v5642_v55  ;;  %v976_v16 = vpop.xlane.xlu1 %975  ;;  %1881 = vmin.xlane.f32.xlu1 %v5644_v41  ;;  %v1119_v55 = vsel %vm1055_vm6, %v5186_v19, 32  ;;  %v5671_v30 = vcvt.s32.f32 %v1713_v38  ;;  %v5685_v38 = vcvt.s32.f32 %v1743_v18 }
 0x1fd   :  { %vm1064_vm7 = vcmp.le.f32.partialorder %v5154_v37, %v976_v16  ;;  %v7399_v37 = vld [vmem:[#allocation13_spill] sm:$0xff]  ;;  %v5677_v57 = vsel %vm820_vm1, %v1119_v55, 2147483647 }
 0x1fe   :  { %v1128_v14 = vsel %vm1064_vm7, %v5186_v19, 32  ;;  %vm1057_vm8 = vcmp.le.f32.partialorder %v7399_v37, %v5582_v46  ;;  %7400 = vst [vmem:[#allocation13_spill] sm:$0xff] %v5671_v30  ;;  %7402 = vst [vmem:[#allocation69_spill] sm:$0xff] %v5677_v57 }
 0x1ff   :  { %v5664_v6 = vsel %vm820_vm1, %v1128_v14, 2147483647  ;;  %v1121_v14 = vsel %vm1057_vm8, %v5186_v19, 32 }
 0x200   :  { %7398 = vst [vmem:[#allocation67_spill] sm:$0xff] %v5664_v6  ;;  %1686 = vmin.xlane.f32.xlu0 %v5657_v45  ;;  %v973_v41 = vpop.xlane.xlu1 %972  ;;  %v1908_v58 = vshra.s32 %v5664_v6, 16  ;;  %v7403_v6 = vld [vmem:[#allocation15_spill] sm:$0xff]  ;;  %v5689_v55 = vsel %vm820_vm1, %v1121_v14, 2147483647 }
 0x201   :  { %vm1059_vm9 = vcmp.le.f32.partialorder %v7403_v6, %v961_v3  ;;  %7404 = vst [vmem:[#allocation15_spill] sm:$0xff] %v5685_v38  ;;  %v1803_v18 = vshra.s32 %v5689_v55, 16 }
 0x202   :  { %v5673_v16 = vcvt.s32.f32 %v1908_v58  ;;  %v1773_v58 = vshra.s32 %v5677_v57, 16 }
 0x204   :  { %7401 = vst [vmem:[#allocation68_spill] sm:$0xff] %v5673_v16  ;;  %1716 = vmin.xlane.f32.xlu0 %v5671_v30  ;;  %v982_v45 = vpop.xlane.xlu1 %981  ;;  %1911 = vmin.xlane.f32.xlu1 %v5673_v16  ;;  %v1123_v30 = vsel %vm1059_vm9, %v5186_v19, 32 }
 0x205   :  { %vm1066_vm10 = vcmp.le.f32.partialorder %v5168_v25, %v982_v45  ;;  %v7406_v25 = vld [vmem:[#allocation17_spill] sm:$0xff]  ;;  %v5698_v45 = vcvt.s32.f32 %v1773_v58  ;;  %v5704_v14 = vsel %vm820_vm1, %v1123_v30, 2147483647  ;;  %v5712_v58 = vcvt.s32.f32 %v1803_v18 }
 0x206   :  { %v1130_v46 = vsel %vm1066_vm10, %v5186_v19, 32  ;;  %vm1061_vm11 = vcmp.le.f32.partialorder %v7406_v25, %v967_v60  ;;  %7408 = vst [vmem:[#allocation71_spill] sm:$0xff] %v5704_v14 }
 0x207   :  { %v5692_v37 = vsel %vm820_vm1, %v1130_v46, 2147483647  ;;  %v1125_v46 = vsel %vm1061_vm11, %v5186_v19, 32 }
 0x208   :  { %7405 = vst [vmem:[#allocation70_spill] sm:$0xff] %v5692_v37  ;;  %1746 = vmin.xlane.f32.xlu0 %v5685_v38  ;;  %v979_v16 = vpop.xlane.xlu1 %978  ;;  %v1938_v3 = vshra.s32 %v5692_v37, 16  ;;  %v7409_v38 = vld [vmem:[#allocation18_spill] sm:$0xff]  ;;  %v5716_v30 = vsel %vm820_vm1, %v1125_v46, 2147483647 }
 0x209   :  { %vm1063_vm12 = vcmp.le.f32.partialorder %v7409_v38, %v973_v41  ;;  %7410 = vst [vmem:[#allocation18_spill] sm:$0xff] %v5712_v58  ;;  %v1863_v18 = vshra.s32 %v5716_v30, 16 }
 0x20a   :  { %v5700_v6 = vcvt.s32.f32 %v1938_v3  ;;  %v1833_v3 = vshra.s32 %v5704_v14, 16  ;;  %v1127_v37 = vsel %vm1063_vm12, %v5186_v19, 32 }
 0x20b   :  { %v5731_v46 = vsel %vm820_vm1, %v1127_v37, 2147483647 }
 0x20c   :  { %7407 = vst [vmem:[#allocation17_spill] sm:$0xff] %v5700_v6  ;;  %1776 = vmin.xlane.f32.xlu0 %v5698_v45  ;;  %v988_v57 = vpop.xlane.xlu1 %987  ;;  %1941 = vmin.xlane.f32.xlu1 %v5700_v6  ;;  %7414 = vst [vmem:[#allocation73_spill] sm:$0xff] %v5731_v46  ;;  %v1893_v37 = vshra.s32 %v5731_v46, 16 }
 0x20d   :  { %vm1068_vm13 = vcmp.le.f32.partialorder %v5178_v39, %v988_v57  ;;  %v7412_v39 = vld [vmem:[#allocation19_spill] sm:$0xff]  ;;  %v5725_v57 = vcvt.s32.f32 %v1833_v3 }
 0x20e   :  { %v1132_v60 = vsel %vm1068_vm13, %v5186_v19, 32  ;;  %vm1065_vm14 = vcmp.le.f32.partialorder %v7412_v39, %v979_v16 }
 0x20f   :  { %v5719_v25 = vsel %vm820_vm1, %v1132_v60, 2147483647  ;;  %v1129_v60 = vsel %vm1065_vm14, %v5186_v19, 32 }
 0x210   :  { %7411 = vst [vmem:[#allocation72_spill] sm:$0xff] %v5719_v25  ;;  %1806 = vmin.xlane.f32.xlu0 %v5712_v58  ;;  %v985_v6 = vpop.xlane.xlu1 %984  ;;  %v1968_v41 = vshra.s32 %v5719_v25, 16  ;;  %v7415_v58 = vld [vmem:[#allocation20_spill] sm:$0xff]  ;;  %v5745_v39 = vsel %vm820_vm1, %v1129_v60, 2147483647 }
 0x211   :  { %vm1067_vm15 = vcmp.le.f32.partialorder %v7415_v58, %v985_v6  ;;  %v5756_v58 = vcvt.s32.f32 %v1893_v37  ;;  %v1923_v60 = vshra.s32 %v5745_v39, 16 }
 0x212   :  { %v5727_v38 = vcvt.s32.f32 %v1968_v41  ;;  %v5741_v41 = vcvt.s32.f32 %v1863_v18 }
 0x213   :  { %7419 = vst [vmem:[#allocation76_spill] sm:$0xff] %v5756_v58 }
 0x214   :  { %7413 = vst [vmem:[#allocation19_spill] sm:$0xff] %v5727_v38  ;;  %1836 = vmin.xlane.f32.xlu0 %v5725_v57  ;;  %v994_v14 = vpop.xlane.xlu1 %993  ;;  %1971 = vmin.xlane.f32.xlu1 %v5727_v38  ;;  %7417 = vst [vmem:[#allocation74_spill] sm:$0xff] %v5741_v41  ;;  %v1131_v38 = vsel %vm1067_vm15, %v5186_v19, 32 }
 0x215   :  { %vm1070_vm2 = vcmp.le.f32.partialorder %v5191_v33, %v994_v14  ;;  %v5738_v16 = vpop.xlane.xlu0 %1161 }
 0x216   :  { %7416 = vst [vmem:[#allocation20_spill] sm:$0xff] %v5738_v16  ;;  %v1134_v3 = vsel %vm1070_vm2, %v5186_v19, 32 }
 0x217   :  { %v5748_v25 = vsel %vm820_vm1, %v1134_v3, 2147483647  ;;  %v5762_v3 = vsel %vm820_vm1, %v1131_v38, 2147483647 }
 0x218   :  { %7418 = vst [vmem:[#allocation75_spill] sm:$0xff] %v5748_v25  ;;  %1866 = vmin.xlane.f32.xlu0 %v5741_v41  ;;  %v991_v6 = vpop.xlane.xlu1 %990  ;;  %v1998_v33 = vshra.s32 %v5748_v25, 16  ;;  %7421 = vst [vmem:[#allocation78_spill] sm:$0xff] %v5762_v3 }
 0x219   :  { %vm1069_vm3 = vcmp.le.f32.partialorder %v5202_v59, %v991_v6  ;;  %v5754_v14 = vpop.xlane.xlu0 %1146  ;;  %v5771_v6 = vcvt.s32.f32 %v1923_v60 }
 0x21a   :  { %v5758_v18 = vcvt.s32.f32 %v1998_v33  ;;  %v1133_v46 = vsel %vm1069_vm3, %v5186_v19, 32  ;;  %v1953_v33 = vshra.s32 %v5762_v3, 16 }
 0x21b   :  { %7422 = vst [vmem:[#allocation79_spill] sm:$0xff] %v5771_v6  ;;  %v5775_v38 = vsel %vm820_vm1, %v1133_v46, 2147483647 }
 0x21c   :  { %7420 = vst [vmem:[#allocation77_spill] sm:$0xff] %v5758_v18  ;;  %1896 = vmin.xlane.f32.xlu0 %v5756_v58  ;;  %v1000_v41 = vpop.xlane.xlu1 %999  ;;  %2001 = vmin.xlane.f32.xlu1 %v5758_v18  ;;  %v5786_v60 = vcvt.s32.f32 %v1953_v33  ;;  %v1983_v46 = vshra.s32 %v5775_v38, 16 }
 0x21d   :  { %vm1072_vm4 = vcmp.le.f32.partialorder %v5221_v44, %v1000_v41  ;;  %v5768_v59 = vpop.xlane.xlu0 %1191 }
 0x21e   :  { %v1136_v37 = vsel %vm1072_vm4, %v5186_v19, 32  ;;  %7424 = vst [vmem:[#allocation81_spill] sm:$0xff] %v5786_v60  ;;  %v5800_v33 = vcvt.s32.f32 %v1983_v46  ;;  %vm1193_vm11 = vcmp.eq.f32.partialorder %v5241_v13, %v5768_v59  ;;  %v7441_v13 = vld [vmem:[#allocation26_spill] sm:$0xff] }
 0x21f   :  { %v5778_v25 = vsel %vm820_vm1, %v1136_v37, 2147483647 }
 0x220   :  { %7423 = vst [vmem:[#allocation80_spill] sm:$0xff] %v5778_v25  ;;  %1926 = vmin.xlane.f32.xlu0 %v5771_v6  ;;  %v997_v58 = vpop.xlane.xlu1 %996  ;;  %v2028_v18 = vshra.s32 %v5778_v25, 16  ;;  %7427 = vst [vmem:[#allocation84_spill] sm:$0xff] %v5800_v33 }
 0x221   :  { %vm1071_vm5 = vcmp.le.f32.partialorder %v5236_v17, %v997_v58  ;;  %v5783_v44 = vpop.xlane.xlu0 %1176 }
 0x222   :  { %v1135_v41 = vsel %vm1071_vm5, %v5186_v19, 32  ;;  %v5788_v3 = vcvt.s32.f32 %v2028_v18  ;;  %vm1178_vm14 = vcmp.eq.f32.partialorder %v7441_v13, %v5783_v44 }
 0x223   :  { %v5792_v37 = vsel %vm820_vm1, %v1135_v41, 2147483647 }
 0x224   :  { %7425 = vst [vmem:[#allocation82_spill] sm:$0xff] %v5788_v3  ;;  %7426 = vst [vmem:[#allocation83_spill] sm:$0xff] %v5792_v37  ;;  %1956 = vmin.xlane.f32.xlu0 %v5786_v60  ;;  %v1006_v6 = vpop.xlane.xlu1 %1005  ;;  %2031 = vmin.xlane.f32.xlu1 %v5788_v3  ;;  %v2013_v18 = vshra.s32 %v5792_v37, 16 }
 0x225   :  { %vm1074_vm6 = vcmp.le.f32.partialorder %v5253_v62, %v1006_v6  ;;  %v5797_v17 = vpop.xlane.xlu0 %1221 }
 0x226   :  { %v1138_v58 = vsel %vm1074_vm6, %v5186_v19, 32  ;;  %v5812_v6 = vcvt.s32.f32 %v2013_v18  ;;  %vm1223_vm13 = vcmp.eq.f32.partialorder %v5271_v15, %v5797_v17  ;;  %v7443_v15 = vld [vmem:[#allocation28_spill] sm:$0xff] }
 0x227   :  { %v5804_v25 = vsel %vm820_vm1, %v1138_v58, 2147483647 }
 0x228   :  { %7428 = vst [vmem:[#allocation85_spill] sm:$0xff] %v5804_v25  ;;  %1986 = vmin.xlane.f32.xlu0 %v5800_v33  ;;  %v1003_v41 = vpop.xlane.xlu1 %1002  ;;  %v2058_v60 = vshra.s32 %v5804_v25, 16  ;;  %7429 = vst [vmem:[#allocation86_spill] sm:$0xff] %v5812_v6 }
 0x229   :  { %vm1073_vm7 = vcmp.le.f32.partialorder %v5268_v32, %v1003_v41  ;;  %v5809_v3 = vpop.xlane.xlu0 %1206 }
 0x22a   :  { %v1137_v62 = vsel %vm1073_vm7, %v5186_v19, 32  ;;  %v5814_v46 = vcvt.s32.f32 %v2058_v60  ;;  %vm1208_vm2 = vcmp.eq.f32.partialorder %v7443_v15, %v5809_v3 }
 0x22b   :  { %v5817_v37 = vsel %vm820_vm1, %v1137_v62, 2147483647 }
 0x22c   :  { %7430 = vst [vmem:[#allocation87_spill] sm:$0xff] %v5814_v46  ;;  %7431 = vst [vmem:[#allocation88_spill] sm:$0xff] %v5817_v37  ;;  %2016 = vmin.xlane.f32.xlu0 %v5812_v6  ;;  %v1012_v58 = vpop.xlane.xlu1 %1011  ;;  %2061 = vmin.xlane.f32.xlu1 %v5814_v46  ;;  %v2043_v33 = vshra.s32 %v5817_v37, 16  ;;  %v1157_v46 = vand.u32 65535, %v5196_v22  ;;  %v1142_v22 = vand.u32 65535, %v5211_v20  ;;  %v7440_v20 = vld [vmem:[#allocation25_spill] sm:$0xff] }
 0x22d   :  { %vm1076_vm8 = vcmp.le.f32.partialorder %v5283_v34, %v1012_v58  ;;  %v5823_v32 = vpop.xlane.xlu0 %1251 }
 0x22e   :  { %v1140_v41 = vsel %vm1076_vm8, %v5186_v19, 32  ;;  %v5826_v18 = vcvt.s32.f32 %v2043_v33  ;;  %vm1253_vm15 = vcmp.eq.f32.partialorder %v5302_v7, %v5823_v32 }
 0x22f   :  { %v5829_v60 = vsel %vm820_vm1, %v1140_v41, 2147483647  ;;  %v7436_v41 = vld [vmem:[#allocation22_spill] sm:$0xff] }
 0x230   :  { %7432 = vst [vmem:[#allocation89_spill] sm:$0xff] %v5826_v18  ;;  %7433 = vst [vmem:[#allocation90_spill] sm:$0xff] %v5829_v60  ;;  %2046 = vmin.xlane.f32.xlu0 %v5826_v18  ;;  %v1009_v62 = vpop.xlane.xlu1 %1008  ;;  %v2088_v6 = vshra.s32 %v5829_v60, 16  ;;  %vm1163_vm10 = vcmp.eq.f32.partialorder %v7436_v41, %v5738_v16  ;;  %v1159_v60 = vcvt.s32.f32 %v1157_v46  ;;  %v7439_v41 = vld [vmem:[#allocation24_spill] sm:$0xff]  ;;  %v1217_v16 = vand.u32 65535, %v7440_v20 }
 0x231   :  { %vm1075_vm9 = vcmp.le.f32.partialorder %v5299_v48, %v1009_v62  ;;  %v5835_v37 = vpop.xlane.xlu0 %1236  ;;  %v1187_v48 = vand.u32 65535, %v5214_v54  ;;  %v1144_v46 = vcvt.s32.f32 %v1142_v22 }
 0x232   :  { %v1139_v34 = vsel %vm1075_vm9, %v5186_v19, 32  ;;  %v5838_v58 = vcvt.s32.f32 %v2088_v6  ;;  %v1164_v6 = vsel %vm1163_vm10, %v1159_v60, inf  ;;  %v7442_v60 = vld [vmem:[#allocation27_spill] sm:$0xff]  ;;  %v1219_v20 = vcvt.s32.f32 %v1217_v16 }
 0x233   :  { %v5841_v33 = vsel %vm820_vm1, %v1139_v34, 2147483647  ;;  %v7438_v34 = vld [vmem:[#allocation23_spill] sm:$0xff]  ;;  %vm1238_vm4 = vcmp.eq.f32.partialorder %v5319_v24, %v5835_v37  ;;  %v102_v24 = vld [vmem:[%s7163_s2 + $0x8] sm:$0xff] }
 0x234   :  { %7434 = vst [vmem:[#allocation91_spill] sm:$0xff] %v5838_v58  ;;  %7435 = vst [vmem:[#allocation92_spill] sm:$0xff] %v5841_v33  ;;  %2091 = vmin.xlane.f32.xlu1 %v5838_v58  ;;  %v2073_v18 = vshra.s32 %v5841_v33, 16  ;;  %vm1148_vm12 = vcmp.eq.f32.partialorder %v7438_v34, %v5754_v14  ;;  %v1172_v58 = vand.u32 65535, %v7439_v41  ;;  %v1189_v33 = vcvt.s32.f32 %v1187_v48  ;;  %v5884_v13 = vpop.xlane.xlu1 %1311 }
 0x235   :  { %v5849_v62 = vpop.xlane.xlu0 %1281  ;;  %v1149_v25 = vsel %vm1148_vm12, %v1144_v46, inf  ;;  %v1247_v34 = vand.u32 65535, %v5275_v11  ;;  %v1224_v48 = vsel %vm1223_vm13, %v1219_v20, inf }
 0x236   :  { %v5851_v19 = vcvt.s32.f32 %v2073_v18  ;;  %v1194_v18 = vsel %vm1193_vm11, %v1189_v33, inf  ;;  %v1277_v33 = vand.u32 65535, %v5309_v26  ;;  %vm1283_vm3 = vcmp.eq.f32.partialorder %v5334_v51, %v5849_v62 }
 0x237   :  { %v1249_v11 = vcvt.s32.f32 %v1247_v34 }
 0x238   :  { %7437 = vst [vmem:[#allocation22_spill] sm:$0xff] %v5851_v19  ;;  %1165 = vmin.xlane.f32.xlu1 %v1164_v6  ;;  %2076 = vmin.xlane.f32.xlu0 %v5851_v19  ;;  %v1202_v6 = vand.u32 65535, %v7442_v60  ;;  %v1174_v19 = vcvt.s32.f32 %v1172_v58  ;;  %v1279_v60 = vcvt.s32.f32 %v1277_v33 }
 0x239   :  { %v5860_v54 = vpop.xlane.xlu0 %1266  ;;  %v1254_v16 = vsel %vm1253_vm15, %v1249_v11, inf }
 0x23a   :  { %v1179_v22 = vsel %vm1178_vm14, %v1174_v19, inf  ;;  %v7444_v19 = vld [vmem:[#allocation29_spill] sm:$0xff]  ;;  %v1284_v34 = vsel %vm1283_vm3, %v1279_v60, inf  ;;  %vm1268_vm5 = vcmp.eq.f32.partialorder %v5348_v29, %v5860_v54  ;;  %v103_v29 = vld [vmem:[%s7163_s2 + $0x10] sm:$0xff] }
 0x23b   :  { %v1307_v7 = vand.u32 65535, %v7444_v19  ;;  %v104_v19 = vld [vmem:[%s7163_s2 + $0x18] sm:$0xff] }
 0x23c   :  { %1195 = vmin.xlane.f32.xlu1 %v1194_v18  ;;  %1150 = vmin.xlane.f32.xlu0 %v1149_v25  ;;  %v1232_v25 = vand.u32 65535, %v5292_v36  ;;  %v1204_v18 = vcvt.s32.f32 %v1202_v6  ;;  %v1262_v36 = vand.u32 65535, %v5326_v52  ;;  %v7445_v52 = vld [vmem:[#allocation31_spill] sm:$0xff] }
 0x23d   :  { %v5868_v41 = vpop.xlane.xlu0 %1296  ;;  %vm1313_vm6 = vcmp.eq.f32.partialorder %v7445_v52, %v5884_v13 }
 0x23e   :  { %v1209_v58 = vsel %vm1208_vm2, %v1204_v18, inf  ;;  %v1234_v6 = vcvt.s32.f32 %v1232_v25  ;;  %v1337_v25 = vand.u32 65535, %v5356_v0  ;;  %v1264_v11 = vcvt.s32.f32 %v1262_v36  ;;  %v7447_v0 = vld [vmem:[#allocation35_spill] sm:$0xff]  ;;  %v7448_v36 = vld [vmem:[#allocation30_spill] sm:$0xff] }
 0x23f   :  { %v1309_v18 = vcvt.s32.f32 %v1307_v7  ;;  %vm1298_vm7 = vcmp.eq.f32.partialorder %v7447_v0, %v5868_v41  ;;  %v4444_v7 = vpack.c.bf16 %v104_v19, %v103_v29  ;;  %v1367_v60 = vand.u32 65535, %v7448_v36  ;;  %v7452_v19 = vld [vmem:[#allocation41_spill] sm:$0xff] }
 0x240   :  { %1225 = vmin.xlane.f32.xlu1 %v1224_v48  ;;  %1180 = vmin.xlane.f32.xlu0 %v1179_v22  ;;  %v1239_v20 = vsel %vm1238_vm4, %v1234_v6, inf  ;;  %v101_v48 = vld [vmem:[%s7163_s2] sm:$0xff]  ;;  %v1322_v6 = vand.u32 65535, %v5368_v42  ;;  %v1382_v0 = vand.u32 65535, %v7452_v19  ;;  %s4772_s2 = smov [#allocation5]  }
 0x241   :  { %v5876_v46 = vpop.xlane.xlu0 %1341  ;;  %v4440_v51 = vpack.c.bf16 %v102_v24, %v101_v48  ;;  %v7446_v22 = vld [vmem:[#allocation32_spill] sm:$0xff]  ;;  %v1339_v24 = vcvt.s32.f32 %v1337_v25  ;;  %v1369_v25 = vcvt.s32.f32 %v1367_v60  ;;  %s3617_s22 = sshll.u32 %s4772_s2, 4  ;;  %s3618_s22 = int_to_ptr.vmem [resolvable:$true] %s3617_s22 }
 0x242   :  { %v1292_v15 = vand.u32 65535, %v7446_v22  ;;  %vm1343_vm8 = vcmp.eq.f32.partialorder %v5376_v8, %v5876_v46  ;;  %v7449_v8 = vld [vmem:[#allocation33_spill] sm:$0xff]  ;;  %v7450_v22 = vld [vmem:[#allocation38_spill] sm:$0xff]  ;;  %s4741_s23 = scalar_lea.vmem %s3618_s22, 8192  ;;  %p4746_p9 = scmp.lt.s32.totalorder %s3618_s22, %s3618_s22 }
 0x243   :  { %4441 = vmatprep.subr.bf16.mxu1 %v4440_v51  ;;  %v1352_v42 = vand.u32 65535, %v7450_v22  ;;  %p4742_p8 = scmp.ne.s32.totalorder %s3618_s22, %s4741_s23  ;;  %p4747_p10 = scmp.lt.s32.totalorder %s4741_s23, %s4741_s23 }
 0x244   :  { %1255 = vmin.xlane.f32.xlu1 %v1254_v16  ;;  %1210 = vmin.xlane.f32.xlu0 %v1209_v58  ;;  %v1269_v16 = vsel %vm1268_vm5, %v1264_v11, inf  ;;  %v1314_v58 = vsel %vm1313_vm6, %v1309_v18, inf  ;;  %v1294_v48 = vcvt.s32.f32 %v1292_v15  ;;  %v1397_v11 = vand.u32 65535, %v5397_v9 }
 0x245   :  { %v5886_v26 = vpop.xlane.xlu0 %1326  ;;  %4443 = vmatpush3.bf16.msra.mxu1 %v4440_v51  ;;  %v1344_v51 = vsel %vm1343_vm8, %v1339_v24, inf  ;;  %v1324_v15 = vcvt.s32.f32 %v1322_v6  ;;  %v1354_v36 = vcvt.s32.f32 %v1352_v42  ;;  %p4748_p11 = por %p4747_p10, %p4746_p9 }
 0x246   :  { %4445 = vmatprep.subr.bf16.mxu1 %v4444_v7  ;;  %v1299_v52 = vsel %vm1298_vm7, %v1294_v48, inf  ;;  %vm1328_vm9 = vcmp.eq.f32.partialorder %v5391_v1, %v5886_v26  ;;  %v7451_v1 = vld [vmem:[#allocation34_spill] sm:$0xff]  ;;  %v1399_v60 = vcvt.s32.f32 %v1397_v11 }
 0x247   :  { %v1427_v29 = vand.u32 65535, %v7451_v1  ;;  %p4749_p12 = pnand %p4748_p11, %p4742_p8 }
 0x248   :  { %1285 = vmin.xlane.f32.xlu1 %v1284_v34  ;;  %1240 = vmin.xlane.f32.xlu0 %v1239_v20  ;;  %v5914_v34 = vpop.xlane.xlu1 %1371 }
 0x249   :  { %v5900_v33 = vpop.xlane.xlu0 %1356  ;;  %4447 = vmatpush3.bf16.msra.mxu1 %v4444_v7  ;;  %vm1373_vm10 = vcmp.eq.f32.partialorder %v7449_v8, %v5914_v34  ;;  %v1384_v8 = vcvt.s32.f32 %v1382_v0  ;;  %v1429_v22 = vcvt.s32.f32 %v1427_v29 }
 0x24a   :  { %vm1358_vm11 = vcmp.eq.f32.partialorder %v5405_v56, %v5900_v33  ;;  %v7453_v56 = vld [vmem:[#allocation36_spill] sm:$0xff] }
 0x24b   :  { %v1359_v6 = vsel %vm1358_vm11, %v1354_v36, inf  ;;  %v7457_v36 = vld [vmem:[#allocation39_spill] sm:$0xff] }
 0x24c   :  { %1270 = vmin.xlane.f32.xlu0 %v1269_v16  ;;  %1315 = vmin.xlane.f32.xlu1 %v1314_v58  ;;  %v1329_v16 = vsel %vm1328_vm9, %v1324_v15, inf  ;;  %v1374_v58 = vsel %vm1373_vm10, %v1369_v25, inf  ;;  %v5932_v7 = vpop.xlane.xlu1 %1431  ;;  %v7456_v25 = vld [vmem:[#allocation46_spill] sm:$0xff] }
 0x24d   :  { %v5916_v20 = vpop.xlane.xlu0 %1401  ;;  %vm1433_vm14 = vcmp.eq.f32.partialorder %v7453_v56, %v5932_v7 }
 0x24e   :  { %vm1403_vm12 = vcmp.eq.f32.partialorder %v5420_v63, %v5916_v20  ;;  %v7454_v63 = vld [vmem:[#allocation43_spill] sm:$0xff]  ;;  %v1434_v11 = vsel %vm1433_vm14, %v1429_v22, inf  ;;  %v1502_v22 = vand.u32 65535, %v5500_v53 }
 0x24f   :  { %v1404_v48 = vsel %vm1403_vm12, %v1399_v60, inf  ;;  %v1412_v24 = vand.u32 65535, %v7454_v63  ;;  %v1517_v60 = vand.u32 65535, %v5485_v2 }
 0x250   :  { %1300 = vmin.xlane.f32.xlu0 %v1299_v52  ;;  %1345 = vmin.xlane.f32.xlu1 %v1344_v51  ;;  %v1457_v52 = vand.u32 65535, %v5441_v40  ;;  %v1504_v53 = vcvt.s32.f32 %v1502_v22 }
 0x251   :  { %v5924_v18 = vpop.xlane.xlu0 %1386  ;;  %v1414_v1 = vcvt.s32.f32 %v1412_v24 }
 0x252   :  { %vm1388_vm13 = vcmp.eq.f32.partialorder %v5434_v5, %v5924_v18  ;;  %v7455_v5 = vld [vmem:[#allocation37_spill] sm:$0xff]  ;;  %v1459_v29 = vcvt.s32.f32 %v1457_v52  ;;  %v7459_v52 = vld [vmem:[#allocation40_spill] sm:$0xff] }
 0x253   :  { %v1389_v42 = vsel %vm1388_vm13, %v1384_v8, inf  ;;  %v1487_v15 = vand.u32 65535, %v7455_v5  ;;  %v1547_v8 = vand.u32 65535, %v7459_v52  ;;  %v7460_v5 = vld [vmem:[#allocation51_spill] sm:$0xff]  ;;  %v7463_v52 = vld [vmem:[#allocation56_spill] sm:$0xff] }
 0x254   :  { %1330 = vmin.xlane.f32.xlu0 %v1329_v16  ;;  %1375 = vmin.xlane.f32.xlu1 %v1374_v58  ;;  %v1442_v16 = vand.u32 65535, %v7456_v25  ;;  %v5950_v58 = vpop.xlane.xlu1 %1491 }
 0x255   :  { %v5934_v9 = vpop.xlane.xlu0 %1416  ;;  %vm1493_vm3 = vcmp.eq.f32.partialorder %v7457_v36, %v5950_v58  ;;  %v1489_v56 = vcvt.s32.f32 %v1487_v15  ;;  %v1577_v36 = vand.u32 65535, %v5533_v27 }
 0x256   :  { %vm1418_vm15 = vcmp.eq.f32.partialorder %v5449_v28, %v5934_v9  ;;  %v7458_v28 = vld [vmem:[#allocation48_spill] sm:$0xff] }
 0x257   :  { %v1419_v19 = vsel %vm1418_vm15, %v1414_v1, inf  ;;  %v1494_v24 = vsel %vm1493_vm3, %v1489_v56, inf }
 0x258   :  { %1360 = vmin.xlane.f32.xlu0 %v1359_v6  ;;  %1405 = vmin.xlane.f32.xlu1 %v1404_v48  ;;  %v1444_v48 = vcvt.s32.f32 %v1442_v16  ;;  %v7461_v16 = vld [vmem:[#allocation42_spill] sm:$0xff] }
 0x259   :  { %v5942_v51 = vpop.xlane.xlu0 %1461 }
 0x25a   :  { %vm1463_vm2 = vcmp.eq.f32.partialorder %v5464_v31, %v5942_v51  ;;  %v1472_v31 = vand.u32 65535, %v7458_v28 }
 0x25b   :  { %v1464_v0 = vsel %vm1463_vm2, %v1459_v29, inf  ;;  %v1549_v29 = vcvt.s32.f32 %v1547_v8  ;;  %v7464_v8 = vld [vmem:[#allocation45_spill] sm:$0xff] }
 0x25c   :  { %1390 = vmin.xlane.f32.xlu0 %v1389_v42  ;;  %1435 = vmin.xlane.f32.xlu1 %v1434_v11  ;;  %v1474_v2 = vcvt.s32.f32 %v1472_v31  ;;  %v1519_v11 = vcvt.s32.f32 %v1517_v60  ;;  %v1562_v60 = vand.u32 65535, %v5548_v47 }
 0x25d   :  { %v5952_v40 = vpop.xlane.xlu0 %1446 }
 0x25e   :  { %vm1448_vm4 = vcmp.eq.f32.partialorder %v5479_v50, %v5952_v40  ;;  %v5966_v50 = vpop.xlane.xlu1 %1551  ;;  %v1564_v47 = vcvt.s32.f32 %v1562_v60  ;;  %v7469_v60 = vld [vmem:[#allocation47_spill] sm:$0xff] }
 0x25f   :  { %v1449_v63 = vsel %vm1448_vm4, %v1444_v48, inf  ;;  %vm1553_vm7 = vcmp.eq.f32.partialorder %v7461_v16, %v5966_v50 }
 0x260   :  { %1420 = vmin.xlane.f32.xlu0 %v1419_v19  ;;  %1465 = vmin.xlane.f32.xlu1 %v1464_v0  ;;  %v1554_v0 = vsel %vm1553_vm7, %v1549_v29, inf  ;;  %v7467_v29 = vld [vmem:[#allocation61_spill] sm:$0xff] }
 0x261   :  { %v5960_v6 = vpop.xlane.xlu0 %1476 }
 0x262   :  { %vm1478_vm5 = vcmp.eq.f32.partialorder %v5493_v21, %v5960_v6  ;;  %v1532_v21 = vand.u32 65535, %v5518_v4  ;;  %v5985_v48 = vpop.xlane.xlu1 %1611 }
 0x263   :  { %v1479_v15 = vsel %vm1478_vm5, %v1474_v2, inf  ;;  %vm1613_vm11 = vcmp.eq.f32.partialorder %v7464_v8, %v5985_v48 }
 0x264   :  { %1450 = vmin.xlane.f32.xlu0 %v1449_v63  ;;  %1495 = vmin.xlane.f32.xlu1 %v1494_v24  ;;  %v1534_v31 = vcvt.s32.f32 %v1532_v21  ;;  %v7462_v63 = vld [vmem:[#allocation44_spill] sm:$0xff] }
 0x265   :  { %v5968_v42 = vpop.xlane.xlu0 %1521  ;;  %v1607_v24 = vand.u32 65535, %v7462_v63  ;;  %v7470_v63 = vld [vmem:[#allocation8_spill] sm:$0xff] }
 0x266   :  { %vm1523_vm6 = vcmp.eq.f32.partialorder %v7460_v5, %v5968_v42 }
 0x267   :  { %v1524_v25 = vsel %vm1523_vm6, %v1519_v11, inf  ;;  %v1609_v2 = vcvt.s32.f32 %v1607_v24  ;;  %v7465_v11 = vld [vmem:[#allocation58_spill] sm:$0xff] }
 0x268   :  { %1480 = vmin.xlane.f32.xlu0 %v1479_v15  ;;  %1525 = vmin.xlane.f32.xlu1 %v1524_v25  ;;  %v7466_v25 = vld [vmem:[#allocation60_spill] sm:$0xff] }
 0x269   :  { %v5975_v1 = vpop.xlane.xlu0 %1506  ;;  %v1614_v15 = vsel %vm1613_vm11, %v1609_v2, inf  ;;  %v1637_v16 = vand.u32 65535, %v7466_v25 }
 0x26a   :  { %vm1508_vm8 = vcmp.eq.f32.partialorder %v5527_v10, %v5975_v1  ;;  %v1579_v10 = vcvt.s32.f32 %v1577_v36  ;;  %v6005_v36 = vpop.xlane.xlu1 %1671 }
 0x26b   :  { %v1509_v19 = vsel %vm1508_vm8, %v1504_v53, inf }
 0x26c   :  { %1510 = vmin.xlane.f32.xlu0 %v1509_v19  ;;  %1555 = vmin.xlane.f32.xlu1 %v1554_v0  ;;  %v7468_v19 = vld [vmem:[#allocation63_spill] sm:$0xff] }
 0x26d   :  { %v5980_v28 = vpop.xlane.xlu0 %1536  ;;  %v1622_v0 = vand.u32 65535, %v7468_v19 }
 0x26e   :  { %vm1538_vm9 = vcmp.eq.f32.partialorder %v5541_v35, %v5980_v28  ;;  %v1592_v35 = vand.u32 65535, %v5563_v12 }
 0x26f   :  { %v1539_v4 = vsel %vm1538_vm9, %v1534_v31, inf }
 0x270   :  { %1540 = vmin.xlane.f32.xlu0 %v1539_v4  ;;  %v1594_v53 = vcvt.s32.f32 %v1592_v35  ;;  %v1639_v4 = vcvt.s32.f32 %v1637_v16 }
 0x271   :  { %v5987_v56 = vpop.xlane.xlu0 %1581 }
 0x272   :  { %vm1583_vm10 = vcmp.eq.f32.partialorder %v7463_v52, %v5987_v56  ;;  %v7471_v52 = vld [vmem:[#allocation49_spill] sm:$0xff] }
 0x273   :  { %v1584_v27 = vsel %vm1583_vm10, %v1579_v10, inf  ;;  %v1667_v10 = vand.u32 65535, %v7469_v60  ;;  %vm1673_vm15 = vcmp.eq.f32.partialorder %v7471_v52, %v6005_v36  ;;  %v1682_v60 = vand.u32 65535, %v5632_v43 }
 0x274   :  { %1585 = vmin.xlane.f32.xlu1 %v1584_v27  ;;  %v7472_v27 = vld [vmem:[#allocation64_spill] sm:$0xff] }
 0x275   :  { %v5995_v22 = vpop.xlane.xlu0 %1566  ;;  %v1652_v8 = vand.u32 65535, %v7472_v27  ;;  %v1669_v2 = vcvt.s32.f32 %v1667_v10  ;;  %v7475_v10 = vld [vmem:[#allocation50_spill] sm:$0xff] }
 0x276   :  { %vm1568_vm12 = vcmp.eq.f32.partialorder %v7465_v11, %v5995_v22  ;;  %v7473_v11 = vld [vmem:[#allocation9_spill] sm:$0xff] }
 0x277   :  { %v1569_v5 = vsel %vm1568_vm12, %v1564_v47, inf  ;;  %v1624_v47 = vcvt.s32.f32 %v1622_v0  ;;  %v1654_v16 = vcvt.s32.f32 %v1652_v8 }
 0x278   :  { %1570 = vmin.xlane.f32.xlu0 %v1569_v5  ;;  %1615 = vmin.xlane.f32.xlu1 %v1614_v15  ;;  %v1674_v15 = vsel %vm1673_vm15, %v1669_v2, inf }
 0x279   :  { %v6000_v21 = vpop.xlane.xlu0 %1596 }
 0x27a   :  { %vm1598_vm13 = vcmp.eq.f32.partialorder %v7467_v29, %v6000_v21  ;;  %v7474_v29 = vld [vmem:[#allocation10_spill] sm:$0xff] }
 0x27b   :  { %v1599_v12 = vsel %vm1598_vm13, %v1594_v53, inf  ;;  %v1697_v53 = vand.u32 65535, %v5620_v61  ;;  %v7477_v61 = vld [vmem:[#allocation52_spill] sm:$0xff] }
 0x27c   :  { %1600 = vmin.xlane.f32.xlu0 %v1599_v12  ;;  %v6024_v12 = vpop.xlane.xlu1 %1731 }
 0x27d   :  { %v6007_v31 = vpop.xlane.xlu0 %1641  ;;  %vm1733_vm5 = vcmp.eq.f32.partialorder %v7477_v61, %v6024_v12 }
 0x27e   :  { %vm1643_vm14 = vcmp.eq.f32.partialorder %v7470_v63, %v6007_v31  ;;  %v1727_v63 = vand.u32 65535, %v7475_v10 }
 0x27f   :  { %v1644_v24 = vsel %vm1643_vm14, %v1639_v4, inf  ;;  %v1699_v4 = vcvt.s32.f32 %v1697_v53 }
 0x280   :  { %1645 = vmin.xlane.f32.xlu1 %v1644_v24  ;;  %v7476_v24 = vld [vmem:[#allocation11_spill] sm:$0xff]  ;;  %v6034_v27 = vpop.xlane.xlu1 %1761  ;;  %v1729_v2 = vcvt.s32.f32 %v1727_v63 }
 0x281   :  { %v6015_v35 = vpop.xlane.xlu0 %1626  ;;  %v7481_v63 = vld [vmem:[#allocation55_spill] sm:$0xff] }
 0x282   :  { %vm1628_vm2 = vcmp.eq.f32.partialorder %v7473_v11, %v6015_v35  ;;  %v1712_v11 = vand.u32 65535, %v5648_v49  ;;  %v1734_v53 = vsel %vm1733_vm5, %v1729_v2, inf  ;;  %v1742_v49 = vand.u32 65535, %v5661_v23  ;;  %v7483_v2 = vld [vmem:[#allocation57_spill] sm:$0xff] }
 0x283   :  { %v1629_v5 = vsel %vm1628_vm2, %v1624_v47, inf  ;;  %v1684_v47 = vcvt.s32.f32 %v1682_v60 }
 0x284   :  { %1630 = vmin.xlane.f32.xlu0 %v1629_v5  ;;  %1675 = vmin.xlane.f32.xlu1 %v1674_v15  ;;  %v7478_v5 = vld [vmem:[#allocation53_spill] sm:$0xff]  ;;  %v7479_v15 = vld [vmem:[#allocation12_spill] sm:$0xff]  ;;  %v1714_v60 = vcvt.s32.f32 %v1712_v11  ;;  %v1744_v11 = vcvt.s32.f32 %v1742_v49 }
 0x285   :  { %v6019_v25 = vpop.xlane.xlu0 %1656  ;;  %v1757_v43 = vand.u32 65535, %v7478_v5 }
 0x286   :  { %vm1658_vm3 = vcmp.eq.f32.partialorder %v7474_v29, %v6019_v25  ;;  %v7480_v29 = vld [vmem:[#allocation54_spill] sm:$0xff] }
 0x287   :  { %v1659_v19 = vsel %vm1658_vm3, %v1654_v16, inf  ;;  %vm1763_vm7 = vcmp.eq.f32.partialorder %v7480_v29, %v6034_v27  ;;  %v1759_v10 = vcvt.s32.f32 %v1757_v43 }
 0x288   :  { %1660 = vmin.xlane.f32.xlu0 %v1659_v19  ;;  %v6044_v19 = vpop.xlane.xlu1 %1791 }
 0x289   :  { %v6026_v0 = vpop.xlane.xlu0 %1701  ;;  %vm1793_vm9 = vcmp.eq.f32.partialorder %v7483_v2, %v6044_v19  ;;  %v1802_v2 = vand.u32 65535, %v5689_v55 }
 0x28a   :  { %vm1703_vm4 = vcmp.eq.f32.partialorder %v7476_v24, %v6026_v0  ;;  %v1787_v24 = vand.u32 65535, %v7481_v63  ;;  %v7488_v63 = vld [vmem:[#allocation15_spill] sm:$0xff] }
 0x28b   :  { %v1704_v52 = vsel %vm1703_vm4, %v1699_v4, inf }
 0x28c   :  { %1705 = vmin.xlane.f32.xlu1 %v1704_v52  ;;  %v7482_v52 = vld [vmem:[#allocation13_spill] sm:$0xff]  ;;  %v6054_v5 = vpop.xlane.xlu1 %1821  ;;  %v1789_v43 = vcvt.s32.f32 %v1787_v24 }
 0x28d   :  { %v6036_v8 = vpop.xlane.xlu0 %1686  ;;  %7484 = vst [vmem:[#allocation23_spill] sm:$0xff] %v6054_v5 }
 0x28e   :  { %vm1688_vm6 = vcmp.eq.f32.partialorder %v7479_v15, %v6036_v8 }
 0x28f   :  { %v1689_v16 = vsel %vm1688_vm6, %v1684_v47, inf  ;;  %v1764_v47 = vsel %vm1763_vm7, %v1759_v10, inf  ;;  %v1794_v10 = vsel %vm1793_vm9, %v1789_v43, inf }
 0x290   :  { %1690 = vmin.xlane.f32.xlu0 %v1689_v16  ;;  %1735 = vmin.xlane.f32.xlu1 %v1734_v53  ;;  %v7486_v16 = vld [vmem:[#allocation69_spill] sm:$0xff]  ;;  %v7487_v53 = vld [vmem:[#allocation59_spill] sm:$0xff] }
 0x291   :  { %v6046_v4 = vpop.xlane.xlu0 %1716  ;;  %v1772_v23 = vand.u32 65535, %v7486_v16  ;;  %v1817_v29 = vand.u32 65535, %v7487_v53  ;;  %v7490_v16 = vld [vmem:[#allocation14_spill] sm:$0xff] }
 0x292   :  { %vm1718_vm8 = vcmp.eq.f32.partialorder %v7482_v52, %v6046_v4  ;;  %v7489_v52 = vld [vmem:[#allocation62_spill] sm:$0xff]  ;;  %v1847_v53 = vand.u32 65535, %v7490_v16 }
 0x293   :  { %v1719_v61 = vsel %vm1718_vm8, %v1714_v60, inf  ;;  %vm1823_vm11 = vcmp.eq.f32.partialorder %v7489_v52, %v6054_v5  ;;  %v1774_v49 = vcvt.s32.f32 %v1772_v23  ;;  %v1819_v24 = vcvt.s32.f32 %v1817_v29  ;;  %v7494_v52 = vld [vmem:[#allocation71_spill] sm:$0xff]  ;;  %v7495_v5 = vld [vmem:[#allocation16_spill] sm:$0xff] }
 0x294   :  { %1720 = vmin.xlane.f32.xlu0 %v1719_v61  ;;  %1765 = vmin.xlane.f32.xlu1 %v1764_v47  ;;  %v6064_v61 = vpop.xlane.xlu1 %1851  ;;  %v1804_v23 = vcvt.s32.f32 %v1802_v2  ;;  %v1849_v29 = vcvt.s32.f32 %v1847_v53  ;;  %v1832_v55 = vand.u32 65535, %v7494_v52  ;;  %v1877_v16 = vand.u32 65535, %v7495_v5  ;;  %v7499_v52 = vld [vmem:[#allocation67_spill] sm:$0xff] }
 0x295   :  { %v6056_v15 = vpop.xlane.xlu0 %1746  ;;  %v1824_v43 = vsel %vm1823_vm11, %v1819_v24, inf  ;;  %v7497_v24 = vld [vmem:[#allocation66_spill] sm:$0xff]  ;;  %v1907_v5 = vand.u32 65535, %v7499_v52 }
 0x296   :  { %7485 = vst [vmem:[#allocation24_spill] sm:$0xff] %v6056_v15  ;;  %vm1748_vm10 = vcmp.eq.f32.partialorder %v7488_v63, %v6056_v15  ;;  %v7491_v63 = vld [vmem:[#allocation65_spill] sm:$0xff]  ;;  %v7496_v15 = vld [vmem:[#allocation18_spill] sm:$0xff]  ;;  %v1834_v2 = vcvt.s32.f32 %v1832_v55  ;;  %v1879_v53 = vcvt.s32.f32 %v1877_v16 }
 0x297   :  { %v1749_v60 = vsel %vm1748_vm10, %v1744_v11, inf  ;;  %vm1853_vm13 = vcmp.eq.f32.partialorder %v7491_v63, %v6064_v61  ;;  %v1862_v63 = vand.u32 65535, %v5716_v30  ;;  %v1909_v16 = vcvt.s32.f32 %v1907_v5 }
 0x298   :  { %1750 = vmin.xlane.f32.xlu0 %v1749_v60  ;;  %1795 = vmin.xlane.f32.xlu1 %v1794_v10  ;;  %v6074_v60 = vpop.xlane.xlu1 %1881 }
 0x299   :  { %v6066_v47 = vpop.xlane.xlu0 %1776  ;;  %7492 = vst [vmem:[#allocation25_spill] sm:$0xff] %v6074_v60  ;;  %vm1883_vm15 = vcmp.eq.f32.partialorder %v7497_v24, %v6074_v60  ;;  %v1864_v55 = vcvt.s32.f32 %v1862_v63  ;;  %v7503_v24 = vld [vmem:[#allocation73_spill] sm:$0xff]  ;;  %v7504_v60 = vld [vmem:[#allocation70_spill] sm:$0xff] }
 0x29a   :  { %vm1778_vm12 = vcmp.eq.f32.partialorder %v5698_v45, %v6066_v47  ;;  %v1892_v30 = vand.u32 65535, %v7503_v24  ;;  %v1937_v52 = vand.u32 65535, %v7504_v60  ;;  %v7509_v24 = vld [vmem:[#allocation72_spill] sm:$0xff] }
 0x29b   :  { %v1779_v11 = vsel %vm1778_vm12, %v1774_v49, inf  ;;  %v1854_v49 = vsel %vm1853_vm13, %v1849_v29, inf  ;;  %v7500_v29 = vld [vmem:[#allocation68_spill] sm:$0xff]  ;;  %v1967_v60 = vand.u32 65535, %v7509_v24 }
 0x29c   :  { %1780 = vmin.xlane.f32.xlu0 %v1779_v11  ;;  %1825 = vmin.xlane.f32.xlu1 %v1824_v43  ;;  %v6084_v11 = vpop.xlane.xlu1 %1911  ;;  %v1894_v63 = vcvt.s32.f32 %v1892_v30  ;;  %v1939_v5 = vcvt.s32.f32 %v1937_v52 }
 0x29d   :  { %v6076_v10 = vpop.xlane.xlu0 %1806  ;;  %7498 = vst [vmem:[#allocation27_spill] sm:$0xff] %v6084_v11  ;;  %vm1913_vm3 = vcmp.eq.f32.partialorder %v7500_v29, %v6084_v11  ;;  %v1922_v29 = vand.u32 65535, %v5745_v39  ;;  %v7510_v11 = vld [vmem:[#allocation76_spill] sm:$0xff]  ;;  %v1969_v52 = vcvt.s32.f32 %v1967_v60 }
 0x29e   :  { %7493 = vst [vmem:[#allocation26_spill] sm:$0xff] %v6076_v10  ;;  %vm1808_vm14 = vcmp.eq.f32.partialorder %v7496_v15, %v6076_v10  ;;  %v7505_v10 = vld [vmem:[#allocation74_spill] sm:$0xff] }
 0x29f   :  { %v1809_v45 = vsel %vm1808_vm14, %v1804_v23, inf  ;;  %v1884_v23 = vsel %vm1883_vm15, %v1879_v53, inf  ;;  %v7506_v53 = vld [vmem:[#allocation17_spill] sm:$0xff]  ;;  %v1924_v30 = vcvt.s32.f32 %v1922_v29 }
 0x2a0   :  { %1810 = vmin.xlane.f32.xlu0 %v1809_v45  ;;  %1855 = vmin.xlane.f32.xlu1 %v1854_v49  ;;  %v6094_v45 = vpop.xlane.xlu1 %1941 }
 0x2a1   :  { %v6086_v43 = vpop.xlane.xlu0 %1836  ;;  %7501 = vst [vmem:[#allocation28_spill] sm:$0xff] %v6094_v45  ;;  %vm1943_vm5 = vcmp.eq.f32.partialorder %v7506_v53, %v6094_v45  ;;  %v7514_v53 = vld [vmem:[#allocation78_spill] sm:$0xff]  ;;  %v7515_v45 = vld [vmem:[#allocation75_spill] sm:$0xff] }
 0x2a2   :  { %vm1838_vm2 = vcmp.eq.f32.partialorder %v5725_v57, %v6086_v43  ;;  %v1952_v39 = vand.u32 65535, %v7514_v53  ;;  %v1997_v24 = vand.u32 65535, %v7515_v45  ;;  %v7520_v53 = vld [vmem:[#allocation80_spill] sm:$0xff] }
 0x2a3   :  { %v1839_v15 = vsel %vm1838_vm2, %v1834_v2, inf  ;;  %v1914_v2 = vsel %vm1913_vm3, %v1909_v16, inf  ;;  %v7511_v16 = vld [vmem:[#allocation19_spill] sm:$0xff]  ;;  %v2027_v45 = vand.u32 65535, %v7520_v53  ;;  %v7526_v53 = vld [vmem:[#allocation84_spill] sm:$0xff] }
 0x2a4   :  { %1840 = vmin.xlane.f32.xlu0 %v1839_v15  ;;  %1885 = vmin.xlane.f32.xlu1 %v1884_v23  ;;  %v6104_v15 = vpop.xlane.xlu1 %1971  ;;  %v1954_v29 = vcvt.s32.f32 %v1952_v39  ;;  %v1999_v60 = vcvt.s32.f32 %v1997_v24  ;;  %v7524_v39 = vld [vmem:[#allocation83_spill] sm:$0xff] }
 0x2a5   :  { %v6096_v49 = vpop.xlane.xlu0 %1866  ;;  %7507 = vst [vmem:[#allocation31_spill] sm:$0xff] %v6104_v15  ;;  %vm1973_vm7 = vcmp.eq.f32.partialorder %v7511_v16, %v6104_v15  ;;  %v1982_v16 = vand.u32 65535, %v5775_v38  ;;  %v7521_v15 = vld [vmem:[#allocation81_spill] sm:$0xff]  ;;  %v2012_v24 = vand.u32 65535, %v7524_v39 }
 0x2a6   :  { %7502 = vst [vmem:[#allocation29_spill] sm:$0xff] %v6096_v49  ;;  %vm1868_vm4 = vcmp.eq.f32.partialorder %v7505_v10, %v6096_v49  ;;  %v7516_v49 = vld [vmem:[#allocation79_spill] sm:$0xff] }
 0x2a7   :  { %v1869_v57 = vsel %vm1868_vm4, %v1864_v55, inf  ;;  %v1944_v55 = vsel %vm1943_vm5, %v1939_v5, inf  ;;  %v7517_v5 = vld [vmem:[#allocation77_spill] sm:$0xff] }
 0x2a8   :  { %1870 = vmin.xlane.f32.xlu0 %v1869_v57  ;;  %1915 = vmin.xlane.f32.xlu1 %v1914_v2 }
 0x2a9   :  { %v6106_v23 = vpop.xlane.xlu0 %1896  ;;  %v6114_v57 = vpop.xlane.xlu1 %2001 }
 0x2aa   :  { %7508 = vst [vmem:[#allocation32_spill] sm:$0xff] %v6106_v23  ;;  %vm1898_vm6 = vcmp.eq.f32.partialorder %v7510_v11, %v6106_v23  ;;  %7512 = vst [vmem:[#allocation35_spill] sm:$0xff] %v6114_v57  ;;  %vm2003_vm9 = vcmp.eq.f32.partialorder %v7517_v5, %v6114_v57  ;;  %v2029_v5 = vcvt.s32.f32 %v2027_v45  ;;  %v7525_v57 = vld [vmem:[#allocation85_spill] sm:$0xff]  ;;  %v7530_v45 = vld [vmem:[#allocation86_spill] sm:$0xff] }
 0x2ab   :  { %v1899_v10 = vsel %vm1898_vm6, %v1894_v63, inf  ;;  %v1974_v63 = vsel %vm1973_vm7, %v1969_v52, inf  ;;  %v7522_v52 = vld [vmem:[#allocation82_spill] sm:$0xff]  ;;  %v2057_v38 = vand.u32 65535, %v7525_v57  ;;  %v7531_v57 = vld [vmem:[#allocation87_spill] sm:$0xff] }
 0x2ac   :  { %1900 = vmin.xlane.f32.xlu0 %v1899_v10  ;;  %1945 = vmin.xlane.f32.xlu1 %v1944_v55 }
 0x2ad   :  { %v6116_v2 = vpop.xlane.xlu0 %1926 }
 0x2ae   :  { %7513 = vst [vmem:[#allocation30_spill] sm:$0xff] %v6116_v2  ;;  %vm1928_vm8 = vcmp.eq.f32.partialorder %v7516_v49, %v6116_v2 }
 0x2af   :  { %v1929_v11 = vsel %vm1928_vm8, %v1924_v30, inf  ;;  %v2004_v30 = vsel %vm2003_vm9, %v1999_v60, inf }
 0x2b0   :  { %1930 = vmin.xlane.f32.xlu0 %v1929_v11  ;;  %1975 = vmin.xlane.f32.xlu1 %v1974_v63  ;;  %v1984_v63 = vcvt.s32.f32 %v1982_v16 }
 0x2b1   :  { %v6124_v10 = vpop.xlane.xlu0 %1956  ;;  %v6126_v55 = vpop.xlane.xlu1 %2031 }
 0x2b2   :  { %7518 = vst [vmem:[#allocation33_spill] sm:$0xff] %v6124_v10  ;;  %7519 = vst [vmem:[#allocation38_spill] sm:$0xff] %v6126_v55  ;;  %vm1958_vm10 = vcmp.eq.f32.partialorder %v7521_v15, %v6124_v10  ;;  %vm2033_vm11 = vcmp.eq.f32.partialorder %v7522_v52, %v6126_v55  ;;  %v7529_v52 = vld [vmem:[#allocation88_spill] sm:$0xff] }
 0x2b3   :  { %v1959_v49 = vsel %vm1958_vm10, %v1954_v29, inf  ;;  %v2034_v15 = vsel %vm2033_vm11, %v2029_v5, inf  ;;  %v2042_v16 = vand.u32 65535, %v7529_v52  ;;  %v7533_v5 = vld [vmem:[#allocation90_spill] sm:$0xff] }
 0x2b4   :  { %1960 = vmin.xlane.f32.xlu0 %v1959_v49  ;;  %2005 = vmin.xlane.f32.xlu1 %v2004_v30  ;;  %v2014_v49 = vcvt.s32.f32 %v2012_v24  ;;  %v2059_v30 = vcvt.s32.f32 %v2057_v38  ;;  %v7534_v24 = vld [vmem:[#allocation89_spill] sm:$0xff] }
 0x2b5   :  { %v6134_v11 = vpop.xlane.xlu0 %1986 }
 0x2b6   :  { %7523 = vst [vmem:[#allocation34_spill] sm:$0xff] %v6134_v11  ;;  %vm1988_vm12 = vcmp.eq.f32.partialorder %v7526_v53, %v6134_v11 }
 0x2b7   :  { %v1989_v2 = vsel %vm1988_vm12, %v1984_v63, inf  ;;  %v2044_v63 = vcvt.s32.f32 %v2042_v16  ;;  %v1153_v16 = vcvt.f32.s32 %v5754_v14 }
 0x2b8   :  { %1990 = vmin.xlane.f32.xlu0 %v1989_v2  ;;  %2035 = vmin.xlane.f32.xlu1 %v2034_v15  ;;  %v2087_v15 = vand.u32 65535, %v7533_v5 }
 0x2b9   :  { %v6140_v29 = vpop.xlane.xlu0 %2016  ;;  %v6142_v60 = vpop.xlane.xlu1 %2061 }
 0x2ba   :  { %7527 = vst [vmem:[#allocation41_spill] sm:$0xff] %v6140_v29  ;;  %7528 = vst [vmem:[#allocation36_spill] sm:$0xff] %v6142_v60  ;;  %vm2018_vm13 = vcmp.eq.f32.partialorder %v7530_v45, %v6140_v29  ;;  %vm2063_vm14 = vcmp.eq.f32.partialorder %v7531_v57, %v6142_v60  ;;  %v2089_v45 = vcvt.s32.f32 %v2087_v15  ;;  %v7536_v29 = vld [vmem:[#allocation92_spill] sm:$0xff]  ;;  %v7539_v15 = vld [vmem:[#allocation22_spill] sm:$0xff]  ;;  %v1154_v60 = vshll.u32 %v1153_v16, 16 }
 0x2bb   :  { %v2019_v39 = vsel %vm2018_vm13, %v2014_v49, inf  ;;  %v2064_v53 = vsel %vm2063_vm14, %v2059_v30, inf  ;;  %v2072_v11 = vand.u32 65535, %v7536_v29  ;;  %v7537_v57 = vld [vmem:[#allocation20_spill] sm:$0xff]  ;;  %v7538_v30 = vld [vmem:[#allocation91_spill] sm:$0xff] }
 0x2bc   :  { %2020 = vmin.xlane.f32.xlu0 %v2019_v39  ;;  %2065 = vmin.xlane.f32.xlu1 %v2064_v53  ;;  %v1168_v49 = vcvt.f32.s32 %v7537_v57 }
 0x2bd   :  { %v6149_v2 = vpop.xlane.xlu0 %2046 }
 0x2be   :  { %7532 = vst [vmem:[#allocation43_spill] sm:$0xff] %v6149_v2  ;;  %vm2048_vm15 = vcmp.eq.f32.partialorder %v7534_v24, %v6149_v2  ;;  %v2074_v24 = vcvt.s32.f32 %v2072_v11 }
 0x2bf   :  { %v2049_v38 = vsel %vm2048_vm15, %v2044_v63, inf  ;;  %v1169_v63 = vshll.u32 %v1168_v49, 16 }
 0x2c0   :  { %2050 = vmin.xlane.f32.xlu0 %v2049_v38  ;;  %v1198_v38 = vcvt.f32.s32 %v5768_v59  ;;  %v7540_v59 = vld [vmem:[#allocation21_spill] sm:$0xff] }
 0x2c1   :  { %v6154_v52 = vpop.xlane.xlu1 %2091 }
 0x2c2   :  { %7535 = vst [vmem:[#allocation37_spill] sm:$0xff] %v6154_v52  ;;  %vm2093_vm2 = vcmp.eq.f32.partialorder %v7538_v30, %v6154_v52  ;;  %v1199_v14 = vshll.u32 %v1198_v38, 16  ;;  %v1228_v52 = vcvt.f32.s32 %v5797_v17  ;;  %v7288_v38 = vmov 0.0  }
 0x2c3   :  { %v2094_v39 = vsel %vm2093_vm2, %v2089_v45, inf  ;;  %v1183_v45 = vcvt.f32.s32 %v5783_v44 }
 0x2c4   :  { %2095 = vmin.xlane.f32.xlu1 %v2094_v39 }
 0x2c5   :  { %v6161_v53 = vpop.xlane.xlu0 %2076  ;;  %v1166_v5 = vpop.xlane.xlu1 %1165  ;;  %v1184_v23 = vshll.u32 %v1183_v45, 16 }
 0x2c6   :  { %vm2078_vm3 = vcmp.eq.f32.partialorder %v7539_v15, %v6161_v53  ;;  %v1167_v29 = vcvt.f32.s32 %v1166_v5  ;;  %v1213_v5 = vcvt.f32.s32 %v5809_v3 }
 0x2c7   :  { %v2079_v2 = vsel %vm2078_vm3, %v2074_v24, inf  ;;  %v1258_v24 = vcvt.f32.s32 %v5823_v32 }
 0x2c8   :  { %v1170_v57 = vadd.s32 %v1169_v63, %v1167_v29  ;;  %2080 = vmin.xlane.f32.xlu0 %v2079_v2  ;;  %v1229_v63 = vshll.u32 %v1228_v52, 16  ;;  %v1214_v32 = vshll.u32 %v1213_v5, 16 }
 0x2c9   :  { %v1151_v30 = vpop.xlane.xlu0 %1150  ;;  %v1196_v39 = vpop.xlane.xlu1 %1195  ;;  %v1259_v52 = vshll.u32 %v1258_v24, 16  ;;  %v1318_v24 = vcvt.f32.s32 %v5884_v13 }
 0x2ca   :  { %v1152_v55 = vcvt.f32.s32 %v1151_v30  ;;  %v1197_v11 = vcvt.f32.s32 %v1196_v39  ;;  %vm2102_vm4 = vcmp.eq.s32.totalorder %v7540_v59, %v1170_v57  ;;  %v1243_v57 = vcvt.f32.s32 %v5835_v37 }
 0x2cb   :  { %v1648_v37 = vcvt.f32.s32 %v6007_v31  ;;  %v1678_v31 = vcvt.f32.s32 %v6005_v36 }
 0x2cc   :  { %v1155_v49 = vadd.s32 %v1154_v60, %v1152_v55  ;;  %v1200_v10 = vadd.s32 %v1199_v14, %v1197_v11  ;;  %v6176_v55 = vsel %vm2102_vm4, 1.0, %v7288_v38 }
 0x2cd   :  { %v1181_v2 = vpop.xlane.xlu0 %1180  ;;  %v1226_v16 = vpop.xlane.xlu1 %1225 }
 0x2ce   :  { %v1182_v44 = vcvt.f32.s32 %v1181_v2  ;;  %v1227_v15 = vcvt.f32.s32 %v1226_v16  ;;  %vm2101_vm5 = vcmp.eq.s32.totalorder %v7540_v59, %v1155_v49  ;;  %vm2104_vm6 = vcmp.eq.s32.totalorder %v7540_v59, %v1200_v10 }
 0x2cf   :  { %v6173_v17 = vsel %vm2101_vm5, 1.0, %v7288_v38  ;;  %v6192_v10 = vsel %vm2104_vm6, 1.0, %v7288_v38  ;;  %v1273_v2 = vcvt.f32.s32 %v5860_v54 }
 0x2d0   :  { %v1185_v60 = vadd.s32 %v1184_v23, %v1182_v44  ;;  %v1230_v29 = vadd.s32 %v1229_v63, %v1227_v15  ;;  %4340 = vmatprep.mubr.msk.f32.mxu1 %vm820_vm1, %v6173_v17  ;;  %v1288_v23 = vcvt.f32.s32 %v5849_v62  ;;  %v1244_v62 = vshll.u32 %v1243_v57, 16 }
 0x2d1   :  { %v1211_v45 = vpop.xlane.xlu0 %1210  ;;  %4341 = vmatmul.mubr.msk.f32.vlgmr.msra.gmra.mrb[0].mxu1 %vm820_vm1, %v6176_v55  ;;  %v1256_v30 = vpop.xlane.xlu1 %1255  ;;  %v1319_v57 = vshll.u32 %v1318_v24, 16 }
 0x2d2   :  { %v1212_v39 = vcvt.f32.s32 %v1211_v45  ;;  %v1257_v14 = vcvt.f32.s32 %v1256_v30  ;;  %vm2103_vm7 = vcmp.eq.s32.totalorder %v7540_v59, %v1185_v60  ;;  %vm2106_vm8 = vcmp.eq.s32.totalorder %v7540_v59, %v1230_v29 }
 0x2d3   :  { %v6189_v11 = vsel %vm2103_vm7, 1.0, %v7288_v38  ;;  %v1289_v44 = vshll.u32 %v1288_v23, 16  ;;  %v6208_v29 = vsel %vm2106_vm8, 1.0, %v7288_v38  ;;  %v1274_v45 = vshll.u32 %v1273_v2, 16 }
 0x2d4   :  { %v1215_v49 = vadd.s32 %v1214_v32, %v1212_v39  ;;  %v1260_v5 = vadd.s32 %v1259_v52, %v1257_v14  ;;  %4343 = vmatprep.mubr.msk.f32.mxu1 %vm820_vm1, %v6189_v11  ;;  %v1303_v30 = vcvt.f32.s32 %v5868_v41  ;;  %v1348_v14 = vcvt.f32.s32 %v5876_v46 }
 0x2d5   :  { %v1241_v16 = vpop.xlane.xlu0 %1240  ;;  %4344 = vmatmul.mubr.msk.f32.gmra.mrb[2].mxu1 %vm820_vm1, %v6192_v10  ;;  %v1286_v63 = vpop.xlane.xlu1 %1285  ;;  %v1378_v46 = vcvt.f32.s32 %v5914_v34 }
 0x2d6   :  { %v1242_v15 = vcvt.f32.s32 %v1241_v16  ;;  %v1287_v60 = vcvt.f32.s32 %v1286_v63  ;;  %vm2105_vm9 = vcmp.eq.s32.totalorder %v7540_v59, %v1215_v49  ;;  %vm2108_vm10 = vcmp.eq.s32.totalorder %v7540_v59, %v1260_v5 }
 0x2d7   :  { %v6205_v32 = vsel %vm2105_vm9, 1.0, %v7288_v38  ;;  %v6224_v5 = vsel %vm2108_vm10, 1.0, %v7288_v38  ;;  %v1304_v63 = vshll.u32 %v1303_v30, 16 }
 0x2d8   :  { %v1245_v52 = vadd.s32 %v1244_v62, %v1242_v15  ;;  %v1290_v13 = vadd.s32 %v1289_v44, %v1287_v60  ;;  %4346 = vmatprep.mubr.msk.f32.mxu1 %vm820_vm1, %v6205_v32  ;;  %v1333_v44 = vcvt.f32.s32 %v5886_v26  ;;  %v1543_v26 = vcvt.f32.s32 %v5980_v28 }
 0x2d9   :  { %v1271_v23 = vpop.xlane.xlu0 %1270  ;;  %4347 = vmatmul.mubr.msk.f32.gmra.mrb[4].mxu1 %vm820_vm1, %v6208_v29  ;;  %v1316_v39 = vpop.xlane.xlu1 %1315 }
 0x2da   :  { %v1272_v49 = vcvt.f32.s32 %v1271_v23  ;;  %v1317_v62 = vcvt.f32.s32 %v1316_v39  ;;  %vm2107_vm11 = vcmp.eq.s32.totalorder %v7540_v59, %v1245_v52  ;;  %vm2110_vm12 = vcmp.eq.s32.totalorder %v7540_v59, %v1290_v13 }
 0x2db   :  { %v6221_v16 = vsel %vm2107_vm11, 1.0, %v7288_v38  ;;  %v1349_v52 = vshll.u32 %v1348_v14, 16  ;;  %v6240_v13 = vsel %vm2110_vm12, 1.0, %v7288_v38  ;;  %v1379_v39 = vshll.u32 %v1378_v46, 16 }
 0x2dc   :  { %v1275_v24 = vadd.s32 %v1274_v45, %v1272_v49  ;;  %v1320_v2 = vadd.s32 %v1319_v57, %v1317_v62  ;;  %4349 = vmatprep.mubr.msk.f32.mxu1 %vm820_vm1, %v6221_v16  ;;  %v1334_v14 = vshll.u32 %v1333_v44, 16  ;;  %v1363_v49 = vcvt.f32.s32 %v5900_v33 }
 0x2dd   :  { %v1301_v15 = vpop.xlane.xlu0 %1300  ;;  %4350 = vmatmul.mubr.msk.f32.gmra.mrb[6].mxu1 %vm820_vm1, %v6224_v5  ;;  %v1346_v60 = vpop.xlane.xlu1 %1345 }
 0x2de   :  { %v1302_v57 = vcvt.f32.s32 %v1301_v15  ;;  %v1347_v45 = vcvt.f32.s32 %v1346_v60  ;;  %vm2109_vm13 = vcmp.eq.s32.totalorder %v7540_v59, %v1275_v24  ;;  %vm2112_vm14 = vcmp.eq.s32.totalorder %v7540_v59, %v1320_v2 }
 0x2df   :  { %v6237_v23 = vsel %vm2109_vm13, 1.0, %v7288_v38  ;;  %v6256_v2 = vsel %vm2112_vm14, 1.0, %v7288_v38 }
 0x2e0   :  { %v1305_v34 = vadd.s32 %v1304_v63, %v1302_v57  ;;  %v1350_v30 = vadd.s32 %v1349_v52, %v1347_v45  ;;  %4352 = vmatprep.mubr.msk.f32.mxu1 %vm820_vm1, %v6237_v23  ;;  %v1408_v63 = vcvt.f32.s32 %v5916_v20  ;;  %v1438_v20 = vcvt.f32.s32 %v5932_v7 }
 0x2e1   :  { %v1331_v62 = vpop.xlane.xlu0 %1330  ;;  %4353 = vmatmul.mubr.msk.f32.gmra.mrb[8].mxu1 %vm820_vm1, %v6240_v13  ;;  %v1376_v24 = vpop.xlane.xlu1 %1375  ;;  %v1364_v57 = vshll.u32 %v1363_v49, 16  ;;  %v1393_v45 = vcvt.f32.s32 %v5924_v18 }
 0x2e2   :  { %v1332_v15 = vcvt.f32.s32 %v1331_v62  ;;  %v1377_v60 = vcvt.f32.s32 %v1376_v24  ;;  %vm2111_vm15 = vcmp.eq.s32.totalorder %v7540_v59, %v1305_v34  ;;  %vm2114_vm2 = vcmp.eq.s32.totalorder %v7540_v59, %v1350_v30 }
 0x2e3   :  { %v6253_v52 = vsel %vm2111_vm15, 1.0, %v7288_v38  ;;  %v6272_v30 = vsel %vm2114_vm2, 1.0, %v7288_v38 }
 0x2e4   :  { %v1335_v46 = vadd.s32 %v1334_v14, %v1332_v15  ;;  %v1380_v44 = vadd.s32 %v1379_v39, %v1377_v60  ;;  %4355 = vmatprep.mubr.msk.f32.mxu1 %vm820_vm1, %v6253_v52  ;;  %v1409_v14 = vshll.u32 %v1408_v63, 16  ;;  %v1439_v63 = vshll.u32 %v1438_v20, 16 }
 0x2e5   :  { %v1361_v34 = vpop.xlane.xlu0 %1360  ;;  %4356 = vmatmul.mubr.msk.f32.gmra.mrb[10].mxu1 %vm820_vm1, %v6256_v2  ;;  %v1406_v62 = vpop.xlane.xlu1 %1405  ;;  %v1394_v60 = vshll.u32 %v1393_v45, 16 }
 0x2e6   :  { %v1362_v39 = vcvt.f32.s32 %v1361_v34  ;;  %v1407_v24 = vcvt.f32.s32 %v1406_v62  ;;  %vm2113_vm3 = vcmp.eq.s32.totalorder %v7540_v59, %v1335_v46  ;;  %vm2116_vm4 = vcmp.eq.s32.totalorder %v7540_v59, %v1380_v44 }
 0x2e7   :  { %v6269_v15 = vsel %vm2113_vm3, 1.0, %v7288_v38  ;;  %v1423_v46 = vcvt.f32.s32 %v5934_v9  ;;  %v6288_v44 = vsel %vm2116_vm4, 1.0, %v7288_v38 }
 0x2e8   :  { %v1365_v7 = vadd.s32 %v1364_v57, %v1362_v39  ;;  %v1410_v49 = vadd.s32 %v1409_v14, %v1407_v24  ;;  %4358 = vmatprep.mubr.msk.f32.mxu1 %vm820_vm1, %v6269_v15  ;;  %v1468_v57 = vcvt.f32.s32 %v5942_v51  ;;  %v1498_v51 = vcvt.f32.s32 %v5950_v58 }
 0x2e9   :  { %v1391_v34 = vpop.xlane.xlu0 %1390  ;;  %4359 = vmatmul.mubr.msk.f32.gmra.mrb[12].mxu1 %vm820_vm1, %v6272_v30  ;;  %v1436_v62 = vpop.xlane.xlu1 %1435 }
 0x2ea   :  { %v1392_v14 = vcvt.f32.s32 %v1391_v34  ;;  %v1437_v39 = vcvt.f32.s32 %v1436_v62  ;;  %vm2115_vm5 = vcmp.eq.s32.totalorder %v7540_v59, %v1365_v7  ;;  %vm2118_vm6 = vcmp.eq.s32.totalorder %v7540_v59, %v1410_v49 }
 0x2eb   :  { %v6285_v24 = vsel %vm2115_vm5, 1.0, %v7288_v38  ;;  %v1424_v34 = vshll.u32 %v1423_v46, 16  ;;  %v1453_v7 = vcvt.f32.s32 %v5952_v40  ;;  %v6304_v49 = vsel %vm2118_vm6, 1.0, %v7288_v38 }
 0x2ec   :  { %7541 = vst [vmem:[#allocation46_spill] sm:$0xff] %v6285_v24  ;;  %v1395_v20 = vadd.s32 %v1394_v60, %v1392_v14  ;;  %v1440_v45 = vadd.s32 %v1439_v63, %v1437_v39  ;;  %4361 = vmatprep.mubr.msk.f32.mxu1 %vm820_vm1, %v6285_v24  ;;  %v1469_v60 = vshll.u32 %v1468_v57, 16  ;;  %v1499_v57 = vshll.u32 %v1498_v51, 16 }
 0x2ed   :  { %v1421_v62 = vpop.xlane.xlu0 %1420  ;;  %4362 = vmatmul.mubr.msk.f32.gmra.mrb[14].mxu1 %vm820_vm1, %v6288_v44  ;;  %v1466_v18 = vpop.xlane.xlu1 %1465 }
 0x2ee   :  { %v1422_v63 = vcvt.f32.s32 %v1421_v62  ;;  %v1467_v14 = vcvt.f32.s32 %v1466_v18  ;;  %vm2117_vm7 = vcmp.eq.s32.totalorder %v7540_v59, %v1395_v20  ;;  %vm2120_vm8 = vcmp.eq.s32.totalorder %v7540_v59, %v1440_v45 }
 0x2ef   :  { %v6301_v39 = vsel %vm2117_vm7, 1.0, %v7288_v38  ;;  %v1454_v18 = vshll.u32 %v1453_v7, 16  ;;  %v1483_v20 = vcvt.f32.s32 %v5960_v6  ;;  %v6320_v45 = vsel %vm2120_vm8, 1.0, %v7288_v38 }
 0x2f0   :  { %v1425_v58 = vadd.s32 %v1424_v34, %v1422_v63  ;;  %v1470_v46 = vadd.s32 %v1469_v60, %v1467_v14  ;;  %4364 = vmatprep.mubr.msk.f32.mxu1 %vm820_vm1, %v6301_v39  ;;  %v1528_v34 = vcvt.f32.s32 %v5968_v42  ;;  %v1558_v42 = vcvt.f32.s32 %v5966_v50 }
 0x2f1   :  { %v1451_v62 = vpop.xlane.xlu0 %1450  ;;  %4365 = vmatmul.mubr.msk.f32.gmra.mrb[16].mxu1 %vm820_vm1, %v6304_v49  ;;  %v1496_v9 = vpop.xlane.xlu1 %1495 }
 0x2f2   :  { %v1452_v60 = vcvt.f32.s32 %v1451_v62  ;;  %v1497_v63 = vcvt.f32.s32 %v1496_v9  ;;  %vm2119_vm9 = vcmp.eq.s32.totalorder %v7540_v59, %v1425_v58  ;;  %vm2122_vm10 = vcmp.eq.s32.totalorder %v7540_v59, %v1470_v46 }
 0x2f3   :  { %v6317_v14 = vsel %vm2119_vm9, 1.0, %v7288_v38  ;;  %v1484_v9 = vshll.u32 %v1483_v20, 16  ;;  %v1513_v58 = vcvt.f32.s32 %v5975_v1  ;;  %v6336_v46 = vsel %vm2122_vm10, 1.0, %v7288_v38 }
 0x2f4   :  { %v1455_v51 = vadd.s32 %v1454_v18, %v1452_v60  ;;  %v1500_v7 = vadd.s32 %v1499_v57, %v1497_v63  ;;  %4367 = vmatprep.mubr.msk.f32.mxu1 %vm820_vm1, %v6317_v14  ;;  %v1529_v18 = vshll.u32 %v1528_v34, 16  ;;  %v1559_v34 = vshll.u32 %v1558_v42, 16 }
 0x2f5   :  { %v1481_v62 = vpop.xlane.xlu0 %1480  ;;  %4368 = vmatmul.mubr.msk.f32.gmra.mrb[18].mxu1 %vm820_vm1, %v6320_v45  ;;  %v1526_v33 = vpop.xlane.xlu1 %1525 }
 0x2f6   :  { %v1482_v57 = vcvt.f32.s32 %v1481_v62  ;;  %v1527_v60 = vcvt.f32.s32 %v1526_v33  ;;  %vm2121_vm11 = vcmp.eq.s32.totalorder %v7540_v59, %v1455_v51  ;;  %vm2124_vm12 = vcmp.eq.s32.totalorder %v7540_v59, %v1500_v7 }
 0x2f7   :  { %v6333_v63 = vsel %vm2121_vm11, 1.0, %v7288_v38  ;;  %v1514_v33 = vshll.u32 %v1513_v58, 16 }
 0x2f8   :  { %v1485_v50 = vadd.s32 %v1484_v9, %v1482_v57  ;;  %v1530_v20 = vadd.s32 %v1529_v18, %v1527_v60  ;;  %4370 = vmatprep.mubr.msk.f32.mxu1 %vm820_vm1, %v6333_v63  ;;  %v6351_v57 = vsel %vm2124_vm12, 1.0, %v7288_v38  ;;  %v1544_v60 = vshll.u32 %v1543_v26, 16 }
 0x2f9   :  { %v1511_v62 = vpop.xlane.xlu0 %1510  ;;  %4371 = vmatmul.mubr.msk.f32.gmra.mrb[20].mxu1 %vm820_vm1, %v6336_v46  ;;  %v1556_v51 = vpop.xlane.xlu1 %1555 }
 0x2fa   :  { %v1512_v41 = vcvt.f32.s32 %v1511_v62  ;;  %v1557_v9 = vcvt.f32.s32 %v1556_v51  ;;  %vm2123_vm13 = vcmp.eq.s32.totalorder %v7540_v59, %v1485_v50  ;;  %vm2126_vm14 = vcmp.eq.s32.totalorder %v7540_v59, %v1530_v20 }
 0x2fb   :  { %v6348_v18 = vsel %vm2123_vm13, 1.0, %v7288_v38  ;;  %v1588_v50 = vcvt.f32.s32 %v5987_v56  ;;  %v1618_v56 = vcvt.f32.s32 %v5985_v48 }
 0x2fc   :  { %v1515_v7 = vadd.s32 %v1514_v33, %v1512_v41  ;;  %v1560_v42 = vadd.s32 %v1559_v34, %v1557_v9  ;;  %4373 = vmatprep.mubr.msk.f32.mxu1 %vm820_vm1, %v6348_v18  ;;  %v6366_v34 = vsel %vm2126_vm14, 1.0, %v7288_v38  ;;  %v1573_v9 = vcvt.f32.s32 %v5995_v22 }
 0x2fd   :  { %v1541_v28 = vpop.xlane.xlu0 %1540  ;;  %4374 = vmatmul.mubr.msk.f32.gmra.mrb[22].mxu1 %vm820_vm1, %v6351_v57  ;;  %v1589_v51 = vshll.u32 %v1588_v50, 16 }
 0x2fe   :  { %v1542_v62 = vcvt.f32.s32 %v1541_v28  ;;  %vm2125_vm15 = vcmp.eq.s32.totalorder %v7540_v59, %v1515_v7  ;;  %vm2128_vm2 = vcmp.eq.s32.totalorder %v7540_v59, %v1560_v42  ;;  %v1619_v42 = vshll.u32 %v1618_v56, 16 }
 0x2ff   :  { %v6363_v41 = vsel %vm2125_vm15, 1.0, %v7288_v38 }
 0x300   :  { %v1545_v33 = vadd.s32 %v1544_v60, %v1542_v62  ;;  %4376 = vmatprep.mubr.msk.f32.mxu1 %vm820_vm1, %v6363_v41  ;;  %v6382_v60 = vsel %vm2128_vm2, 1.0, %v7288_v38 }
 0x301   :  { %4377 = vmatmul.mubr.msk.f32.gmra.mrb[24].mxu1 %vm820_vm1, %v6366_v34  ;;  %v1586_v26 = vpop.xlane.xlu1 %1585 }
 0x302   :  { %v1587_v7 = vcvt.f32.s32 %v1586_v26  ;;  %vm2127_vm3 = vcmp.eq.s32.totalorder %v7540_v59, %v1545_v33  ;;  %v1574_v33 = vshll.u32 %v1573_v9, 16  ;;  %v1603_v26 = vcvt.f32.s32 %v6000_v21 }
 0x303   :  { %v6379_v28 = vsel %vm2127_vm3, 1.0, %v7288_v38 }
 0x304   :  { %v1590_v62 = vadd.s32 %v1589_v51, %v1587_v7  ;;  %4379 = vmatprep.mubr.msk.f32.mxu1 %vm820_vm1, %v6379_v28  ;;  %v1604_v7 = vshll.u32 %v1603_v26, 16  ;;  %v1663_v26 = vcvt.f32.s32 %v6019_v25 }
 0x305   :  { %v1571_v50 = vpop.xlane.xlu0 %1570  ;;  %4380 = vmatmul.mubr.msk.f32.gmra.mrb[26].mxu1 %vm820_vm1, %v6382_v60  ;;  %v1616_v22 = vpop.xlane.xlu1 %1615 }
 0x306   :  { %v1572_v20 = vcvt.f32.s32 %v1571_v50  ;;  %v1617_v58 = vcvt.f32.s32 %v1616_v22  ;;  %vm2130_vm4 = vcmp.eq.s32.totalorder %v7540_v59, %v1590_v62  ;;  %v1633_v62 = vcvt.f32.s32 %v6015_v35 }
 0x307   :  { %v6398_v9 = vsel %vm2130_vm4, 1.0, %v7288_v38 }
 0x308   :  { %v1575_v54 = vadd.s32 %v1574_v33, %v1572_v20  ;;  %v1620_v1 = vadd.s32 %v1619_v42, %v1617_v58  ;;  %v1649_v20 = vshll.u32 %v1648_v37, 16  ;;  %v1634_v33 = vshll.u32 %v1633_v62, 16 }
 0x309   :  { %v1601_v51 = vpop.xlane.xlu0 %1600  ;;  %v1708_v58 = vcvt.f32.s32 %v6026_v0  ;;  %v1738_v0 = vcvt.f32.s32 %v6024_v12  ;;  %v1798_v12 = vcvt.f32.s32 %v6044_v19  ;;  %v7560_v19 = vld [vmem:[#allocation29_spill] sm:$0xff] }
 0x30a   :  { %v1602_v48 = vcvt.f32.s32 %v1601_v51  ;;  %vm2129_vm5 = vcmp.eq.s32.totalorder %v7540_v59, %v1575_v54  ;;  %vm2132_vm6 = vcmp.eq.s32.totalorder %v7540_v59, %v1620_v1  ;;  %v1679_v1 = vshll.u32 %v1678_v31, 16 }
 0x30b   :  { %v6395_v56 = vsel %vm2129_vm5, 1.0, %v7288_v38  ;;  %v6414_v50 = vsel %vm2132_vm6, 1.0, %v7288_v38 }
 0x30c   :  { %v1605_v21 = vadd.s32 %v1604_v7, %v1602_v48  ;;  %4382 = vmatprep.mubr.msk.f32.mxu1 %vm820_vm1, %v6395_v56 }
 0x30d   :  { %4383 = vmatmul.mubr.msk.f32.gmra.mrb[28].mxu1 %vm820_vm1, %v6398_v9  ;;  %v1646_v54 = vpop.xlane.xlu1 %1645 }
 0x30e   :  { %v1647_v42 = vcvt.f32.s32 %v1646_v54  ;;  %vm2131_vm7 = vcmp.eq.s32.totalorder %v7540_v59, %v1605_v21 }
 0x30f   :  { %v6411_v48 = vsel %vm2131_vm7, 1.0, %v7288_v38 }
 0x310   :  { %v1650_v22 = vadd.s32 %v1649_v20, %v1647_v42  ;;  %4385 = vmatprep.mubr.msk.f32.mxu1 %vm820_vm1, %v6411_v48  ;;  %v1664_v42 = vshll.u32 %v1663_v26, 16 }
 0x311   :  { %v1631_v37 = vpop.xlane.xlu0 %1630  ;;  %4386 = vmatmul.mubr.msk.f32.gmra.mrb[30].mxu1 %vm820_vm1, %v6414_v50  ;;  %v1676_v35 = vpop.xlane.xlu1 %1675 }
 0x312   :  { %v1632_v51 = vcvt.f32.s32 %v1631_v37  ;;  %v1677_v7 = vcvt.f32.s32 %v1676_v35  ;;  %vm2134_vm8 = vcmp.eq.s32.totalorder %v7540_v59, %v1650_v22  ;;  %v1709_v37 = vshll.u32 %v1708_v58, 16 }
 0x313   :  { %v6430_v62 = vsel %vm2134_vm8, 1.0, %v7288_v38  ;;  %v1693_v35 = vcvt.f32.s32 %v6036_v8  ;;  %v1768_v58 = vcvt.f32.s32 %v6034_v27  ;;  %v1723_v8 = vcvt.f32.s32 %v6046_v4  ;;  %v7546_v4 = vld [vmem:[#allocation24_spill] sm:$0xff] }
 0x314   :  { %v1635_v21 = vadd.s32 %v1634_v33, %v1632_v51  ;;  %v1680_v54 = vadd.s32 %v1679_v1, %v1677_v7  ;;  %7543 = vst [vmem:[#allocation48_spill] sm:$0xff] %v6430_v62  ;;  %v1753_v3 = vcvt.f32.s32 %v7546_v4 }
 0x315   :  { %v1661_v20 = vpop.xlane.xlu0 %1660  ;;  %v1724_v22 = vshll.u32 %v1723_v8, 16 }
 0x316   :  { %v1662_v36 = vcvt.f32.s32 %v1661_v20  ;;  %vm2133_vm9 = vcmp.eq.s32.totalorder %v7540_v59, %v1635_v21  ;;  %vm2136_vm10 = vcmp.eq.s32.totalorder %v7540_v59, %v1680_v54  ;;  %v1739_v54 = vshll.u32 %v1738_v0, 16 }
 0x317   :  { %v6427_v31 = vsel %vm2133_vm9, 1.0, %v7288_v38  ;;  %v6446_v26 = vsel %vm2136_vm10, 1.0, %v7288_v38  ;;  %v1694_v20 = vshll.u32 %v1693_v35, 16  ;;  %v7547_v0 = vmov 0.0  }
 0x318   :  { %7542 = vst [vmem:[#allocation39_spill] sm:$0xff] %v6427_v31  ;;  %v1665_v25 = vadd.s32 %v1664_v42, %v1662_v36  ;;  %4388 = vmatprep.mubr.msk.f32.mxu1 %vm820_vm1, %v6427_v31  ;;  %7545 = vst [vmem:[#allocation51_spill] sm:$0xff] %v6446_v26 }
 0x319   :  { %4389 = vmatmul.mubr.msk.f32.gmra.mrb[32].mxu1 %vm820_vm1, %v6430_v62  ;;  %v1706_v1 = vpop.xlane.xlu1 %1705 }
 0x31a   :  { %v1707_v33 = vcvt.f32.s32 %v1706_v1  ;;  %vm2135_vm11 = vcmp.eq.s32.totalorder %v7540_v59, %v1665_v25 }
 0x31b   :  { %v6443_v36 = vsel %vm2135_vm11, 1.0, %v7288_v38 }
 0x31c   :  { %7544 = vst [vmem:[#allocation40_spill] sm:$0xff] %v6443_v36  ;;  %v1710_v51 = vadd.s32 %v1709_v37, %v1707_v33  ;;  %4391 = vmatprep.mubr.msk.f32.mxu1 %vm820_vm1, %v6443_v36  ;;  %v1769_v33 = vshll.u32 %v1768_v58, 16  ;;  %v1799_v58 = vshll.u32 %v1798_v12, 16 }
 0x31d   :  { %v1691_v7 = vpop.xlane.xlu0 %1690  ;;  %4392 = vmatmul.mubr.msk.f32.gmra.mrb[34].mxu1 %vm820_vm1, %v6446_v26  ;;  %v1736_v21 = vpop.xlane.xlu1 %1735  ;;  %v4670_v26 = vld [vmem:[#allocation2 + $0x70] sm:$0xff] }
 0x31e   :  { %v1692_v42 = vcvt.f32.s32 %v1691_v7  ;;  %v1737_v25 = vcvt.f32.s32 %v1736_v21  ;;  %vm2138_vm12 = vcmp.eq.s32.totalorder %v7540_v59, %v1710_v51 }
 0x31f   :  { %v6464_v7 = vsel %vm2138_vm12, 1.0, %v7547_v0 }
 0x320   :  { %v1695_v1 = vadd.s32 %v1694_v20, %v1692_v42  ;;  %v1740_v37 = vadd.s32 %v1739_v54, %v1737_v25  ;;  %7549 = vst [vmem:[#allocation44_spill] sm:$0xff] %v6464_v7  ;;  %v1783_v54 = vcvt.f32.s32 %v6066_v47 }
 0x321   :  { %v1721_v27 = vpop.xlane.xlu0 %1720  ;;  %v1766_v6 = vpop.xlane.xlu1 %1765 }
 0x322   :  { %v1722_v40 = vcvt.f32.s32 %v1721_v27  ;;  %v1767_v38 = vcvt.f32.s32 %v1766_v6  ;;  %vm2137_vm13 = vcmp.eq.s32.totalorder %v7540_v59, %v1695_v1  ;;  %vm2140_vm14 = vcmp.eq.s32.totalorder %v7540_v59, %v1740_v37  ;;  %v7550_v6 = vld [vmem:[#allocation23_spill] sm:$0xff] }
 0x323   :  { %v6461_v35 = vsel %vm2137_vm13, 1.0, %v7547_v0  ;;  %v1828_v8 = vcvt.f32.s32 %v7550_v6  ;;  %v6480_v1 = vsel %vm2140_vm14, 1.0, %v7547_v0  ;;  %v1784_v27 = vshll.u32 %v1783_v54, 16  ;;  %v7553_v6 = vld [vmem:[#allocation26_spill] sm:$0xff] }
 0x324   :  { %7548 = vst [vmem:[#allocation42_spill] sm:$0xff] %v6461_v35  ;;  %v1725_v21 = vadd.s32 %v1724_v22, %v1722_v40  ;;  %v1770_v51 = vadd.s32 %v1769_v33, %v1767_v38  ;;  %4394 = vmatprep.mubr.msk.f32.mxu1 %vm820_vm1, %v6461_v35  ;;  %v1754_v40 = vshll.u32 %v1753_v3, 16  ;;  %7552 = vst [vmem:[#allocation45_spill] sm:$0xff] %v6480_v1  ;;  %v1858_v33 = vcvt.f32.s32 %v6064_v61 }
 0x325   :  { %v1751_v20 = vpop.xlane.xlu0 %1750  ;;  %4395 = vmatmul.mubr.msk.f32.gmra.mrb[36].mxu1 %vm820_vm1, %v6464_v7  ;;  %v1796_v42 = vpop.xlane.xlu1 %1795  ;;  %v1829_v3 = vshll.u32 %v1828_v8, 16 }
 0x326   :  { %v1752_v38 = vcvt.f32.s32 %v1751_v20  ;;  %v1797_v22 = vcvt.f32.s32 %v1796_v42  ;;  %vm2139_vm15 = vcmp.eq.s32.totalorder %v7540_v59, %v1725_v21  ;;  %vm2142_vm2 = vcmp.eq.s32.totalorder %v7540_v59, %v1770_v51 }
 0x327   :  { %v6477_v25 = vsel %vm2139_vm15, 1.0, %v7547_v0  ;;  %v1813_v20 = vcvt.f32.s32 %v7553_v6  ;;  %v6496_v51 = vsel %vm2142_vm2, 1.0, %v7547_v0 }
 0x328   :  { %7551 = vst [vmem:[#allocation56_spill] sm:$0xff] %v6477_v25  ;;  %v1755_v12 = vadd.s32 %v1754_v40, %v1752_v38  ;;  %v1800_v37 = vadd.s32 %v1799_v58, %v1797_v22  ;;  %4397 = vmatprep.mubr.msk.f32.mxu1 %vm820_vm1, %v6477_v25  ;;  %7555 = vst [vmem:[#allocation60_spill] sm:$0xff] %v6496_v51  ;;  %v1859_v38 = vshll.u32 %v1858_v33, 16  ;;  %v7556_v22 = vld [vmem:[#allocation25_spill] sm:$0xff] }
 0x329   :  { %v1781_v4 = vpop.xlane.xlu0 %1780  ;;  %4398 = vmatmul.mubr.msk.f32.gmra.mrb[38].mxu1 %vm820_vm1, %v6480_v1  ;;  %v1826_v21 = vpop.xlane.xlu1 %1825 }
 0x32a   :  { %v1782_v58 = vcvt.f32.s32 %v1781_v4  ;;  %v1827_v42 = vcvt.f32.s32 %v1826_v21  ;;  %vm2141_vm3 = vcmp.eq.s32.totalorder %v7540_v59, %v1755_v12  ;;  %vm2144_vm4 = vcmp.eq.s32.totalorder %v7540_v59, %v1800_v37 }
 0x32b   :  { %v6493_v40 = vsel %vm2141_vm3, 1.0, %v7547_v0  ;;  %v1888_v4 = vcvt.f32.s32 %v7556_v22  ;;  %v1843_v12 = vcvt.f32.s32 %v6086_v43  ;;  %v6512_v37 = vsel %vm2144_vm4, 1.0, %v7547_v0 }
 0x32c   :  { %7554 = vst [vmem:[#allocation58_spill] sm:$0xff] %v6493_v40  ;;  %v1785_v8 = vadd.s32 %v1784_v27, %v1782_v58  ;;  %v1830_v61 = vadd.s32 %v1829_v3, %v1827_v42  ;;  %4400 = vmatprep.mubr.msk.f32.mxu1 %vm820_vm1, %v6493_v40  ;;  %v1814_v27 = vshll.u32 %v1813_v20, 16  ;;  %7558 = vst [vmem:[#allocation63_spill] sm:$0xff] %v6512_v37 }
 0x32d   :  { %v1811_v21 = vpop.xlane.xlu0 %1810  ;;  %4401 = vmatmul.mubr.msk.f32.gmra.mrb[40].mxu1 %vm820_vm1, %v6496_v51  ;;  %v1856_v6 = vpop.xlane.xlu1 %1855  ;;  %v1889_v20 = vshll.u32 %v1888_v4, 16  ;;  %v7576_v51 = vld [vmem:[#allocation34_spill] sm:$0xff] }
 0x32e   :  { %v1812_v3 = vcvt.f32.s32 %v1811_v21  ;;  %v1857_v58 = vcvt.f32.s32 %v1856_v6  ;;  %vm2143_vm5 = vcmp.eq.s32.totalorder %v7540_v59, %v1785_v8  ;;  %vm2146_vm6 = vcmp.eq.s32.totalorder %v7540_v59, %v1830_v61  ;;  %v7559_v21 = vld [vmem:[#allocation27_spill] sm:$0xff] }
 0x32f   :  { %v6509_v42 = vsel %vm2143_vm5, 1.0, %v7547_v0  ;;  %v1918_v6 = vcvt.f32.s32 %v7559_v21  ;;  %v1844_v8 = vshll.u32 %v1843_v12, 16  ;;  %v6528_v61 = vsel %vm2146_vm6, 1.0, %v7547_v0 }
 0x330   :  { %7557 = vst [vmem:[#allocation61_spill] sm:$0xff] %v6509_v42  ;;  %v1815_v33 = vadd.s32 %v1814_v27, %v1812_v3  ;;  %v1860_v22 = vadd.s32 %v1859_v38, %v1857_v58  ;;  %4403 = vmatprep.mubr.msk.f32.mxu1 %vm820_vm1, %v6509_v42  ;;  %v1873_v27 = vcvt.f32.s32 %v7560_v19  ;;  %7562 = vst [vmem:[#allocation8_spill] sm:$0xff] %v6528_v61 }
 0x331   :  { %v1841_v54 = vpop.xlane.xlu0 %1840  ;;  %4404 = vmatmul.mubr.msk.f32.gmra.mrb[42].mxu1 %vm820_vm1, %v6512_v37  ;;  %v1886_v47 = vpop.xlane.xlu1 %1885  ;;  %v1919_v19 = vshll.u32 %v1918_v6, 16 }
 0x332   :  { %v1842_v38 = vcvt.f32.s32 %v1841_v54  ;;  %v1887_v3 = vcvt.f32.s32 %v1886_v47  ;;  %vm2145_vm7 = vcmp.eq.s32.totalorder %v7540_v59, %v1815_v33  ;;  %vm2148_vm8 = vcmp.eq.s32.totalorder %v7540_v59, %v1860_v22  ;;  %v7563_v47 = vld [vmem:[#allocation28_spill] sm:$0xff] }
 0x333   :  { %v6525_v58 = vsel %vm2145_vm7, 1.0, %v7547_v0  ;;  %v1948_v54 = vcvt.f32.s32 %v7563_v47  ;;  %v7564_v33 = vld [vmem:[#allocation32_spill] sm:$0xff]  ;;  %v6544_v22 = vsel %vm2148_vm8, 1.0, %v7547_v0 }
 0x334   :  { %7561 = vst [vmem:[#allocation47_spill] sm:$0xff] %v6525_v58  ;;  %v1845_v4 = vadd.s32 %v1844_v8, %v1842_v38  ;;  %v1890_v21 = vadd.s32 %v1889_v20, %v1887_v3  ;;  %4406 = vmatprep.mubr.msk.f32.mxu1 %vm820_vm1, %v6525_v58  ;;  %v1903_v43 = vcvt.f32.s32 %v7564_v33  ;;  %v1874_v8 = vshll.u32 %v1873_v27, 16  ;;  %7566 = vst [vmem:[#allocation64_spill] sm:$0xff] %v6544_v22 }
 0x335   :  { %v1871_v42 = vpop.xlane.xlu0 %1870  ;;  %4407 = vmatmul.mubr.msk.f32.gmra.mrb[44].mxu1 %vm820_vm1, %v6528_v61  ;;  %v1916_v37 = vpop.xlane.xlu1 %1915  ;;  %v7568_v61 = vld [vmem:[#allocation30_spill] sm:$0xff] }
 0x336   :  { %v1872_v20 = vcvt.f32.s32 %v1871_v42  ;;  %v1917_v38 = vcvt.f32.s32 %v1916_v37  ;;  %vm2147_vm9 = vcmp.eq.s32.totalorder %v7540_v59, %v1845_v4  ;;  %vm2150_vm10 = vcmp.eq.s32.totalorder %v7540_v59, %v1890_v21  ;;  %v7567_v37 = vld [vmem:[#allocation31_spill] sm:$0xff] }
 0x337   :  { %v6541_v3 = vsel %vm2147_vm9, 1.0, %v7547_v0  ;;  %v1949_v42 = vshll.u32 %v1948_v54, 16  ;;  %v1978_v27 = vcvt.f32.s32 %v7567_v37  ;;  %v1904_v4 = vshll.u32 %v1903_v43, 16 }
 0x338   :  { %7565 = vst [vmem:[#allocation49_spill] sm:$0xff] %v6541_v3  ;;  %v1875_v6 = vadd.s32 %v1874_v8, %v1872_v20  ;;  %v1920_v47 = vadd.s32 %v1919_v19, %v1917_v38  ;;  %4409 = vmatprep.mubr.msk.f32.mxu1 %vm820_vm1, %v6541_v3  ;;  %v1933_v8 = vcvt.f32.s32 %v7568_v61  ;;  %v6560_v21 = vsel %vm2150_vm10, 1.0, %v7547_v0 }
 0x339   :  { %v1901_v12 = vpop.xlane.xlu0 %1900  ;;  %4410 = vmatmul.mubr.msk.f32.gmra.mrb[46].mxu1 %vm820_vm1, %v6544_v22  ;;  %v1946_v58 = vpop.xlane.xlu1 %1945  ;;  %7570 = vst [vmem:[#allocation10_spill] sm:$0xff] %v6560_v21  ;;  %v1979_v61 = vshll.u32 %v1978_v27, 16 }
 0x33a   :  { %v1902_v19 = vcvt.f32.s32 %v1901_v12  ;;  %v1947_v20 = vcvt.f32.s32 %v1946_v58  ;;  %vm2149_vm11 = vcmp.eq.s32.totalorder %v7540_v59, %v1875_v6  ;;  %vm2152_vm12 = vcmp.eq.s32.totalorder %v7540_v59, %v1920_v47  ;;  %v7571_v58 = vld [vmem:[#allocation35_spill] sm:$0xff]  ;;  %v7572_v6 = vld [vmem:[#allocation33_spill] sm:$0xff] }
 0x33b   :  { %v6557_v38 = vsel %vm2149_vm11, 1.0, %v7547_v0  ;;  %v2008_v12 = vcvt.f32.s32 %v7571_v58  ;;  %v1963_v33 = vcvt.f32.s32 %v7572_v6  ;;  %v6576_v47 = vsel %vm2152_vm12, 1.0, %v7547_v0  ;;  %vm6748_vm12 = vmpackc.low %vm106_vm0, %vm106_vm0 }
 0x33c   :  { %7569 = vst [vmem:[#allocation9_spill] sm:$0xff] %v6557_v38  ;;  %v1905_v54 = vadd.s32 %v1904_v4, %v1902_v19  ;;  %v1950_v37 = vadd.s32 %v1949_v42, %v1947_v20  ;;  %4412 = vmatprep.mubr.msk.f32.mxu1 %vm820_vm1, %v6557_v38  ;;  %v1934_v4 = vshll.u32 %v1933_v8, 16  ;;  %7574 = vst [vmem:[#allocation11_spill] sm:$0xff] %v6576_v47  ;;  %v7575_v8 = vld [vmem:[#allocation38_spill] sm:$0xff] }
 0x33d   :  { %v1931_v3 = vpop.xlane.xlu0 %1930  ;;  %4413 = vmatmul.mubr.msk.f32.gmra.mrb[48].mxu1 %vm820_vm1, %v6560_v21  ;;  %v1976_v22 = vpop.xlane.xlu1 %1975 }
 0x33e   :  { %v1932_v42 = vcvt.f32.s32 %v1931_v3  ;;  %v1977_v19 = vcvt.f32.s32 %v1976_v22  ;;  %vm2151_vm13 = vcmp.eq.s32.totalorder %v7540_v59, %v1905_v54  ;;  %vm2154_vm14 = vcmp.eq.s32.totalorder %v7540_v59, %v1950_v37 }
 0x33f   :  { %v6573_v20 = vsel %vm2151_vm13, 1.0, %v7547_v0  ;;  %v2009_v3 = vshll.u32 %v2008_v12, 16  ;;  %v1964_v22 = vshll.u32 %v1963_v33, 16  ;;  %v2038_v54 = vcvt.f32.s32 %v7575_v8  ;;  %v7583_v8 = vld [vmem:[#allocation43_spill] sm:$0xff]  ;;  %vm6854_vm13 = vmpackc.low %vm820_vm1, %vm820_vm1 }
 0x340   :  { %7573 = vst [vmem:[#allocation50_spill] sm:$0xff] %v6573_v20  ;;  %v1935_v27 = vadd.s32 %v1934_v4, %v1932_v42  ;;  %v1980_v58 = vadd.s32 %v1979_v61, %v1977_v19  ;;  %4415 = vmatprep.mubr.msk.f32.mxu1 %vm820_vm1, %v6573_v20  ;;  %v1993_v4 = vcvt.f32.s32 %v7576_v51  ;;  %v6592_v37 = vsel %vm2154_vm14, 1.0, %v7547_v0 }
 0x341   :  { %v1961_v43 = vpop.xlane.xlu0 %1960  ;;  %4416 = vmatmul.mubr.msk.f32.gmra.mrb[50].mxu1 %vm820_vm1, %v6576_v47  ;;  %v2006_v40 = vpop.xlane.xlu1 %2005  ;;  %7578 = vst [vmem:[#allocation53_spill] sm:$0xff] %v6592_v37  ;;  %v2039_v51 = vshll.u32 %v2038_v54, 16  ;;  %v2053_v35 = vcvt.f32.s32 %v7583_v8  ;;  %v4672_v47 = vld [vmem:[#allocation2 + $0x80] sm:$0xff] }
 0x342   :  { %v1962_v61 = vcvt.f32.s32 %v1961_v43  ;;  %v2007_v42 = vcvt.f32.s32 %v2006_v40  ;;  %vm2153_vm15 = vcmp.eq.s32.totalorder %v7540_v59, %v1935_v27  ;;  %vm2156_vm2 = vcmp.eq.s32.totalorder %v7540_v59, %v1980_v58  ;;  %v7579_v40 = vld [vmem:[#allocation41_spill] sm:$0xff]  ;;  %v7580_v27 = vld [vmem:[#allocation36_spill] sm:$0xff] }
 0x343   :  { %v6589_v19 = vsel %vm2153_vm15, 1.0, %v7547_v0  ;;  %v2023_v43 = vcvt.f32.s32 %v7579_v40  ;;  %v2068_v6 = vcvt.f32.s32 %v7580_v27  ;;  %v6608_v58 = vsel %vm2156_vm2, 1.0, %v7547_v0  ;;  %v4657_v27 = vld [vmem:[#allocation2 + $0x18] sm:$0xff] }
 0x344   :  { %7577 = vst [vmem:[#allocation52_spill] sm:$0xff] %v6589_v19  ;;  %v1965_v33 = vadd.s32 %v1964_v22, %v1962_v61  ;;  %v2010_v12 = vadd.s32 %v2009_v3, %v2007_v42  ;;  %4418 = vmatprep.mubr.msk.f32.mxu1 %vm820_vm1, %v6589_v19  ;;  %v1994_v22 = vshll.u32 %v1993_v4, 16  ;;  %7582 = vst [vmem:[#allocation54_spill] sm:$0xff] %v6608_v58 }
 0x345   :  { %v1991_v25 = vpop.xlane.xlu0 %1990  ;;  %4419 = vmatmul.mubr.msk.f32.gmra.mrb[52].mxu1 %vm820_vm1, %v6592_v37  ;;  %v2036_v1 = vpop.xlane.xlu1 %2035  ;;  %v4668_v37 = vld [vmem:[#allocation2 + $0x60] sm:$0xff] }
 0x346   :  { %v1992_v3 = vcvt.f32.s32 %v1991_v25  ;;  %v2037_v61 = vcvt.f32.s32 %v2036_v1  ;;  %vm2155_vm3 = vcmp.eq.s32.totalorder %v7540_v59, %v1965_v33  ;;  %vm2158_vm4 = vcmp.eq.s32.totalorder %v7540_v59, %v2010_v12 }
 0x347   :  { %v6605_v42 = vsel %vm2155_vm3, 1.0, %v7547_v0  ;;  %v2024_v25 = vshll.u32 %v2023_v43, 16  ;;  %v2069_v1 = vshll.u32 %v2068_v6, 16 }
 0x348   :  { %7581 = vst [vmem:[#allocation12_spill] sm:$0xff] %v6605_v42  ;;  %v1995_v54 = vadd.s32 %v1994_v22, %v1992_v3  ;;  %v2040_v40 = vadd.s32 %v2039_v51, %v2037_v61  ;;  %4421 = vmatprep.mubr.msk.f32.mxu1 %vm820_vm1, %v6605_v42  ;;  %v6623_v3 = vsel %vm2158_vm4, 1.0, %v7547_v0  ;;  %v2054_v61 = vshll.u32 %v2053_v35, 16 }
 0x349   :  { %v2021_v4 = vpop.xlane.xlu0 %2020  ;;  %4422 = vmatmul.mubr.msk.f32.gmra.mrb[54].mxu1 %vm820_vm1, %v6608_v58  ;;  %v2066_v33 = vpop.xlane.xlu1 %2065  ;;  %7585 = vst [vmem:[#allocation13_spill] sm:$0xff] %v6623_v3  ;;  %v4666_v58 = vld [vmem:[#allocation2 + $0x50] sm:$0xff] }
 0x34a   :  { %v2022_v7 = vcvt.f32.s32 %v2021_v4  ;;  %v2067_v22 = vcvt.f32.s32 %v2066_v33  ;;  %vm2157_vm5 = vcmp.eq.s32.totalorder %v7540_v59, %v1995_v54  ;;  %vm2160_vm6 = vcmp.eq.s32.totalorder %v7540_v59, %v2040_v40  ;;  %v7586_v54 = vld [vmem:[#allocation37_spill] sm:$0xff] }
 0x34b   :  { %v6620_v51 = vsel %vm2157_vm5, 1.0, %v7547_v0  ;;  %v2098_v4 = vcvt.f32.s32 %v7586_v54 }
 0x34c   :  { %7584 = vst [vmem:[#allocation55_spill] sm:$0xff] %v6620_v51  ;;  %v2025_v12 = vadd.s32 %v2024_v25, %v2022_v7  ;;  %v2070_v43 = vadd.s32 %v2069_v1, %v2067_v22  ;;  %4424 = vmatprep.mubr.msk.f32.mxu1 %vm820_vm1, %v6620_v51  ;;  %v6638_v25 = vsel %vm2160_vm6, 1.0, %v7547_v0 }
 0x34d   :  { %v2051_v8 = vpop.xlane.xlu0 %2050  ;;  %4425 = vmatmul.mubr.msk.f32.gmra.mrb[56].mxu1 %vm820_vm1, %v6623_v3  ;;  %7588 = vst [vmem:[#allocation69_spill] sm:$0xff] %v6638_v25  ;;  %v2099_v22 = vshll.u32 %v2098_v4, 16  ;;  %v4664_v3 = vld [vmem:[#allocation2 + $0x40] sm:$0xff] }
 0x34e   :  { %v2052_v33 = vcvt.f32.s32 %v2051_v8  ;;  %vm2159_vm7 = vcmp.eq.s32.totalorder %v7540_v59, %v2025_v12  ;;  %vm2162_vm8 = vcmp.eq.s32.totalorder %v7540_v59, %v2070_v43  ;;  %v2083_v12 = vcvt.f32.s32 %v6161_v53 }
 0x34f   :  { %v6635_v7 = vsel %vm2159_vm7, 1.0, %v7547_v0  ;;  %v6653_v54 = vsel %vm2162_vm8, 1.0, %v7547_v0 }
 0x350   :  { %7587 = vst [vmem:[#allocation57_spill] sm:$0xff] %v6635_v7  ;;  %v2055_v1 = vadd.s32 %v2054_v61, %v2052_v33  ;;  %4427 = vmatprep.mubr.msk.f32.mxu1 %vm820_vm1, %v6635_v7  ;;  %7590 = vst [vmem:[#allocation15_spill] sm:$0xff] %v6653_v54  ;;  %v2084_v53 = vshll.u32 %v2083_v12, 16 }
 0x351   :  { %4428 = vmatmul.mubr.msk.f32.gmra.mrb[58].mxu1 %vm820_vm1, %v6638_v25  ;;  %v2096_v35 = vpop.xlane.xlu1 %2095  ;;  %v4662_v25 = vld [vmem:[#allocation2 + $0x30] sm:$0xff] }
 0x352   :  { %v2097_v8 = vcvt.f32.s32 %v2096_v35  ;;  %vm2161_vm9 = vcmp.eq.s32.totalorder %v7540_v59, %v2055_v1 }
 0x353   :  { %v6650_v61 = vsel %vm2161_vm9, 1.0, %v7547_v0 }
 0x354   :  { %7589 = vst [vmem:[#allocation59_spill] sm:$0xff] %v6650_v61  ;;  %v2100_v33 = vadd.s32 %v2099_v22, %v2097_v8  ;;  %4430 = vmatprep.mubr.msk.f32.mxu1 %vm820_vm1, %v6650_v61 }
 0x355   :  { %v2081_v40 = vpop.xlane.xlu0 %2080  ;;  %4431 = vmatmul.mubr.msk.f32.gmra.mrb[60].mxu1 %vm820_vm1, %v6653_v54  ;;  %v4660_v54 = vld [vmem:[#allocation2 + $0x20] sm:$0xff] }
 0x356   :  { %v2082_v4 = vcvt.f32.s32 %v2081_v40  ;;  %vm2164_vm10 = vcmp.eq.s32.totalorder %v7540_v59, %v2100_v33  ;;  %v7303_v40 = vmov 1.0   ;;  %v4655_v33 = vld [vmem:[#allocation2 + $0x8] sm:$0xff] }
 0x357   :  { %v6667_v22 = vsel %vm2164_vm10, 1.0, %v7547_v0  ;;  %4128 = vmatprep.mubr.msk.f32.mxu0 %vm106_vm0, %v7303_v40 }
 0x358   :  { %v2085_v1 = vadd.s32 %v2084_v53, %v2082_v4  ;;  %7592 = vst [vmem:[#allocation14_spill] sm:$0xff] %v6667_v22  ;;  %v4656_v4 = vld [vmem:[#allocation2] sm:$0xff] }
 0x35a   :  { %vm2163_vm11 = vcmp.eq.s32.totalorder %v7540_v59, %v2085_v1 }
 0x35b   :  { %v6664_v35 = vsel %vm2163_vm11, 1.0, %v7547_v0 }
 0x35c   :  { %7591 = vst [vmem:[#allocation62_spill] sm:$0xff] %v6664_v35  ;;  %4433 = vmatprep.mubr.msk.f32.mxu1 %vm820_vm1, %v6664_v35 }
 0x35d   :  { %4434 = vmatmul.mubr.msk.f32.gmra.mrb[62].mxu1 %vm820_vm1, %v6667_v22  ;;  %v4658_v22 = vld [vmem:[#allocation2 + $0x10] sm:$0xff] }
 0x35e   :  { %4162 = vmatprep.mubr.msk.f32.mxu1 %vm106_vm0, %v7303_v40 }
 0x3a4   :  { %v4342_v12 = vpop.f32.mrb[0].mxu1 }
 0x3a5   :  { %v2871_v0 = vsub.f32 %v4342_v12, %v4655_v33  ;;  %3486 = vst.msk [vmem:[#allocation5 + $0x8] sm:$0xff] %vm106_vm0, %v4342_v12  ;;  %v2551_v53 = vpop.f32.mrb[1].mxu1 }
 0x3a6   :  { %v2870_v1 = vsub.f32 %v2551_v53, %v4656_v4  ;;  %3485 = vst.msk [vmem:[#allocation5] sm:$0xff] %vm106_vm0, %v2551_v53 }
 0x3a7   :  { %v6681_v8 = vmul.f32 %v2871_v0, %v2871_v0 }
 0x3a8   :  { %v6683_v43 = vmul.f32 %v2870_v1, %v2870_v1  ;;  %v4345_v6 = vpop.f32.mrb[2].mxu1  ;;  %v4659_v1 = vld [vmem:[#allocation2 + $0x28] sm:$0xff] }
 0x3a9   :  { %v2873_v35 = vsub.f32 %v4345_v6, %v4657_v27  ;;  %3488 = vst.msk [vmem:[#allocation5 + $0x18] sm:$0xff] %vm106_vm0, %v4345_v6  ;;  %v2561_v40 = vpop.f32.mrb[3].mxu1 }
 0x3aa   :  { %v2872_v12 = vsub.f32 %v2561_v40, %v4658_v22  ;;  %3487 = vst.msk [vmem:[#allocation5 + $0x10] sm:$0xff] %vm106_vm0, %v2561_v40  ;;  %v7595_v21 = vpack.c.bf16 %v6681_v8, %v6683_v43  ;;  %v4678_v8 = vld [vmem:[#allocation2 + $0xb0] sm:$0xff] }
 0x3ab   :  { %v6689_v4 = vmul.f32 %v2873_v35, %v2873_v35 }
 0x3ac   :  { %v6691_v53 = vmul.f32 %v2872_v12, %v2872_v12  ;;  %v4348_v0 = vpop.f32.mrb[4].mxu1  ;;  %v4661_v12 = vld [vmem:[#allocation2 + $0x38] sm:$0xff] }
 0x3ad   :  { %v2875_v61 = vsub.f32 %v4348_v0, %v4659_v1  ;;  %3490 = vst.msk [vmem:[#allocation5 + $0x28] sm:$0xff] %vm106_vm0, %v4348_v0  ;;  %v2571_v27 = vpop.f32.mrb[5].mxu1 }
 0x3ae   :  { %v2874_v7 = vsub.f32 %v2571_v27, %v4660_v54  ;;  %3489 = vst.msk [vmem:[#allocation5 + $0x20] sm:$0xff] %vm106_vm0, %v2571_v27 }
 0x3af   :  { %v6697_v22 = vmul.f32 %v2875_v61, %v2875_v61 }
 0x3b0   :  { %v6699_v40 = vmul.f32 %v2874_v7, %v2874_v7  ;;  %v4351_v35 = vpop.f32.mrb[6].mxu1  ;;  %v4663_v7 = vld [vmem:[#allocation2 + $0x48] sm:$0xff] }
 0x3b1   :  { %v2877_v33 = vsub.f32 %v4351_v35, %v4661_v12  ;;  %3492 = vst.msk [vmem:[#allocation5 + $0x38] sm:$0xff] %vm106_vm0, %v4351_v35  ;;  %v2581_v1 = vpop.f32.mrb[7].mxu1 }
 0x3b2   :  { %v2876_v51 = vsub.f32 %v2581_v1, %v4662_v25  ;;  %3491 = vst.msk [vmem:[#allocation5 + $0x30] sm:$0xff] %vm106_vm0, %v2581_v1 }
 0x3b3   :  { %v6705_v54 = vmul.f32 %v2877_v33, %v2877_v33 }
 0x3b4   :  { %v6707_v27 = vmul.f32 %v2876_v51, %v2876_v51  ;;  %v4354_v61 = vpop.f32.mrb[8].mxu1  ;;  %v4665_v51 = vld [vmem:[#allocation2 + $0x58] sm:$0xff] }
 0x3b5   :  { %v2879_v6 = vsub.f32 %v4354_v61, %v4663_v7  ;;  %3494 = vst.msk [vmem:[#allocation5 + $0x48] sm:$0xff] %vm106_vm0, %v4354_v61  ;;  %v2591_v12 = vpop.f32.mrb[9].mxu1 }
 0x3b6   :  { %v2878_v42 = vsub.f32 %v2591_v12, %v4664_v3  ;;  %3493 = vst.msk [vmem:[#allocation5 + $0x40] sm:$0xff] %vm106_vm0, %v2591_v12 }
 0x3b7   :  { %v6713_v25 = vmul.f32 %v2879_v6, %v2879_v6 }
 0x3b8   :  { %v6715_v1 = vmul.f32 %v2878_v42, %v2878_v42  ;;  %v4357_v33 = vpop.f32.mrb[10].mxu1  ;;  %v4667_v42 = vld [vmem:[#allocation2 + $0x68] sm:$0xff] }
 0x3b9   :  { %v2881_v0 = vsub.f32 %v4357_v33, %v4665_v51  ;;  %3496 = vst.msk [vmem:[#allocation5 + $0x58] sm:$0xff] %vm106_vm0, %v4357_v33  ;;  %v2601_v7 = vpop.f32.mrb[11].mxu1 }
 0x3ba   :  { %v2880_v19 = vsub.f32 %v2601_v7, %v4666_v58  ;;  %3495 = vst.msk [vmem:[#allocation5 + $0x50] sm:$0xff] %vm106_vm0, %v2601_v7 }
 0x3bb   :  { %v6721_v3 = vmul.f32 %v2881_v0, %v2881_v0 }
 0x3bc   :  { %v6723_v12 = vmul.f32 %v2880_v19, %v2880_v19  ;;  %v4360_v6 = vpop.f32.mrb[12].mxu1  ;;  %v4669_v19 = vld [vmem:[#allocation2 + $0x78] sm:$0xff] }
 0x3bd   :  { %v2883_v35 = vsub.f32 %v4360_v6, %v4667_v42  ;;  %3498 = vst.msk [vmem:[#allocation5 + $0x68] sm:$0xff] %vm106_vm0, %v4360_v6  ;;  %v2611_v51 = vpop.f32.mrb[13].mxu1 }
 0x3be   :  { %v2882_v36 = vsub.f32 %v2611_v51, %v4668_v37  ;;  %3497 = vst.msk [vmem:[#allocation5 + $0x60] sm:$0xff] %vm106_vm0, %v2611_v51 }
 0x3bf   :  { %v6729_v58 = vmul.f32 %v2883_v35, %v2883_v35 }
 0x3c0   :  { %v6731_v7 = vmul.f32 %v2882_v36, %v2882_v36  ;;  %v4363_v0 = vpop.f32.mrb[14].mxu1  ;;  %v4671_v36 = vld [vmem:[#allocation2 + $0x88] sm:$0xff] }
 0x3c1   :  { %v2885_v61 = vsub.f32 %v4363_v0, %v4669_v19  ;;  %3500 = vst.msk [vmem:[#allocation5 + $0x78] sm:$0xff] %vm106_vm0, %v4363_v0  ;;  %v2621_v42 = vpop.f32.mrb[15].mxu1  ;;  %v4674_v0 = vld [vmem:[#allocation2 + $0x90] sm:$0xff] }
 0x3c2   :  { %v2884_v20 = vsub.f32 %v2621_v42, %v4670_v26  ;;  %3499 = vst.msk [vmem:[#allocation5 + $0x70] sm:$0xff] %vm106_vm0, %v2621_v42 }
 0x3c3   :  { %v6737_v37 = vmul.f32 %v2885_v61, %v2885_v61  ;;  %v4673_v61 = vld [vmem:[#allocation2 + $0x98] sm:$0xff] }
 0x3c4   :  { %v6739_v51 = vmul.f32 %v2884_v20, %v2884_v20  ;;  %v4366_v35 = vpop.f32.mrb[16].mxu1 }
 0x3c5   :  { %v2887_v33 = vsub.f32 %v4366_v35, %v4671_v36  ;;  %3502 = vst.msk [vmem:[#allocation5 + $0x88] sm:$0xff] %vm106_vm0, %v4366_v35  ;;  %v2631_v19 = vpop.f32.mrb[17].mxu1  ;;  %v7630_v35 = vld [vmem:[#allocation11_spill] sm:$0xff] }
 0x3c6   :  { %v2886_v31 = vsub.f32 %v2631_v19, %v4672_v47  ;;  %3501 = vst.msk [vmem:[#allocation5 + $0x80] sm:$0xff] %vm106_vm0, %v2631_v19  ;;  %v4675_v19 = vld [vmem:[#allocation2 + $0xa8] sm:$0xff] }
 0x3c7   :  { %v2951_v26 = vmul.f32 %v2887_v33, %v2887_v33 }
 0x3c8   :  { %v2950_v6 = vmul.f32 %v2886_v31, %v2886_v31  ;;  %v4369_v42 = vpop.f32.mrb[18].mxu1 }
 0x3c9   :  { %v2889_v62 = vsub.f32 %v4369_v42, %v4673_v61  ;;  %3504 = vst.msk [vmem:[#allocation5 + $0x98] sm:$0xff] %vm106_vm0, %v4369_v42  ;;  %v2641_v20 = vpop.f32.mrb[19].mxu1 }
 0x3ca   :  { %v4448_v36 = vpack.c.bf16 %v2951_v26, %v2950_v6  ;;  %v2888_v38 = vsub.f32 %v2641_v20, %v4674_v0  ;;  %3503 = vst.msk [vmem:[#allocation5 + $0x90] sm:$0xff] %vm106_vm0, %v2641_v20  ;;  %v4676_v0 = vld [vmem:[#allocation2 + $0xa0] sm:$0xff] }
 0x3cb   :  { %v2953_v47 = vmul.f32 %v2889_v62, %v2889_v62 }
 0x3cc   :  { %v2952_v33 = vmul.f32 %v2888_v38, %v2888_v38  ;;  %v4372_v31 = vpop.f32.mrb[20].mxu1  ;;  %4450 = vmatprep.subr.msk.bf16.mxu0 %vm6748_vm12, %v4448_v36  ;;  %v4677_v36 = vld [vmem:[#allocation2 + $0xb8] sm:$0xff] }
 0x3cd   :  { %v2891_v42 = vsub.f32 %v4372_v31, %v4675_v19  ;;  %3506 = vst.msk [vmem:[#allocation5 + $0xa8] sm:$0xff] %vm106_vm0, %v4372_v31  ;;  %v2651_v61 = vpop.f32.mrb[21].mxu1  ;;  %4453 = vmatpush3.bf16.xpose.msk.msra.mxu0 %vm6748_vm12, %v7595_v21 }
 0x3ce   :  { %v4454_v6 = vpack.c.bf16 %v2953_v47, %v2952_v33  ;;  %v2890_v26 = vsub.f32 %v2651_v61, %v4676_v0  ;;  %3505 = vst.msk [vmem:[#allocation5 + $0xa0] sm:$0xff] %vm106_vm0, %v2651_v61  ;;  %v4679_v61 = vld [vmem:[#allocation2 + $0xc8] sm:$0xff] }
 0x3cf   :  { %v2955_v62 = vmul.f32 %v2891_v42, %v2891_v42 }
 0x3d0   :  { %v2954_v38 = vmul.f32 %v2890_v26, %v2890_v26  ;;  %v4375_v20 = vpop.f32.mrb[22].mxu1  ;;  %4456 = vmatprep.subr.msk.bf16.mxu0 %vm6748_vm12, %v4454_v6  ;;  %v7596_v6 = vpack.c.bf16 %v6689_v4, %v6691_v53  ;;  %v4682_v53 = vld [vmem:[#allocation2 + $0xd0] sm:$0xff] }
 0x3d1   :  { %v2893_v31 = vsub.f32 %v4375_v20, %v4677_v36  ;;  %3508 = vst.msk [vmem:[#allocation5 + $0xb8] sm:$0xff] %vm106_vm0, %v4375_v20  ;;  %v2661_v19 = vpop.f32.mrb[23].mxu1 }
 0x3d2   :  { %v4460_v43 = vpack.c.bf16 %v2955_v62, %v2954_v38  ;;  %v2892_v24 = vsub.f32 %v2661_v19, %v4678_v8  ;;  %3507 = vst.msk [vmem:[#allocation5 + $0xb0] sm:$0xff] %vm106_vm0, %v2661_v19  ;;  %v4680_v62 = vld [vmem:[#allocation2 + $0xc0] sm:$0xff] }
 0x3d3   :  { %v2957_v21 = vmul.f32 %v2893_v31, %v2893_v31  ;;  %v4681_v31 = vld [vmem:[#allocation2 + $0xd8] sm:$0xff] }
 0x3d4   :  { %v2956_v47 = vmul.f32 %v2892_v24, %v2892_v24  ;;  %v4378_v33 = vpop.f32.mrb[24].mxu1 }
 0x3d5   :  { %v2895_v42 = vsub.f32 %v4378_v33, %v4679_v61  ;;  %3510 = vst.msk [vmem:[#allocation5 + $0xc8] sm:$0xff] %vm106_vm0, %v4378_v33  ;;  %v2671_v0 = vpop.f32.mrb[25].mxu1  ;;  %4459 = vmatpush3.bf16.xpose.msk.msra.mxu0 %vm6748_vm12, %v7596_v6  ;;  %v7597_v61 = vpack.c.bf16 %v6697_v22, %v6699_v40  ;;  %v4685_v40 = vld [vmem:[#allocation2 + $0xf8] sm:$0xff] }
 0x3d6   :  { %v4466_v26 = vpack.c.bf16 %v2957_v21, %v2956_v47  ;;  %v2894_v38 = vsub.f32 %v2671_v0, %v4680_v62  ;;  %3509 = vst.msk [vmem:[#allocation5 + $0xc0] sm:$0xff] %vm106_vm0, %v2671_v0  ;;  %4462 = vmatprep.subr.msk.bf16.mxu0 %vm6748_vm12, %v4460_v43  ;;  %v4683_v0 = vld [vmem:[#allocation2 + $0xe8] sm:$0xff] }
 0x3d7   :  { %v2959_v24 = vmul.f32 %v2895_v42, %v2895_v42 }
 0x3d8   :  { %v2958_v20 = vmul.f32 %v2894_v38, %v2894_v38  ;;  %v4381_v36 = vpop.f32.mrb[26].mxu1  ;;  %v4684_v38 = vld [vmem:[#allocation2 + $0xe0] sm:$0xff] }
 0x3d9   :  { %v2897_v19 = vsub.f32 %v4381_v36, %v4681_v31  ;;  %3512 = vst.msk [vmem:[#allocation5 + $0xd8] sm:$0xff] %vm106_vm0, %v4381_v36  ;;  %v2681_v8 = vpop.f32.mrb[27].mxu1 }
 0x3da   :  { %v4472_v4 = vpack.c.bf16 %v2959_v24, %v2958_v20  ;;  %v2896_v33 = vsub.f32 %v2681_v8, %v4682_v53  ;;  %3511 = vst.msk [vmem:[#allocation5 + $0xd0] sm:$0xff] %vm106_vm0, %v2681_v8  ;;  %v4686_v53 = vld [vmem:[#allocation2 + $0xf0] sm:$0xff] }
 0x3db   :  { %v2961_v21 = vmul.f32 %v2897_v19, %v2897_v19 }
 0x3dc   :  { %v2960_v47 = vmul.f32 %v2896_v33, %v2896_v33 }
 0x3dd   :  { %4465 = vmatpush3.bf16.xpose.msk.msra.mxu0 %vm6748_vm12, %v7597_v61 }
 0x3de   :  { %v4478_v43 = vpack.c.bf16 %v2961_v21, %v2960_v47  ;;  %4468 = vmatprep.subr.msk.bf16.mxu0 %vm6748_vm12, %v4466_v26  ;;  %v7598_v26 = vpack.c.bf16 %v6705_v54, %v6707_v27  ;;  %v7599_v27 = vpack.c.bf16 %v6713_v25, %v6715_v1 }
 0x3e0   :  { %v4384_v42 = vpop.f32.mrb[28].mxu1 }
 0x3e1   :  { %v2899_v6 = vsub.f32 %v4384_v42, %v4683_v0  ;;  %3514 = vst.msk [vmem:[#allocation5 + $0xe8] sm:$0xff] %vm106_vm0, %v4384_v42  ;;  %v2691_v62 = vpop.f32.mrb[29].mxu1  ;;  %v4687_v0 = vld [vmem:[#allocation2 + $0x108] sm:$0xff] }
 0x3e2   :  { %v2898_v24 = vsub.f32 %v2691_v62, %v4684_v38  ;;  %3513 = vst.msk [vmem:[#allocation5 + $0xe0] sm:$0xff] %vm106_vm0, %v2691_v62  ;;  %v4688_v62 = vld [vmem:[#allocation2 + $0x100] sm:$0xff] }
 0x3e3   :  { %v2963_v20 = vmul.f32 %v2899_v6, %v2899_v6 }
 0x3e4   :  { %v2962_v36 = vmul.f32 %v2898_v24, %v2898_v24  ;;  %v4387_v22 = vpop.f32.mrb[30].mxu1 }
 0x3e5   :  { %v2901_v31 = vsub.f32 %v4387_v22, %v4685_v40  ;;  %3516 = vst.msk [vmem:[#allocation5 + $0xf8] sm:$0xff] %vm106_vm0, %v4387_v22  ;;  %v2701_v19 = vpop.f32.mrb[31].mxu1  ;;  %4471 = vmatpush3.bf16.xpose.msk.msra.mxu0 %vm6748_vm12, %v7598_v26  ;;  %v4690_v40 = vld [vmem:[#allocation2 + $0x110] sm:$0xff]  ;;  %v7600_v26 = vpack.c.bf16 %v6721_v3, %v6723_v12 }
 0x3e6   :  { %v4484_v8 = vpack.c.bf16 %v2963_v20, %v2962_v36  ;;  %v2900_v33 = vsub.f32 %v2701_v19, %v4686_v53  ;;  %3515 = vst.msk [vmem:[#allocation5 + $0xf0] sm:$0xff] %vm106_vm0, %v2701_v19  ;;  %4474 = vmatprep.subr.msk.bf16.mxu0 %vm6748_vm12, %v4472_v4  ;;  %v4689_v36 = vld [vmem:[#allocation2 + $0x118] sm:$0xff] }
 0x3e7   :  { %v2965_v21 = vmul.f32 %v2901_v31, %v2901_v31 }
 0x3e8   :  { %v2964_v47 = vmul.f32 %v2900_v33, %v2900_v33 }
 0x3ea   :  { %v4490_v61 = vpack.c.bf16 %v2965_v21, %v2964_v47  ;;  %v4691_v21 = vld [vmem:[#allocation2 + $0x128] sm:$0xff] }
 0x3ec   :  { %v4390_v42 = vpop.f32.mrb[32].mxu1 }
 0x3ed   :  { %v2903_v6 = vsub.f32 %v4390_v42, %v4687_v0  ;;  %3518 = vst.msk [vmem:[#allocation5 + $0x108] sm:$0xff] %vm106_vm0, %v4390_v42  ;;  %v2711_v54 = vpop.f32.mrb[33].mxu1  ;;  %4477 = vmatpush3.bf16.xpose.msk.msra.mxu0 %vm6748_vm12, %v7599_v27  ;;  %v4692_v0 = vld [vmem:[#allocation2 + $0x120] sm:$0xff]  ;;  %v4693_v27 = vld [vmem:[#allocation2 + $0x138] sm:$0xff] }
 0x3ee   :  { %v2902_v38 = vsub.f32 %v2711_v54, %v4688_v62  ;;  %3517 = vst.msk [vmem:[#allocation5 + $0x100] sm:$0xff] %vm106_vm0, %v2711_v54  ;;  %4480 = vmatprep.subr.msk.bf16.mxu0 %vm6748_vm12, %v4478_v43 }
 0x3ef   :  { %v6804_v4 = vmul.f32 %v2903_v6, %v2903_v6 }
 0x3f0   :  { %v6806_v24 = vmul.f32 %v2902_v38, %v2902_v38  ;;  %v4393_v20 = vpop.f32.mrb[34].mxu1  ;;  %v7601_v38 = vpack.c.bf16 %v6729_v58, %v6731_v7 }
 0x3f1   :  { %v2905_v22 = vsub.f32 %v4393_v20, %v4689_v36  ;;  %3520 = vst.msk [vmem:[#allocation5 + $0x118] sm:$0xff] %vm106_vm0, %v4393_v20  ;;  %v2721_v25 = vpop.f32.mrb[35].mxu1  ;;  %v4694_v36 = vld [vmem:[#allocation2 + $0x130] sm:$0xff] }
 0x3f2   :  { %v4499_v1 = vpack.c.bf16 %v6804_v4, %v6806_v24  ;;  %v2904_v31 = vsub.f32 %v2721_v25, %v4690_v40  ;;  %3519 = vst.msk [vmem:[#allocation5 + $0x110] sm:$0xff] %vm106_vm0, %v2721_v25  ;;  %v7611_v4 = vpack.c.bf16 %v6208_v29, %v6205_v32 }
 0x3f3   :  { %v6812_v19 = vmul.f32 %v2905_v22, %v2905_v22 }
 0x3f4   :  { %v6814_v43 = vmul.f32 %v2904_v31, %v2904_v31 }
 0x3f5   :  { %4483 = vmatpush3.bf16.xpose.msk.msra.mxu0 %vm6748_vm12, %v7600_v26  ;;  %v4695_v26 = vld [vmem:[#allocation2 + $0x148] sm:$0xff] }
 0x3f6   :  { %v4505_v53 = vpack.c.bf16 %v6812_v19, %v6814_v43  ;;  %4486 = vmatprep.subr.msk.bf16.mxu0 %vm6748_vm12, %v4484_v8  ;;  %v7613_v19 = vpack.c.bf16 %v6224_v5, %v6221_v16 }
 0x3f8   :  { %v4396_v33 = vpop.f32.mrb[36].mxu1 }
 0x3f9   :  { %v2907_v47 = vsub.f32 %v4396_v33, %v4691_v21  ;;  %3522 = vst.msk [vmem:[#allocation5 + $0x128] sm:$0xff] %vm106_vm0, %v4396_v33  ;;  %v2731_v42 = vpop.f32.mrb[37].mxu1  ;;  %v4696_v21 = vld [vmem:[#allocation2 + $0x140] sm:$0xff] }
 0x3fa   :  { %v2906_v6 = vsub.f32 %v2731_v42, %v4692_v0  ;;  %3521 = vst.msk [vmem:[#allocation5 + $0x120] sm:$0xff] %vm106_vm0, %v2731_v42 }
 0x3fb   :  { %v6827_v3 = vmul.f32 %v2907_v47, %v2907_v47 }
 0x3fc   :  { %v6829_v12 = vmul.f32 %v2906_v6, %v2906_v6  ;;  %v4399_v54 = vpop.f32.mrb[38].mxu1 }
 0x3fd   :  { %v2909_v62 = vsub.f32 %v4399_v54, %v4693_v27  ;;  %3524 = vst.msk [vmem:[#allocation5 + $0x138] sm:$0xff] %vm106_vm0, %v4399_v54  ;;  %v2741_v8 = vpop.f32.mrb[39].mxu1  ;;  %4489 = vmatpush3.bf16.xpose.msk.msra.mxu0 %vm6748_vm12, %v7601_v38  ;;  %v4697_v54 = vld [vmem:[#allocation2 + $0x158] sm:$0xff] }
 0x3fe   :  { %v4511_v20 = vpack.c.bf16 %v6827_v3, %v6829_v12  ;;  %v2908_v22 = vsub.f32 %v2741_v8, %v4694_v36  ;;  %3523 = vst.msk [vmem:[#allocation5 + $0x130] sm:$0xff] %vm106_vm0, %v2741_v8  ;;  %4492 = vmatprep.subr.msk.bf16.mxu0 %vm6748_vm12, %v4490_v61  ;;  %v7604_v8 = vpack.c.bf16 %v6737_v37, %v6739_v51  ;;  %v4698_v36 = vld [vmem:[#allocation2 + $0x150] sm:$0xff]  ;;  %v4699_v51 = vld [vmem:[#allocation2 + $0x168] sm:$0xff] }
 0x3ff   :  { %v6842_v25 = vmul.f32 %v2909_v62, %v2909_v62  ;;  %v7616_v12 = vpack.c.bf16 %v6382_v60, %v6379_v28 }
 0x400   :  { %v6844_v40 = vmul.f32 %v2908_v22, %v2908_v22  ;;  %v4402_v31 = vpop.f32.mrb[40].mxu1 }
 0x401   :  { %v2911_v58 = vsub.f32 %v4402_v31, %v4695_v26  ;;  %3526 = vst.msk [vmem:[#allocation5 + $0x148] sm:$0xff] %vm106_vm0, %v4402_v31  ;;  %v2751_v7 = vpop.f32.mrb[41].mxu1  ;;  %v7605_v31 = vpack.c.bf16 %v6304_v49, %v6301_v39 }
 0x402   :  { %v4517_v33 = vpack.c.bf16 %v6842_v25, %v6844_v40  ;;  %v2910_v47 = vsub.f32 %v2751_v7, %v4696_v21  ;;  %3525 = vst.msk [vmem:[#allocation5 + $0x140] sm:$0xff] %vm106_vm0, %v2751_v7  ;;  %v7618_v25 = vpack.c.bf16 %v6398_v9, %v6395_v56  ;;  %v7625_v9 = vld [vmem:[#allocation9_spill] sm:$0xff]  ;;  %v7628_v40 = vld [vmem:[#allocation39_spill] sm:$0xff] }
 0x403   :  { %v6850_v42 = vmul.f32 %v2911_v58, %v2911_v58 }
 0x404   :  { %v6858_v0 = vmul.f32 %v2910_v47, %v2910_v47  ;;  %v4405_v6 = vpop.f32.mrb[42].mxu1 }
 0x405   :  { %v2913_v27 = vsub.f32 %v4405_v6, %v4697_v54  ;;  %3528 = vst.msk [vmem:[#allocation5 + $0x158] sm:$0xff] %vm106_vm0, %v4405_v6  ;;  %v2761_v62 = vpop.f32.mrb[43].mxu1  ;;  %4495 = vmatpush3.bf16.xpose.msk.msra.mxu0 %vm6748_vm12, %v7604_v8  ;;  %v4700_v6 = vld [vmem:[#allocation2 + $0x160] sm:$0xff]  ;;  %v4701_v8 = vld [vmem:[#allocation2 + $0x178] sm:$0xff] }
 0x406   :  { %v4523_v38 = vpack.c.bf16 %v6850_v42, %v6858_v0  ;;  %v2912_v22 = vsub.f32 %v2761_v62, %v4698_v36  ;;  %3527 = vst.msk [vmem:[#allocation5 + $0x150] sm:$0xff] %vm106_vm0, %v2761_v62  ;;  %4546 = vmatprep.subr.msk.bf16.mxu0 %vm6854_vm13, %v7605_v31  ;;  %v7606_v62 = vmov 1.0   ;;  %v7607_v31 = vpack.c.bf16 %v6176_v55, %v6173_v17  ;;  %v4703_v55 = vld [vmem:[#allocation2 + $0x188] sm:$0xff]  ;;  %v7631_v42 = vld [vmem:[#allocation50_spill] sm:$0xff] }
 0x407   :  { %v6874_v26 = vmul.f32 %v2913_v27, %v2913_v27  ;;  %v7632_v0 = vpack.c.bf16 %v7630_v35, %v7631_v42 }
 0x408   :  { %v6876_v58 = vmul.f32 %v2912_v22, %v2912_v22  ;;  %v4408_v37 = vpop.f32.mrb[44].mxu1 }
 0x409   :  { %v2915_v7 = vsub.f32 %v4408_v37, %v4699_v51  ;;  %3530 = vst.msk [vmem:[#allocation5 + $0x168] sm:$0xff] %vm106_vm0, %v4408_v37  ;;  %v2771_v21 = vpop.f32.mrb[45].mxu1  ;;  %v4702_v51 = vld [vmem:[#allocation2 + $0x170] sm:$0xff] }
 0x40a   :  { %v4529_v47 = vpack.c.bf16 %v6874_v26, %v6876_v58  ;;  %v2914_v54 = vsub.f32 %v2771_v21, %v4700_v6  ;;  %3529 = vst.msk [vmem:[#allocation5 + $0x160] sm:$0xff] %vm106_vm0, %v2771_v21  ;;  %v7608_v21 = vpack.c.bf16 %v6320_v45, %v6317_v14  ;;  %v4704_v14 = vld [vmem:[#allocation2 + $0x180] sm:$0xff] }
 0x40b   :  { %v6882_v39 = vmul.f32 %v2915_v7, %v2915_v7  ;;  %v7634_v26 = vld [vmem:[#allocation40_spill] sm:$0xff] }
 0x40c   :  { %v6884_v49 = vmul.f32 %v2914_v54, %v2914_v54  ;;  %v4411_v27 = vpop.f32.mrb[46].mxu1  ;;  %4129 = vmatmul.mubr.msk.f32.vlgmr.msra.gmra.mrb[64].mxu0 %vm106_vm0, %v7606_v62 }
 0x40d   :  { %v2917_v36 = vsub.f32 %v4411_v27, %v4701_v8  ;;  %3532 = vst.msk [vmem:[#allocation5 + $0x178] sm:$0xff] %vm106_vm0, %v4411_v27  ;;  %v2781_v22 = vpop.f32.mrb[47].mxu1  ;;  %4549 = vmatpush3.bf16.xpose.msk.msra.mxu0 %vm6854_vm13, %v7607_v31  ;;  %v6908_v31 = vcvt.s32.f32 %v7540_v59  ;;  %v7609_v59 = vpack.c.bf16 %v6192_v10, %v6189_v11  ;;  %v4707_v11 = vld [vmem:[#allocation2 + $0x1a8] sm:$0xff] }
 0x40e   :  { %v4535_v37 = vpack.c.bf16 %v6882_v39, %v6884_v49  ;;  %v2916_v7 = vsub.f32 %v2781_v22, %v4702_v51  ;;  %3531 = vst.msk [vmem:[#allocation5 + $0x170] sm:$0xff] %vm106_vm0, %v2781_v22  ;;  %4552 = vmatprep.subr.msk.bf16.mxu0 %vm6854_vm13, %v7608_v21  ;;  %v4705_v21 = vld [vmem:[#allocation2 + $0x198] sm:$0xff]  ;;  %v4706_v22 = vld [vmem:[#allocation2 + $0x190] sm:$0xff]  ;;  %v7637_v39 = vld [vmem:[#allocation52_spill] sm:$0xff] }
 0x40f   :  { %v6902_v6 = vmul.f32 %v2917_v36, %v2917_v36  ;;  %4196 = vmatprep.mubr.msk.f32.mxu0 %vm820_vm1, %v6908_v31 }
 0x410   :  { %v6904_v54 = vmul.f32 %v2916_v7, %v2916_v7  ;;  %v4414_v17 = vpop.f32.mrb[48].mxu1 }
 0x411   :  { %v2919_v27 = vsub.f32 %v4414_v17, %v4703_v55  ;;  %3534 = vst.msk [vmem:[#allocation5 + $0x188] sm:$0xff] %vm106_vm0, %v4414_v17  ;;  %v2791_v8 = vpop.f32.mrb[49].mxu1 }
 0x412   :  { %v2918_v45 = vsub.f32 %v2791_v8, %v4704_v14  ;;  %3533 = vst.msk [vmem:[#allocation5 + $0x180] sm:$0xff] %vm106_vm0, %v2791_v8  ;;  %v7623_v56 = vpack.c.bf16 %v6902_v6, %v6904_v54  ;;  %v7642_v54 = vld [vmem:[#allocation54_spill] sm:$0xff] }
 0x413   :  { %v2983_v36 = vmul.f32 %v2919_v27, %v2919_v27  ;;  %v7610_v27 = vpack.c.bf16 %v6336_v46, %v6333_v63  ;;  %v4708_v46 = vld [vmem:[#allocation2 + $0x1a0] sm:$0xff] }
 0x414   :  { %v2982_v51 = vmul.f32 %v2918_v45, %v2918_v45  ;;  %v4417_v7 = vpop.f32.mrb[50].mxu1 }
 0x415   :  { %v2921_v55 = vsub.f32 %v4417_v7, %v4705_v21  ;;  %3536 = vst.msk [vmem:[#allocation5 + $0x198] sm:$0xff] %vm106_vm0, %v4417_v7  ;;  %v2801_v17 = vpop.f32.mrb[51].mxu1  ;;  %4555 = vmatpush3.bf16.xpose.msk.msra.mxu0 %vm6854_vm13, %v7609_v59  ;;  %v4709_v59 = vld [vmem:[#allocation2 + $0x1b8] sm:$0xff] }
 0x416   :  { %v4496_v14 = vpack.c.bf16 %v2983_v36, %v2982_v51  ;;  %v2920_v8 = vsub.f32 %v2801_v17, %v4706_v22  ;;  %3535 = vst.msk [vmem:[#allocation5 + $0x190] sm:$0xff] %vm106_vm0, %v2801_v17  ;;  %4558 = vmatprep.subr.msk.bf16.mxu0 %vm6854_vm13, %v7610_v27 }
 0x417   :  { %v2985_v45 = vmul.f32 %v2921_v55, %v2921_v55 }
 0x418   :  { %v2984_v7 = vmul.f32 %v2920_v8, %v2920_v8  ;;  %v4420_v21 = vpop.f32.mrb[52].mxu1  ;;  %4498 = vmatprep.subr.msk.bf16.mxu1 %vm6748_vm12, %v4496_v14 }
 0x419   :  { %v2923_v10 = vsub.f32 %v4420_v21, %v4707_v11  ;;  %3538 = vst.msk [vmem:[#allocation5 + $0x1a8] sm:$0xff] %vm106_vm0, %v4420_v21  ;;  %v2811_v36 = vpop.f32.mrb[53].mxu1  ;;  %4501 = vmatpush3.bf16.xpose.msk.msra.mxu1 %vm6748_vm12, %v4499_v1  ;;  %v4710_v1 = vld [vmem:[#allocation2 + $0x1b0] sm:$0xff] }
 0x41a   :  { %v4502_v63 = vpack.c.bf16 %v2985_v45, %v2984_v7  ;;  %v2922_v22 = vsub.f32 %v2811_v36, %v4708_v46  ;;  %3537 = vst.msk [vmem:[#allocation5 + $0x1a0] sm:$0xff] %vm106_vm0, %v2811_v36  ;;  %v7612_v45 = vpack.c.bf16 %v6351_v57, %v6348_v18 }
 0x41b   :  { %v2987_v51 = vmul.f32 %v2923_v10, %v2923_v10  ;;  %v4711_v10 = vld [vmem:[#allocation2 + $0x1c8] sm:$0xff] }
 0x41c   :  { %v2986_v55 = vmul.f32 %v2922_v22, %v2922_v22  ;;  %v4423_v17 = vpop.f32.mrb[54].mxu1  ;;  %4504 = vmatprep.subr.msk.bf16.mxu1 %vm6748_vm12, %v4502_v63  ;;  %v4712_v63 = vld [vmem:[#allocation2 + $0x1c0] sm:$0xff] }
 0x41d   :  { %v2925_v14 = vsub.f32 %v4423_v17, %v4709_v59  ;;  %3540 = vst.msk [vmem:[#allocation5 + $0x1b8] sm:$0xff] %vm106_vm0, %v4423_v17  ;;  %v2821_v8 = vpop.f32.mrb[55].mxu1  ;;  %4561 = vmatpush3.bf16.xpose.msk.msra.mxu0 %vm6854_vm13, %v7611_v4 }
 0x41e   :  { %v4508_v24 = vpack.c.bf16 %v2987_v51, %v2986_v55  ;;  %v2924_v27 = vsub.f32 %v2821_v8, %v4710_v1  ;;  %3539 = vst.msk [vmem:[#allocation5 + $0x1b0] sm:$0xff] %vm106_vm0, %v2821_v8  ;;  %4564 = vmatprep.subr.msk.bf16.mxu0 %vm6854_vm13, %v7612_v45  ;;  %v4713_v51 = vld [vmem:[#allocation2 + $0x1d8] sm:$0xff]  ;;  %v4715_v1 = vld [vmem:[#allocation2 + $0x1e8] sm:$0xff]  ;;  %v4716_v45 = vld [vmem:[#allocation2 + $0x1e0] sm:$0xff] }
 0x41f   :  { %v2989_v7 = vmul.f32 %v2925_v14, %v2925_v14  ;;  %v7614_v14 = vpack.c.bf16 %v6366_v34, %v6363_v41 }
 0x420   :  { %v2988_v21 = vmul.f32 %v2924_v27, %v2924_v27  ;;  %v4426_v11 = vpop.f32.mrb[56].mxu1 }
 0x421   :  { %v2927_v36 = vsub.f32 %v4426_v11, %v4711_v10  ;;  %3542 = vst.msk [vmem:[#allocation5 + $0x1c8] sm:$0xff] %vm106_vm0, %v4426_v11  ;;  %v2831_v32 = vpop.f32.mrb[57].mxu1  ;;  %4507 = vmatpush3.bf16.xpose.msk.msra.mxu1 %vm6748_vm12, %v4505_v53  ;;  %v4714_v53 = vld [vmem:[#allocation2 + $0x1d0] sm:$0xff]  ;;  %v4717_v11 = vld [vmem:[#allocation2 + $0x1f8] sm:$0xff] }
 0x422   :  { %v4514_v29 = vpack.c.bf16 %v2989_v7, %v2988_v21  ;;  %v2926_v18 = vsub.f32 %v2831_v32, %v4712_v63  ;;  %3541 = vst.msk [vmem:[#allocation5 + $0x1c0] sm:$0xff] %vm106_vm0, %v2831_v32  ;;  %4510 = vmatprep.subr.msk.bf16.mxu1 %vm6748_vm12, %v4508_v24  ;;  %v7615_v21 = vpack.c.bf16 %v6240_v13, %v6237_v23  ;;  %v4718_v23 = vld [vmem:[#allocation2 + $0x1f0] sm:$0xff]  ;;  %v7643_v63 = vld [vmem:[#allocation12_spill] sm:$0xff] }
 0x423   :  { %v2991_v57 = vmul.f32 %v2927_v36, %v2927_v36  ;;  %v7617_v32 = vpack.c.bf16 %v6256_v2, %v6253_v52  ;;  %v7619_v52 = vpack.c.bf16 %v6272_v30, %v6269_v15  ;;  %v7620_v2 = vpack.c.bf16 %v6414_v50, %v6411_v48  ;;  %v7621_v15 = vld [vmem:[#allocation46_spill] sm:$0xff]  ;;  %v7627_v50 = vld [vmem:[#allocation48_spill] sm:$0xff] }
 0x424   :  { %v2990_v46 = vmul.f32 %v2926_v18, %v2926_v18  ;;  %v4429_v22 = vpop.f32.mrb[58].mxu1  ;;  %v7622_v30 = vpack.c.bf16 %v6288_v44, %v7621_v15  ;;  %v7624_v44 = vld [vmem:[#allocation10_spill] sm:$0xff]  ;;  %v7644_v18 = vpack.c.bf16 %v7642_v54, %v7643_v63 }
 0x425   :  { %v2929_v55 = vsub.f32 %v4429_v22, %v4713_v51  ;;  %3544 = vst.msk [vmem:[#allocation5 + $0x1d8] sm:$0xff] %vm106_vm0, %v4429_v22  ;;  %v2841_v17 = vpop.f32.mrb[59].mxu1  ;;  %4567 = vmatpush3.bf16.xpose.msk.msra.mxu0 %vm6854_vm13, %v7613_v19  ;;  %v7626_v48 = vpack.c.bf16 %v7624_v44, %v7625_v9  ;;  %v7648_v51 = vld [vmem:[#allocation13_spill] sm:$0xff]  ;;  %v7651_v19 = vld [vmem:[#allocation60_spill] sm:$0xff] }
 0x426   :  { %v4520_v43 = vpack.c.bf16 %v2991_v57, %v2990_v46  ;;  %v2928_v59 = vsub.f32 %v2841_v17, %v4714_v53  ;;  %3543 = vst.msk [vmem:[#allocation5 + $0x1d0] sm:$0xff] %vm106_vm0, %v2841_v17  ;;  %4570 = vmatprep.subr.msk.bf16.mxu0 %vm6854_vm13, %v7614_v14  ;;  %v7645_v57 = vld [vmem:[#allocation45_spill] sm:$0xff]  ;;  %v7646_v46 = vld [vmem:[#allocation56_spill] sm:$0xff] }
 0x427   :  { %v2993_v8 = vmul.f32 %v2929_v55, %v2929_v55  ;;  %v7647_v22 = vpack.c.bf16 %v7645_v57, %v7646_v46  ;;  %v7649_v55 = vld [vmem:[#allocation55_spill] sm:$0xff]  ;;  %v7655_v14 = vld [vmem:[#allocation57_spill] sm:$0xff] }
 0x428   :  { %v2992_v4 = vmul.f32 %v2928_v59, %v2928_v59  ;;  %v4432_v24 = vpop.f32.mrb[60].mxu1  ;;  %v7650_v17 = vpack.c.bf16 %v7648_v51, %v7649_v55  ;;  %v7654_v59 = vld [vmem:[#allocation69_spill] sm:$0xff] }
 0x429   :  { %v2931_v27 = vsub.f32 %v4432_v24, %v4715_v1  ;;  %3546 = vst.msk [vmem:[#allocation5 + $0x1e8] sm:$0xff] %vm106_vm0, %v4432_v24  ;;  %v2851_v16 = vpop.f32.mrb[61].mxu1  ;;  %4513 = vmatpush3.bf16.xpose.msk.msra.mxu1 %vm6748_vm12, %v4511_v20  ;;  %v7658_v24 = vld [vmem:[#allocation61_spill] sm:$0xff] }
 0x42a   :  { %v4526_v5 = vpack.c.bf16 %v2993_v8, %v2992_v4  ;;  %v2930_v41 = vsub.f32 %v2851_v16, %v4716_v45  ;;  %3545 = vst.msk [vmem:[#allocation5 + $0x1e0] sm:$0xff] %vm106_vm0, %v2851_v16  ;;  %4516 = vmatprep.subr.msk.bf16.mxu1 %vm6748_vm12, %v4514_v29  ;;  %v7656_v8 = vpack.c.bf16 %v7654_v59, %v7655_v14  ;;  %v7657_v4 = vld [vmem:[#allocation63_spill] sm:$0xff]  ;;  %v7663_v45 = vld [vmem:[#allocation8_spill] sm:$0xff] }
 0x42b   :  { %v2995_v34 = vmul.f32 %v2931_v27, %v2931_v27  ;;  %v7659_v1 = vpack.c.bf16 %v7657_v4, %v7658_v24  ;;  %v7660_v27 = vld [vmem:[#allocation15_spill] sm:$0xff] }
 0x42c   :  { %v2994_v7 = vmul.f32 %v2930_v41, %v2930_v41  ;;  %v7661_v16 = vld [vmem:[#allocation59_spill] sm:$0xff] }
 0x42d   :  { %4573 = vmatpush3.bf16.xpose.msk.msra.mxu0 %vm6854_vm13, %v7615_v21  ;;  %v7664_v41 = vld [vmem:[#allocation47_spill] sm:$0xff]  ;;  %v7667_v21 = vld [vmem:[#allocation62_spill] sm:$0xff] }
 0x42e   :  { %v4532_v3 = vpack.c.bf16 %v2995_v34, %v2994_v7  ;;  %4576 = vmatprep.subr.msk.bf16.mxu0 %vm6854_vm13, %v7616_v12  ;;  %v7665_v34 = vpack.c.bf16 %v7663_v45, %v7664_v41  ;;  %v7666_v7 = vld [vmem:[#allocation14_spill] sm:$0xff]  ;;  %v7669_v12 = vld [vmem:[#allocation64_spill] sm:$0xff] }
 0x430   :  { %v4435_v20 = vpop.f32.mrb[62].mxu1 }
 0x431   :  { %v2933_v10 = vsub.f32 %v4435_v20, %v4717_v11  ;;  %3548 = vst.msk [vmem:[#allocation5 + $0x1f8] sm:$0xff] %vm106_vm0, %v4435_v20  ;;  %v2861_v36 = vpop.f32.mrb[63].mxu1  ;;  %4519 = vmatpush3.bf16.xpose.msk.msra.mxu1 %vm6748_vm12, %v4517_v33  ;;  %v7629_v33 = vpack.c.bf16 %v7627_v50, %v7628_v40  ;;  %v7670_v20 = vld [vmem:[#allocation49_spill] sm:$0xff] }
 0x432   :  { %v2932_v13 = vsub.f32 %v2861_v36, %v4718_v23  ;;  %3547 = vst.msk [vmem:[#allocation5 + $0x1f0] sm:$0xff] %vm106_vm0, %v2861_v36  ;;  %4522 = vmatprep.subr.msk.bf16.mxu1 %vm6748_vm12, %v4520_v43  ;;  %v7652_v43 = vld [vmem:[#allocation58_spill] sm:$0xff]  ;;  %v7671_v11 = vpack.c.bf16 %v7669_v12, %v7670_v20 }
 0x433   :  { %v2997_v28 = vmul.f32 %v2933_v10, %v2933_v10  ;;  %v7653_v53 = vpack.c.bf16 %v7651_v19, %v7652_v43 }
 0x434   :  { %v2996_v60 = vmul.f32 %v2932_v13, %v2932_v13 }
 0x435   :  { %4579 = vmatpush3.bf16.xpose.msk.msra.mxu0 %vm6854_vm13, %v7617_v32 }
 0x436   :  { %v4538_v29 = vpack.c.bf16 %v2997_v28, %v2996_v60  ;;  %4582 = vmatprep.subr.msk.bf16.mxu0 %vm6854_vm13, %v7618_v25 }
 0x439   :  { %4525 = vmatpush3.bf16.xpose.msk.msra.mxu1 %vm6748_vm12, %v4523_v38  ;;  %v7633_v38 = vld [vmem:[#allocation51_spill] sm:$0xff] }
 0x43a   :  { %4528 = vmatprep.subr.msk.bf16.mxu1 %vm6748_vm12, %v4526_v5  ;;  %v7635_v58 = vpack.c.bf16 %v7633_v38, %v7634_v26  ;;  %v7662_v5 = vpack.c.bf16 %v7660_v27, %v7661_v16 }
 0x43d   :  { %4585 = vmatpush3.bf16.xpose.msk.msra.mxu0 %vm6854_vm13, %v7619_v52 }
 0x43e   :  { %4588 = vmatprep.subr.msk.bf16.mxu0 %vm6854_vm13, %v7620_v2 }
 0x441   :  { %4531 = vmatpush3.bf16.xpose.msk.msra.mxu1 %vm6748_vm12, %v4529_v47  ;;  %v7636_v47 = vld [vmem:[#allocation53_spill] sm:$0xff] }
 0x442   :  { %4534 = vmatprep.subr.msk.bf16.mxu1 %vm6748_vm12, %v4532_v3  ;;  %v7638_v49 = vpack.c.bf16 %v7636_v47, %v7637_v39  ;;  %v7668_v3 = vpack.c.bf16 %v7666_v7, %v7667_v21 }
 0x445   :  { %4591 = vmatpush3.bf16.xpose.msk.msra.mxu0 %vm6854_vm13, %v7622_v30 }
 0x449   :  { %4537 = vmatpush3.bf16.xpose.msk.msra.mxu1 %vm6748_vm12, %v4535_v37  ;;  %v7640_v37 = vld [vmem:[#allocation42_spill] sm:$0xff] }
 0x44a   :  { %4540 = vmatprep.subr.msk.bf16.mxu1 %vm6748_vm12, %v4538_v29 }
 0x44c   :  { %4197 = vmatmul.mubr.msk.f32.vlgmr.msra.gmra.mrb[66].mxu0 %vm820_vm1, %v6908_v31 }
 0x451   :  { %4543 = vmatpush3.bf16.xpose.msk.msra.mxu1 %vm6748_vm12, %v7623_v56 }
 0x452   :  { %4594 = vmatprep.subr.msk.bf16.mxu1 %vm6854_vm13, %v7626_v48 }
 0x458   :  { %4163 = vmatmul.mubr.msk.f32.vlgmr.msra.gmra.mrb[64].mxu1 %vm106_vm0, %v7606_v62  ;;  %v7639_v62 = vld [vmem:[#allocation44_spill] sm:$0xff] }
 0x459   :  { %4597 = vmatpush3.bf16.xpose.msk.msra.mxu1 %vm6854_vm13, %v7629_v33  ;;  %4230 = vmatprep.mubr.msk.f32.mxu1 %vm820_vm1, %v6908_v31  ;;  %v7641_v6 = vpack.c.bf16 %v7639_v62, %v7640_v37 }
 0x45a   :  { %4600 = vmatprep.subr.msk.bf16.mxu1 %vm6854_vm13, %v7632_v0 }
 0x461   :  { %4603 = vmatpush3.bf16.xpose.msk.msra.mxu1 %vm6854_vm13, %v7635_v58 }
 0x462   :  { %4606 = vmatprep.subr.msk.bf16.mxu1 %vm6854_vm13, %v7638_v49 }
 0x469   :  { %4609 = vmatpush3.bf16.xpose.msk.msra.mxu1 %vm6854_vm13, %v7641_v6 }
 0x46a   :  { %4612 = vmatprep.subr.msk.bf16.mxu1 %vm6854_vm13, %v7644_v18 }
 0x471   :  { %4615 = vmatpush3.bf16.xpose.msk.msra.mxu1 %vm6854_vm13, %v7647_v22 }
 0x472   :  { %4618 = vmatprep.subr.msk.bf16.mxu1 %vm6854_vm13, %v7650_v17 }
 0x479   :  { %4621 = vmatpush3.bf16.xpose.msk.msra.mxu1 %vm6854_vm13, %v7653_v53 }
 0x47a   :  { %4624 = vmatprep.subr.msk.bf16.mxu1 %vm6854_vm13, %v7656_v8 }
 0x481   :  { %4627 = vmatpush3.bf16.xpose.msk.msra.mxu1 %vm6854_vm13, %v7659_v1 }
 0x482   :  { %4630 = vmatprep.subr.msk.bf16.mxu1 %vm6854_vm13, %v7662_v5 }
 0x489   :  { %4633 = vmatpush3.bf16.xpose.msk.msra.mxu1 %vm6854_vm13, %v7665_v34 }
 0x48a   :  { %4636 = vmatprep.subr.msk.bf16.mxu1 %vm6854_vm13, %v7668_v3 }
 0x491   :  { %4639 = vmatpush3.bf16.xpose.msk.msra.mxu1 %vm6854_vm13, %v7671_v11 }
 0x498   :  { %4231 = vmatmul.mubr.msk.f32.vlgmr.msra.gmra.mrb[66].mxu1 %vm820_vm1, %v6908_v31 }
 0x4df   :  { %v3259_v10 = vpop.f32.mrb[64].mxu0 }
 0x4e0   :  { %v3335_v36 = vmul.f32 0.0625, %v3259_v10  ;;  %v3261_v23 = vpop.f32.mrb[65].mxu0 }
 0x4e1   :  { %v3336_v13 = vmul.f32 0.0625, %v3261_v23 }
 0x4e3   :  { %v3586_v28 = vcombine.low %v3335_v36, %v3336_v13 }
 0x4e4   :  { %4752 = shalt.err (!%p4749_p12)
}
 0x4e5   :  { %s4753_s26 = scalar_lea.hbm %s7165_s4, 8192 }
 0x4e6   :  { %p4754_p13 = scmp.ne.s32.totalorder %s7165_s4, %s4753_s26  ;;  %p4757_p0 = scmp.lt.u32.totalorder %s4753_s26, %s7165_s4 }
 0x4e8   :  { %p4759_p1 = pnand %p4757_p0, %p4754_p13 }
 0x4ea   :  { %4762 = shalt.err (!%p4759_p1)
}
 0x4eb   :  { %3623 = dma.vmem_to_hbm [thread:$0]  %s3618_s22, 8192, %s7165_s4, [#allocation4], %s4768_s7, %s4768_s7, %s4769_s8   ;;  %v4773_v25 = vmov 1966171168   ;;  %v7672_v56 = vlaneseq }
 0x4ec   :  { %v3556_v52 = vunpack.c.l.s4 %v4773_v25 }
 0x4ed   :  { %v3559_v44 = vshrl.u32 %v7672_v56, 7  ;;  %vm3579_vm0 = vcmp.lt.s32.totalorder %v7672_v56, 512 }
 0x4ee   :  { %v3557_v30 = vunpack.c.0.s8 %v3556_v52 }
 0x4f0   :  { %v3560_v48 = vsub.s32 %v3557_v30, %v3559_v44 }
 0x4f2   :  { %v3594_v35 = vrot.slane %v3586_v28, %v3560_v48 }
 0x51f   :  { %v3409_v61 = vpop.f32.mrb[66].mxu0 }
 0x520   :  { %v4640_v31 = vtrunc.f32 %v3409_v61  ;;  %v3411_v60 = vpop.f32.mrb[67].mxu0 }
 0x521   :  { %v4642_v32 = vtrunc.f32 %v3411_v60 }
 0x522   :  { %v4641_v29 = vcvt.f32.s32 %v4640_v31 }
 0x523   :  { %v4643_v2 = vcvt.f32.s32 %v4642_v32 }
 0x525   :  { %v3553_v15 = vcombine.low %v4641_v29, %v4643_v2 }
 0x527   :  { %v3561_v6 = vrot.slane %v3553_v15, %v3560_v48 }
 0x52b   :  { %v3330_v9 = vpop.f32.mrb[64].mxu1 }
 0x52c   :  { %v3337_v50 = vmul.f32 0.0625, %v3330_v9  ;;  %v3332_v40 = vpop.f32.mrb[65].mxu1 }
 0x52d   :  { %v3338_v33 = vmul.f32 0.0625, %v3332_v40 }
 0x52f   :  { %v3587_v42 = vcombine.low %v3337_v50, %v3338_v33 }
 0x531   :  { %v3601_v0 = vrot.slane %v3587_v42, %v3560_v48 }
 0x533   :  { %v3602_v38 = vcombine.low %v3594_v35, %v3601_v0 }
 0x535   :  { %v3609_v26 = vrot.slane %v3602_v38, %v3560_v48 }
 0x537   :  { %3611 = vst.msk [vmem:[%s7167_s6] sm:$0xf] %vm3579_vm0, %v3609_v26 }
 0x56b   :  { %v3480_v58 = vpop.f32.mrb[66].mxu1 }
 0x56c   :  { %v4644_v47 = vtrunc.f32 %v3480_v58  ;;  %v3482_v39 = vpop.f32.mrb[67].mxu1 }
 0x56d   :  { %v4646_v49 = vtrunc.f32 %v3482_v39 }
 0x56e   :  { %v4645_v62 = vcvt.f32.s32 %v4644_v47 }
 0x56f   :  { %v4647_v37 = vcvt.f32.s32 %v4646_v49 }
 0x571   :  { %v3554_v54 = vcombine.low %v4645_v62, %v4647_v37 }
 0x573   :  { %v3568_v63 = vrot.slane %v3554_v54, %v3560_v48 }
 0x575   :  { %v3569_v18 = vcombine.low %v3561_v6, %v3568_v63 }
 0x577   :  { %v3576_v57 = vrot.slane %v3569_v18, %v3560_v48 }
 0x579   :  { %3581 = vst.msk [vmem:[%s7166_s5] sm:$0xf] %vm3579_vm0, %v3576_v57 }
 0x57a   :  { %4765 = dma.done.wait [#allocation4], 8192  }
 0x57b   :  { %4766 = vsyncadd [#allocation4], 4294959104 }
 0x57c   :  { %3635 = vsyncpa [#allocation3], 1 }
 0x57d   :  { %3636 = vsyncpa [#allocation4], 1 }

</bundles_post_ra>
